<compile_context>
chip_gen: v6e
topology: v6e:2x2x1
jax: 0.10.0
libtpu: 0.0.40
codegen_flags: <defaults>
</compile_context>

<pallas_src>
import functools
import math

import jax
import jax.numpy as jnp
from jax.experimental import pallas as pl
from jax.experimental.pallas import tpu as pltpu  # noqa: F401  (TPU backend)


# ----------------------------------------------------------------------------
# Fused kernel
# ----------------------------------------------------------------------------
def _resblock_kernel(x_ref, e_ref, j_ref, wm_ref,
                     wt1t_ref, bt1_ref, wt2t_ref, bt2_ref,
                     wc1t_ref, bc1_ref, wc2t_ref, bc2_ref,
                     o_ref, *, B, N, T, C, D):
    f32 = jnp.float32
    BN, TC = B * N, T * C

    def mxu(a, b):
        # bf16 inputs, f32 accumulation: single-pass MXU matmul.
        return jnp.dot(a.astype(jnp.bfloat16), b.astype(jnp.bfloat16),
                       preferred_element_type=f32)

    # ---- load the lane-dense [B*N, T*C] block and build the 3-D working view
    X = x_ref[...]                              # [BN, TC]  rows=(b,n) lanes=(t,c)
    X3 = X.reshape(BN, T, C)                    # [BN, T, C]
    X4 = X3.reshape(B, N, T, C)                 # [B, N, T, C]

    E = e_ref[...].reshape(B, N, T)             # hostname (entry) ids
    J = j_ref[...].reshape(B, N, T)             # job ids
    W = wm_ref[...]                             # MaskLinear.full_weight [N_out, N_in]

    # ---- 1) node mixing (MaskLinear gather + job mask) -- exact f32 on the VPU
    # GA[b, k, l, t] = W[l, E[b, k, t]]  (8 unrolled selects, no O(T*N^3) blowup)
    E4 = E[:, :, None, :]                       # [B, K, 1, T]
    GA = jnp.zeros((B, N, N, T), f32)
    for n in range(N):
        wcol = W[:, n:n + 1].reshape(1, 1, N, 1)        # W[:, n] along the L axis
        GA = GA + jnp.where(E4 == n, wcol, 0.0)

    # job-match mask (symmetric in k, l): equal and both non-zero
    Jk = J[:, :, None, :]
    Jl = J[:, None, :, :]
    maskA = ((Jk == Jl) & (Jk != 0) & (Jl != 0)).astype(f32)    # [B, K, L, T]
    M = GA * maskA                                              # [B, K, L, T]

    # Y[(b,l), t, c] = sum_k M[b,k,l,t] * x[b,k,t,c]  (8-deep unrolled VPU FMA)
    Y = jnp.zeros((BN, T, C), f32)
    for k in range(N):
        coeff = M[:, k, :, :].reshape(BN, T)[:, :, None]        # [BN, T, 1]
        xk = jnp.broadcast_to(X4[:, k:k + 1], (B, N, T, C)).reshape(BN, T, C)
        Y = Y + coeff * xk

    # ResBlock residual:  x + (x + relu(node))  ==  2*x + relu(node)
    x1 = 2.0 * X3 + jnp.maximum(Y, 0.0)                         # [BN, T, C]

    # ---- 2) temporal MLP (mix over seq_len T) -- MXU ------------------------
    xt = jnp.swapaxes(x1, 1, 2).reshape(BN * C, T)              # [BN*C, T]
    h = jnp.maximum(mxu(xt, wt1t_ref[...]) + bt1_ref[...], 0.0)  # [BN*C, D]
    yt = mxu(h, wt2t_ref[...]) + bt2_ref[...]                   # [BN*C, T]
    x2 = x1 + jnp.swapaxes(yt.reshape(BN, C, T), 1, 2)          # [BN, T, C]

    # ---- 3) channel MLP (mix over enc_in C) -- MXU --------------------------
    xc = x2.reshape(BN * T, C)                                  # [BN*T, C]
    h2 = jnp.maximum(mxu(xc, wc1t_ref[...]) + bc1_ref[...], 0.0)  # [BN*T, D]
    yc = mxu(h2, wc2t_ref[...]) + bc2_ref[...]                  # [BN*T, C]
    x3 = x2 + yc.reshape(BN, T, C)

    # ---- lane-dense [B*N, T*C] store ----------------------------------------
    o_ref[...] = x3.reshape(BN, TC)


# ----------------------------------------------------------------------------
# Wrapper: only free (contiguous) reshapes + one-time weight prep, no transposes
# of activations, single pallas_call, no grid.
# ----------------------------------------------------------------------------
def resblock_forward(params, x, x_hostname_id, x_job_id,
                     x_rack_id=None, x_cabinet_id=None, x_node_in_rack_id=None):
    B, N, T, C = x.shape
    D = params["Wt1"].shape[0]
    kern = functools.partial(_resblock_kernel, B=B, N=N, T=T, C=C, D=D)
    out2d = pl.pallas_call(
        kern,
        out_shape=jax.ShapeDtypeStruct((B * N, T * C), x.dtype),
    )(
        x.reshape(B * N, T * C),                              # lane-dense [16,128]
        x_hostname_id.astype(jnp.int32).reshape(B * N, T),
        x_job_id.astype(jnp.int32).reshape(B * N, T),
        params["Wm"],
        params["Wt1"].T, params["bt1"].reshape(1, D),         # temporal L(T->D)
        params["Wt2"].T, params["bt2"].reshape(1, T),         # temporal L(D->T)
        params["Wc1"].T, params["bc1"].reshape(1, D),         # channel  L(C->D)
        params["Wc2"].T, params["bc2"].reshape(1, C),         # channel  L(D->C)
    )
    return out2d.reshape(B, N, T, C)


# ----------------------------------------------------------------------------
# Pure-JAX reference mirroring the PyTorch forward (inference).
#   mxu_bf16=True  : MLP matmuls with bf16 inputs / f32 accumulation (mirrors
#                    the kernel's MXU path exactly -> tight comparison).
#   mxu_bf16=False : full f32 ('highest') matmuls, faithful to torch float32.
# ----------------------------------------------------------------------------
def resblock_reference(params, x, entry, jobs, mxu_bf16=False):
    B, N, T, C = x.shape
    f32 = jnp.float32
    hi = jax.lax.Precision.HIGHEST

    def mm(a, b):
        if mxu_bf16:
            return jnp.dot(a.astype(jnp.bfloat16), b.astype(jnp.bfloat16),
                           preferred_element_type=f32)
        return jnp.dot(a, b, precision=hi, preferred_element_type=f32)

    Wm = params["Wm"]
    # --- NodeMixingResBlock (its LayerNorm output is overwritten -> omitted) ---
    xp = jnp.transpose(x, (0, 2, 3, 1))                       # [B,T,C,N]
    w = Wm[:, entry.reshape(-1)].reshape(N, B, N, T)          # weight[l,b,k,t]
    mask = ((jobs[:, :, None, :] == jobs[:, None, :, :])
            & (jobs[:, :, None, :] != 0)
            & (jobs[:, None, :, :] != 0)).astype(f32)         # [B,Nl,Nk,T]
    mask = jnp.transpose(mask, (1, 0, 2, 3))                  # [Nl,B,Nk,T]
    mw = w * mask
    y = jnp.einsum("bijk,lbki->bijl", xp, mw, precision=hi)   # node contraction (f32)
    y = jnp.maximum(y, 0.0)
    y = jnp.transpose(y, (0, 3, 1, 2))                        # [B,N,T,C]
    x = x + (x + y)
    # --- temporal MLP over seq_len ---
    xt = jnp.swapaxes(x, 2, 3)                                # [B,N,C,T]
    h = jnp.maximum(mm(xt, params["Wt1"].T) + params["bt1"], 0.0)
    o = mm(h, params["Wt2"].T) + params["bt2"]
    x = x + jnp.swapaxes(o, 2, 3)
    # --- channel MLP over enc_in ---
    h = jnp.maximum(mm(x, params["Wc1"].T) + params["bc1"], 0.0)
    o = mm(h, params["Wc2"].T) + params["bc2"]
    x = x + o
    return x


# ----------------------------------------------------------------------------
# Deterministic parameter construction (PyTorch-layout weights)
# ----------------------------------------------------------------------------
def make_params(key, N, T, C, D):
    ks = jax.random.split(key, 10)

    def u(k, shape, fan_in):
        b = 1.0 / math.sqrt(fan_in)
        return jax.random.uniform(k, shape, jnp.float32, -b, b)

    return {
        "Wm":  u(ks[0], (N, N), N),     # MaskLinear.full_weight [out, in]
        "Wt1": u(ks[1], (D, T), T),     # temporal Linear(seq_len, d_model)
        "bt1": u(ks[2], (D,), T),
        "Wt2": u(ks[3], (T, D), D),     # temporal Linear(d_model, seq_len)
        "bt2": u(ks[4], (T,), D),
        "Wc1": u(ks[5], (D, C), C),     # channel Linear(enc_in, d_model)
        "bc1": u(ks[6], (D,), C),
        "Wc2": u(ks[7], (C, D), D),     # channel Linear(d_model, enc_in)
        "bc2": u(ks[8], (C,), D),
    }


if __name__ == "__main__":
    # configs: num_hostname=8, seq_len=8, enc_in=16, d_model=32, batch=2
    B, N, T, C, D = 2, 8, 8, 16, 32

    key = jax.random.PRNGKey(0)
    kx, ke, kj, kp = jax.random.split(key, 4)

    x = jax.random.normal(kx, (B, N, T, C), jnp.float32)
    x_hostname_id = jax.random.randint(ke, (B, N, T), 0, N, jnp.int32)   # in [0, N)
    x_job_id = jax.random.randint(kj, (B, N, T), 0, 4, jnp.int32)        # 0 == "no job"
    zeros_id = jnp.zeros((B, N, T), jnp.int32)   # rack/cabinet/node ids: unused by forward

    params = make_params(kp, N, T, C, D)

    fwd = jax.jit(resblock_forward)
    out = fwd(params, x, x_hostname_id, x_job_id, zeros_id, zeros_id, zeros_id)
    out = jax.block_until_ready(out)
    assert out.shape == (B, N, T, C)

    # Check 1: against a reference that mirrors the kernel's bf16-in/f32-acc MXU
    # matmuls (tight: only f32 accumulation-order differences remain).
    ref_bf16 = resblock_reference(params, x, x_hostname_id, x_job_id, mxu_bf16=True)
    err1 = float(jnp.max(jnp.abs(out - ref_bf16)))
    assert jnp.allclose(out, ref_bf16, atol=3e-3, rtol=3e-3), err1

    # Check 2: against the faithful full-f32 reference (tolerance sized for
    # single-pass bf16 MXU rounding; structural bugs would show up as O(1) errors).
    ref_f32 = resblock_reference(params, x, x_hostname_id, x_job_id, mxu_bf16=False)
    err2 = float(jnp.max(jnp.abs(out - ref_f32)))
    assert jnp.allclose(out, ref_f32, atol=2e-2, rtol=2e-2), err2

    print("KERNEL_OK")
</pallas_src>

<mosaic_0001>
module attributes {stable_mosaic.version = 11 : i64} {
  func.func @_resblock_kernel(%arg0: memref<16x128xf32, #tpu.memory_space<vmem>>, %arg1: memref<16x8xi32, #tpu.memory_space<vmem>>, %arg2: memref<16x8xi32, #tpu.memory_space<vmem>>, %arg3: memref<8x8xf32, #tpu.memory_space<vmem>>, %arg4: memref<8x32xf32, #tpu.memory_space<vmem>>, %arg5: memref<1x32xf32, #tpu.memory_space<vmem>>, %arg6: memref<32x8xf32, #tpu.memory_space<vmem>>, %arg7: memref<1x8xf32, #tpu.memory_space<vmem>>, %arg8: memref<16x32xf32, #tpu.memory_space<vmem>>, %arg9: memref<1x32xf32, #tpu.memory_space<vmem>>, %arg10: memref<32x16xf32, #tpu.memory_space<vmem>>, %arg11: memref<1x16xf32, #tpu.memory_space<vmem>>, %arg12: memref<16x128xf32, #tpu.memory_space<vmem>>) attributes {dimension_semantics = [], scalar_prefetch = 0 : i64, scratch_operands = 0 : i64, tpu.core_type = #tpu.core_type<tc>} {
    %c0 = arith.constant 0 : index
    %c0_0 = arith.constant 0 : index
    %0 = vector.load %arg0[%c0, %c0_0] : memref<16x128xf32, #tpu.memory_space<vmem>>, vector<16x128xf32>
    %1 = vector.shape_cast %0 : vector<16x128xf32> to vector<16x8x16xf32>
    %2 = vector.shape_cast %1 : vector<16x8x16xf32> to vector<2x8x8x16xf32>
    %c0_1 = arith.constant 0 : index
    %c0_2 = arith.constant 0 : index
    %3 = vector.load %arg1[%c0_1, %c0_2] : memref<16x8xi32, #tpu.memory_space<vmem>>, vector<16x8xi32>
    %4 = vector.shape_cast %3 : vector<16x8xi32> to vector<2x8x8xi32>
    %c0_3 = arith.constant 0 : index
    %c0_4 = arith.constant 0 : index
    %5 = vector.load %arg2[%c0_3, %c0_4] : memref<16x8xi32, #tpu.memory_space<vmem>>, vector<16x8xi32>
    %6 = vector.shape_cast %5 : vector<16x8xi32> to vector<2x8x8xi32>
    %c0_5 = arith.constant 0 : index
    %c0_6 = arith.constant 0 : index
    %7 = vector.load %arg3[%c0_5, %c0_6] : memref<8x8xf32, #tpu.memory_space<vmem>>, vector<8x8xf32>
    %8 = vector.shape_cast %4 : vector<2x8x8xi32> to vector<2x8x1x8xi32>
    %cst = arith.constant 0.000000e+00 : f32
    %9 = vector.broadcast %cst : f32 to vector<2x8x8x8xf32>
    %10 = vector.extract_strided_slice %7 {offsets = [0, 0], sizes = [8, 1], strides = [1, 1]} : vector<8x8xf32> to vector<8x1xf32>
    %11 = vector.shape_cast %10 : vector<8x1xf32> to vector<1x1x8x1xf32>
    %c0_i32 = arith.constant 0 : i32
    %12 = vector.broadcast %c0_i32 : i32 to vector<2x8x1x8xi32>
    %13 = arith.cmpi eq, %8, %12 : vector<2x8x1x8xi32>
    %cst_7 = arith.constant 0.000000e+00 : f32
    %14 = vector.shape_cast %13 : vector<2x8x1x8xi1> to vector<2x8x1x8xi1>
    %15 = vector.broadcast %14 : vector<2x8x1x8xi1> to vector<2x8x8x8xi1>
    %16 = vector.shape_cast %11 : vector<1x1x8x1xf32> to vector<1x1x8x1xf32>
    %17 = vector.broadcast %16 : vector<1x1x8x1xf32> to vector<2x8x8x8xf32>
    %18 = vector.broadcast %cst_7 : f32 to vector<2x8x8x8xf32>
    %19 = arith.select %15, %17, %18 : vector<2x8x8x8xi1>, vector<2x8x8x8xf32>
    %20 = arith.addf %9, %19 : vector<2x8x8x8xf32>
    %21 = vector.extract_strided_slice %7 {offsets = [0, 1], sizes = [8, 1], strides = [1, 1]} : vector<8x8xf32> to vector<8x1xf32>
    %22 = vector.shape_cast %21 : vector<8x1xf32> to vector<1x1x8x1xf32>
    %c1_i32 = arith.constant 1 : i32
    %23 = vector.broadcast %c1_i32 : i32 to vector<2x8x1x8xi32>
    %24 = arith.cmpi eq, %8, %23 : vector<2x8x1x8xi32>
    %cst_8 = arith.constant 0.000000e+00 : f32
    %25 = vector.shape_cast %24 : vector<2x8x1x8xi1> to vector<2x8x1x8xi1>
    %26 = vector.broadcast %25 : vector<2x8x1x8xi1> to vector<2x8x8x8xi1>
    %27 = vector.shape_cast %22 : vector<1x1x8x1xf32> to vector<1x1x8x1xf32>
    %28 = vector.broadcast %27 : vector<1x1x8x1xf32> to vector<2x8x8x8xf32>
    %29 = vector.broadcast %cst_8 : f32 to vector<2x8x8x8xf32>
    %30 = arith.select %26, %28, %29 : vector<2x8x8x8xi1>, vector<2x8x8x8xf32>
    %31 = arith.addf %20, %30 : vector<2x8x8x8xf32>
    %32 = vector.extract_strided_slice %7 {offsets = [0, 2], sizes = [8, 1], strides = [1, 1]} : vector<8x8xf32> to vector<8x1xf32>
    %33 = vector.shape_cast %32 : vector<8x1xf32> to vector<1x1x8x1xf32>
    %c2_i32 = arith.constant 2 : i32
    %34 = vector.broadcast %c2_i32 : i32 to vector<2x8x1x8xi32>
    %35 = arith.cmpi eq, %8, %34 : vector<2x8x1x8xi32>
    %cst_9 = arith.constant 0.000000e+00 : f32
    %36 = vector.shape_cast %35 : vector<2x8x1x8xi1> to vector<2x8x1x8xi1>
    %37 = vector.broadcast %36 : vector<2x8x1x8xi1> to vector<2x8x8x8xi1>
    %38 = vector.shape_cast %33 : vector<1x1x8x1xf32> to vector<1x1x8x1xf32>
    %39 = vector.broadcast %38 : vector<1x1x8x1xf32> to vector<2x8x8x8xf32>
    %40 = vector.broadcast %cst_9 : f32 to vector<2x8x8x8xf32>
    %41 = arith.select %37, %39, %40 : vector<2x8x8x8xi1>, vector<2x8x8x8xf32>
    %42 = arith.addf %31, %41 : vector<2x8x8x8xf32>
    %43 = vector.extract_strided_slice %7 {offsets = [0, 3], sizes = [8, 1], strides = [1, 1]} : vector<8x8xf32> to vector<8x1xf32>
    %44 = vector.shape_cast %43 : vector<8x1xf32> to vector<1x1x8x1xf32>
    %c3_i32 = arith.constant 3 : i32
    %45 = vector.broadcast %c3_i32 : i32 to vector<2x8x1x8xi32>
    %46 = arith.cmpi eq, %8, %45 : vector<2x8x1x8xi32>
    %cst_10 = arith.constant 0.000000e+00 : f32
    %47 = vector.shape_cast %46 : vector<2x8x1x8xi1> to vector<2x8x1x8xi1>
    %48 = vector.broadcast %47 : vector<2x8x1x8xi1> to vector<2x8x8x8xi1>
    %49 = vector.shape_cast %44 : vector<1x1x8x1xf32> to vector<1x1x8x1xf32>
    %50 = vector.broadcast %49 : vector<1x1x8x1xf32> to vector<2x8x8x8xf32>
    %51 = vector.broadcast %cst_10 : f32 to vector<2x8x8x8xf32>
    %52 = arith.select %48, %50, %51 : vector<2x8x8x8xi1>, vector<2x8x8x8xf32>
    %53 = arith.addf %42, %52 : vector<2x8x8x8xf32>
    %54 = vector.extract_strided_slice %7 {offsets = [0, 4], sizes = [8, 1], strides = [1, 1]} : vector<8x8xf32> to vector<8x1xf32>
    %55 = vector.shape_cast %54 : vector<8x1xf32> to vector<1x1x8x1xf32>
    %c4_i32 = arith.constant 4 : i32
    %56 = vector.broadcast %c4_i32 : i32 to vector<2x8x1x8xi32>
    %57 = arith.cmpi eq, %8, %56 : vector<2x8x1x8xi32>
    %cst_11 = arith.constant 0.000000e+00 : f32
    %58 = vector.shape_cast %57 : vector<2x8x1x8xi1> to vector<2x8x1x8xi1>
    %59 = vector.broadcast %58 : vector<2x8x1x8xi1> to vector<2x8x8x8xi1>
    %60 = vector.shape_cast %55 : vector<1x1x8x1xf32> to vector<1x1x8x1xf32>
    %61 = vector.broadcast %60 : vector<1x1x8x1xf32> to vector<2x8x8x8xf32>
    %62 = vector.broadcast %cst_11 : f32 to vector<2x8x8x8xf32>
    %63 = arith.select %59, %61, %62 : vector<2x8x8x8xi1>, vector<2x8x8x8xf32>
    %64 = arith.addf %53, %63 : vector<2x8x8x8xf32>
    %65 = vector.extract_strided_slice %7 {offsets = [0, 5], sizes = [8, 1], strides = [1, 1]} : vector<8x8xf32> to vector<8x1xf32>
    %66 = vector.shape_cast %65 : vector<8x1xf32> to vector<1x1x8x1xf32>
    %c5_i32 = arith.constant 5 : i32
    %67 = vector.broadcast %c5_i32 : i32 to vector<2x8x1x8xi32>
    %68 = arith.cmpi eq, %8, %67 : vector<2x8x1x8xi32>
    %cst_12 = arith.constant 0.000000e+00 : f32
    %69 = vector.shape_cast %68 : vector<2x8x1x8xi1> to vector<2x8x1x8xi1>
    %70 = vector.broadcast %69 : vector<2x8x1x8xi1> to vector<2x8x8x8xi1>
    %71 = vector.shape_cast %66 : vector<1x1x8x1xf32> to vector<1x1x8x1xf32>
    %72 = vector.broadcast %71 : vector<1x1x8x1xf32> to vector<2x8x8x8xf32>
    %73 = vector.broadcast %cst_12 : f32 to vector<2x8x8x8xf32>
    %74 = arith.select %70, %72, %73 : vector<2x8x8x8xi1>, vector<2x8x8x8xf32>
    %75 = arith.addf %64, %74 : vector<2x8x8x8xf32>
    %76 = vector.extract_strided_slice %7 {offsets = [0, 6], sizes = [8, 1], strides = [1, 1]} : vector<8x8xf32> to vector<8x1xf32>
    %77 = vector.shape_cast %76 : vector<8x1xf32> to vector<1x1x8x1xf32>
    %c6_i32 = arith.constant 6 : i32
    %78 = vector.broadcast %c6_i32 : i32 to vector<2x8x1x8xi32>
    %79 = arith.cmpi eq, %8, %78 : vector<2x8x1x8xi32>
    %cst_13 = arith.constant 0.000000e+00 : f32
    %80 = vector.shape_cast %79 : vector<2x8x1x8xi1> to vector<2x8x1x8xi1>
    %81 = vector.broadcast %80 : vector<2x8x1x8xi1> to vector<2x8x8x8xi1>
    %82 = vector.shape_cast %77 : vector<1x1x8x1xf32> to vector<1x1x8x1xf32>
    %83 = vector.broadcast %82 : vector<1x1x8x1xf32> to vector<2x8x8x8xf32>
    %84 = vector.broadcast %cst_13 : f32 to vector<2x8x8x8xf32>
    %85 = arith.select %81, %83, %84 : vector<2x8x8x8xi1>, vector<2x8x8x8xf32>
    %86 = arith.addf %75, %85 : vector<2x8x8x8xf32>
    %87 = vector.extract_strided_slice %7 {offsets = [0, 7], sizes = [8, 1], strides = [1, 1]} : vector<8x8xf32> to vector<8x1xf32>
    %88 = vector.shape_cast %87 : vector<8x1xf32> to vector<1x1x8x1xf32>
    %c7_i32 = arith.constant 7 : i32
    %89 = vector.broadcast %c7_i32 : i32 to vector<2x8x1x8xi32>
    %90 = arith.cmpi eq, %8, %89 : vector<2x8x1x8xi32>
    %cst_14 = arith.constant 0.000000e+00 : f32
    %91 = vector.shape_cast %90 : vector<2x8x1x8xi1> to vector<2x8x1x8xi1>
    %92 = vector.broadcast %91 : vector<2x8x1x8xi1> to vector<2x8x8x8xi1>
    %93 = vector.shape_cast %88 : vector<1x1x8x1xf32> to vector<1x1x8x1xf32>
    %94 = vector.broadcast %93 : vector<1x1x8x1xf32> to vector<2x8x8x8xf32>
    %95 = vector.broadcast %cst_14 : f32 to vector<2x8x8x8xf32>
    %96 = arith.select %92, %94, %95 : vector<2x8x8x8xi1>, vector<2x8x8x8xf32>
    %97 = arith.addf %86, %96 : vector<2x8x8x8xf32>
    %98 = vector.shape_cast %6 : vector<2x8x8xi32> to vector<2x8x1x8xi32>
    %99 = vector.shape_cast %6 : vector<2x8x8xi32> to vector<2x1x8x8xi32>
    %100 = vector.broadcast %98 : vector<2x8x1x8xi32> to vector<2x8x8x8xi32>
    %101 = vector.broadcast %99 : vector<2x1x8x8xi32> to vector<2x8x8x8xi32>
    %102 = arith.cmpi eq, %100, %101 : vector<2x8x8x8xi32>
    %c0_i32_15 = arith.constant 0 : i32
    %103 = vector.broadcast %c0_i32_15 : i32 to vector<2x8x1x8xi32>
    %104 = arith.cmpi ne, %98, %103 : vector<2x8x1x8xi32>
    %105 = vector.broadcast %104 : vector<2x8x1x8xi1> to vector<2x8x8x8xi1>
    %106 = arith.andi %102, %105 : vector<2x8x8x8xi1>
    %c0_i32_16 = arith.constant 0 : i32
    %107 = vector.broadcast %c0_i32_16 : i32 to vector<2x1x8x8xi32>
    %108 = arith.cmpi ne, %99, %107 : vector<2x1x8x8xi32>
    %109 = vector.broadcast %108 : vector<2x1x8x8xi1> to vector<2x8x8x8xi1>
    %110 = arith.andi %106, %109 : vector<2x8x8x8xi1>
    %111 = arith.extui %110 : vector<2x8x8x8xi1> to vector<2x8x8x8xi32>
    %112 = arith.sitofp %111 : vector<2x8x8x8xi32> to vector<2x8x8x8xf32>
    %113 = arith.mulf %97, %112 : vector<2x8x8x8xf32>
    %cst_17 = arith.constant 0.000000e+00 : f32
    %114 = vector.broadcast %cst_17 : f32 to vector<16x8x16xf32>
    %115 = vector.extract_strided_slice %113 {offsets = [0, 0, 0, 0], sizes = [2, 1, 8, 8], strides = [1, 1, 1, 1]} : vector<2x8x8x8xf32> to vector<2x1x8x8xf32>
    %116 = vector.shape_cast %115 : vector<2x1x8x8xf32> to vector<2x8x8xf32>
    %117 = vector.shape_cast %116 : vector<2x8x8xf32> to vector<16x8xf32>
    %118 = vector.shape_cast %117 : vector<16x8xf32> to vector<16x8x1xf32>
    %119 = vector.extract_strided_slice %2 {offsets = [0, 0, 0, 0], sizes = [2, 1, 8, 16], strides = [1, 1, 1, 1]} : vector<2x8x8x16xf32> to vector<2x1x8x16xf32>
    %120 = vector.shape_cast %119 : vector<2x1x8x16xf32> to vector<2x1x8x16xf32>
    %121 = vector.broadcast %120 : vector<2x1x8x16xf32> to vector<2x8x8x16xf32>
    %122 = vector.shape_cast %121 : vector<2x8x8x16xf32> to vector<16x8x16xf32>
    %123 = vector.broadcast %118 : vector<16x8x1xf32> to vector<16x8x16xf32>
    %124 = arith.mulf %123, %122 : vector<16x8x16xf32>
    %125 = arith.addf %114, %124 : vector<16x8x16xf32>
    %126 = vector.extract_strided_slice %113 {offsets = [0, 1, 0, 0], sizes = [2, 1, 8, 8], strides = [1, 1, 1, 1]} : vector<2x8x8x8xf32> to vector<2x1x8x8xf32>
    %127 = vector.shape_cast %126 : vector<2x1x8x8xf32> to vector<2x8x8xf32>
    %128 = vector.shape_cast %127 : vector<2x8x8xf32> to vector<16x8xf32>
    %129 = vector.shape_cast %128 : vector<16x8xf32> to vector<16x8x1xf32>
    %130 = vector.extract_strided_slice %2 {offsets = [0, 1, 0, 0], sizes = [2, 1, 8, 16], strides = [1, 1, 1, 1]} : vector<2x8x8x16xf32> to vector<2x1x8x16xf32>
    %131 = vector.shape_cast %130 : vector<2x1x8x16xf32> to vector<2x1x8x16xf32>
    %132 = vector.broadcast %131 : vector<2x1x8x16xf32> to vector<2x8x8x16xf32>
    %133 = vector.shape_cast %132 : vector<2x8x8x16xf32> to vector<16x8x16xf32>
    %134 = vector.broadcast %129 : vector<16x8x1xf32> to vector<16x8x16xf32>
    %135 = arith.mulf %134, %133 : vector<16x8x16xf32>
    %136 = arith.addf %125, %135 : vector<16x8x16xf32>
    %137 = vector.extract_strided_slice %113 {offsets = [0, 2, 0, 0], sizes = [2, 1, 8, 8], strides = [1, 1, 1, 1]} : vector<2x8x8x8xf32> to vector<2x1x8x8xf32>
    %138 = vector.shape_cast %137 : vector<2x1x8x8xf32> to vector<2x8x8xf32>
    %139 = vector.shape_cast %138 : vector<2x8x8xf32> to vector<16x8xf32>
    %140 = vector.shape_cast %139 : vector<16x8xf32> to vector<16x8x1xf32>
    %141 = vector.extract_strided_slice %2 {offsets = [0, 2, 0, 0], sizes = [2, 1, 8, 16], strides = [1, 1, 1, 1]} : vector<2x8x8x16xf32> to vector<2x1x8x16xf32>
    %142 = vector.shape_cast %141 : vector<2x1x8x16xf32> to vector<2x1x8x16xf32>
    %143 = vector.broadcast %142 : vector<2x1x8x16xf32> to vector<2x8x8x16xf32>
    %144 = vector.shape_cast %143 : vector<2x8x8x16xf32> to vector<16x8x16xf32>
    %145 = vector.broadcast %140 : vector<16x8x1xf32> to vector<16x8x16xf32>
    %146 = arith.mulf %145, %144 : vector<16x8x16xf32>
    %147 = arith.addf %136, %146 : vector<16x8x16xf32>
    %148 = vector.extract_strided_slice %113 {offsets = [0, 3, 0, 0], sizes = [2, 1, 8, 8], strides = [1, 1, 1, 1]} : vector<2x8x8x8xf32> to vector<2x1x8x8xf32>
    %149 = vector.shape_cast %148 : vector<2x1x8x8xf32> to vector<2x8x8xf32>
    %150 = vector.shape_cast %149 : vector<2x8x8xf32> to vector<16x8xf32>
    %151 = vector.shape_cast %150 : vector<16x8xf32> to vector<16x8x1xf32>
    %152 = vector.extract_strided_slice %2 {offsets = [0, 3, 0, 0], sizes = [2, 1, 8, 16], strides = [1, 1, 1, 1]} : vector<2x8x8x16xf32> to vector<2x1x8x16xf32>
    %153 = vector.shape_cast %152 : vector<2x1x8x16xf32> to vector<2x1x8x16xf32>
    %154 = vector.broadcast %153 : vector<2x1x8x16xf32> to vector<2x8x8x16xf32>
    %155 = vector.shape_cast %154 : vector<2x8x8x16xf32> to vector<16x8x16xf32>
    %156 = vector.broadcast %151 : vector<16x8x1xf32> to vector<16x8x16xf32>
    %157 = arith.mulf %156, %155 : vector<16x8x16xf32>
    %158 = arith.addf %147, %157 : vector<16x8x16xf32>
    %159 = vector.extract_strided_slice %113 {offsets = [0, 4, 0, 0], sizes = [2, 1, 8, 8], strides = [1, 1, 1, 1]} : vector<2x8x8x8xf32> to vector<2x1x8x8xf32>
    %160 = vector.shape_cast %159 : vector<2x1x8x8xf32> to vector<2x8x8xf32>
    %161 = vector.shape_cast %160 : vector<2x8x8xf32> to vector<16x8xf32>
    %162 = vector.shape_cast %161 : vector<16x8xf32> to vector<16x8x1xf32>
    %163 = vector.extract_strided_slice %2 {offsets = [0, 4, 0, 0], sizes = [2, 1, 8, 16], strides = [1, 1, 1, 1]} : vector<2x8x8x16xf32> to vector<2x1x8x16xf32>
    %164 = vector.shape_cast %163 : vector<2x1x8x16xf32> to vector<2x1x8x16xf32>
    %165 = vector.broadcast %164 : vector<2x1x8x16xf32> to vector<2x8x8x16xf32>
    %166 = vector.shape_cast %165 : vector<2x8x8x16xf32> to vector<16x8x16xf32>
    %167 = vector.broadcast %162 : vector<16x8x1xf32> to vector<16x8x16xf32>
    %168 = arith.mulf %167, %166 : vector<16x8x16xf32>
    %169 = arith.addf %158, %168 : vector<16x8x16xf32>
    %170 = vector.extract_strided_slice %113 {offsets = [0, 5, 0, 0], sizes = [2, 1, 8, 8], strides = [1, 1, 1, 1]} : vector<2x8x8x8xf32> to vector<2x1x8x8xf32>
    %171 = vector.shape_cast %170 : vector<2x1x8x8xf32> to vector<2x8x8xf32>
    %172 = vector.shape_cast %171 : vector<2x8x8xf32> to vector<16x8xf32>
    %173 = vector.shape_cast %172 : vector<16x8xf32> to vector<16x8x1xf32>
    %174 = vector.extract_strided_slice %2 {offsets = [0, 5, 0, 0], sizes = [2, 1, 8, 16], strides = [1, 1, 1, 1]} : vector<2x8x8x16xf32> to vector<2x1x8x16xf32>
    %175 = vector.shape_cast %174 : vector<2x1x8x16xf32> to vector<2x1x8x16xf32>
    %176 = vector.broadcast %175 : vector<2x1x8x16xf32> to vector<2x8x8x16xf32>
    %177 = vector.shape_cast %176 : vector<2x8x8x16xf32> to vector<16x8x16xf32>
    %178 = vector.broadcast %173 : vector<16x8x1xf32> to vector<16x8x16xf32>
    %179 = arith.mulf %178, %177 : vector<16x8x16xf32>
    %180 = arith.addf %169, %179 : vector<16x8x16xf32>
    %181 = vector.extract_strided_slice %113 {offsets = [0, 6, 0, 0], sizes = [2, 1, 8, 8], strides = [1, 1, 1, 1]} : vector<2x8x8x8xf32> to vector<2x1x8x8xf32>
    %182 = vector.shape_cast %181 : vector<2x1x8x8xf32> to vector<2x8x8xf32>
    %183 = vector.shape_cast %182 : vector<2x8x8xf32> to vector<16x8xf32>
    %184 = vector.shape_cast %183 : vector<16x8xf32> to vector<16x8x1xf32>
    %185 = vector.extract_strided_slice %2 {offsets = [0, 6, 0, 0], sizes = [2, 1, 8, 16], strides = [1, 1, 1, 1]} : vector<2x8x8x16xf32> to vector<2x1x8x16xf32>
    %186 = vector.shape_cast %185 : vector<2x1x8x16xf32> to vector<2x1x8x16xf32>
    %187 = vector.broadcast %186 : vector<2x1x8x16xf32> to vector<2x8x8x16xf32>
    %188 = vector.shape_cast %187 : vector<2x8x8x16xf32> to vector<16x8x16xf32>
    %189 = vector.broadcast %184 : vector<16x8x1xf32> to vector<16x8x16xf32>
    %190 = arith.mulf %189, %188 : vector<16x8x16xf32>
    %191 = arith.addf %180, %190 : vector<16x8x16xf32>
    %192 = vector.extract_strided_slice %113 {offsets = [0, 7, 0, 0], sizes = [2, 1, 8, 8], strides = [1, 1, 1, 1]} : vector<2x8x8x8xf32> to vector<2x1x8x8xf32>
    %193 = vector.shape_cast %192 : vector<2x1x8x8xf32> to vector<2x8x8xf32>
    %194 = vector.shape_cast %193 : vector<2x8x8xf32> to vector<16x8xf32>
    %195 = vector.shape_cast %194 : vector<16x8xf32> to vector<16x8x1xf32>
    %196 = vector.extract_strided_slice %2 {offsets = [0, 7, 0, 0], sizes = [2, 1, 8, 16], strides = [1, 1, 1, 1]} : vector<2x8x8x16xf32> to vector<2x1x8x16xf32>
    %197 = vector.shape_cast %196 : vector<2x1x8x16xf32> to vector<2x1x8x16xf32>
    %198 = vector.broadcast %197 : vector<2x1x8x16xf32> to vector<2x8x8x16xf32>
    %199 = vector.shape_cast %198 : vector<2x8x8x16xf32> to vector<16x8x16xf32>
    %200 = vector.broadcast %195 : vector<16x8x1xf32> to vector<16x8x16xf32>
    %201 = arith.mulf %200, %199 : vector<16x8x16xf32>
    %202 = arith.addf %191, %201 : vector<16x8x16xf32>
    %cst_18 = arith.constant 2.000000e+00 : f32
    %203 = vector.broadcast %cst_18 : f32 to vector<16x8x16xf32>
    %204 = arith.mulf %203, %1 : vector<16x8x16xf32>
    %cst_19 = arith.constant 0.000000e+00 : f32
    %205 = vector.broadcast %cst_19 : f32 to vector<16x8x16xf32>
    %206 = arith.maximumf %202, %205 : vector<16x8x16xf32>
    %207 = arith.addf %204, %206 : vector<16x8x16xf32>
    %208 = tpu.transpose %207, [0, 2, 1] : vector<16x8x16xf32> -> vector<16x16x8xf32>
    %209 = vector.shape_cast %208 : vector<16x16x8xf32> to vector<256x8xf32>
    %c0_20 = arith.constant 0 : index
    %c0_21 = arith.constant 0 : index
    %210 = vector.load %arg4[%c0_20, %c0_21] : memref<8x32xf32, #tpu.memory_space<vmem>>, vector<8x32xf32>
    %211 = arith.truncf %209 : vector<256x8xf32> to vector<256x8xbf16>
    %212 = arith.truncf %210 : vector<8x32xf32> to vector<8x32xbf16>
    %cst_22 = arith.constant dense<0.000000e+00> : vector<256x32xf32>
    %213 = tpu.matmul %211, %212, %cst_22 {dimension_numbers = #tpu.dot_dimension_numbers<[1], [0], [0], [1], [0, 0, 1, 1], [], []>} : vector<256x8xbf16>, vector<8x32xbf16>, vector<256x32xf32> -> vector<256x32xf32>
    %c0_23 = arith.constant 0 : index
    %c0_24 = arith.constant 0 : index
    %214 = vector.load %arg5[%c0_23, %c0_24] : memref<1x32xf32, #tpu.memory_space<vmem>>, vector<1x32xf32>
    %215 = vector.broadcast %214 : vector<1x32xf32> to vector<256x32xf32>
    %216 = arith.addf %213, %215 : vector<256x32xf32>
    %cst_25 = arith.constant 0.000000e+00 : f32
    %217 = vector.broadcast %cst_25 : f32 to vector<256x32xf32>
    %218 = arith.maximumf %216, %217 : vector<256x32xf32>
    %c0_26 = arith.constant 0 : index
    %c0_27 = arith.constant 0 : index
    %219 = vector.load %arg6[%c0_26, %c0_27] : memref<32x8xf32, #tpu.memory_space<vmem>>, vector<32x8xf32>
    %220 = arith.truncf %218 : vector<256x32xf32> to vector<256x32xbf16>
    %221 = arith.truncf %219 : vector<32x8xf32> to vector<32x8xbf16>
    %cst_28 = arith.constant dense<0.000000e+00> : vector<256x8xf32>
    %222 = tpu.matmul %220, %221, %cst_28 {dimension_numbers = #tpu.dot_dimension_numbers<[1], [0], [0], [1], [0, 0, 1, 1], [], []>} : vector<256x32xbf16>, vector<32x8xbf16>, vector<256x8xf32> -> vector<256x8xf32>
    %c0_29 = arith.constant 0 : index
    %c0_30 = arith.constant 0 : index
    %223 = vector.load %arg7[%c0_29, %c0_30] : memref<1x8xf32, #tpu.memory_space<vmem>>, vector<1x8xf32>
    %224 = vector.broadcast %223 : vector<1x8xf32> to vector<256x8xf32>
    %225 = arith.addf %222, %224 : vector<256x8xf32>
    %226 = vector.shape_cast %225 : vector<256x8xf32> to vector<16x16x8xf32>
    %227 = tpu.transpose %226, [0, 2, 1] : vector<16x16x8xf32> -> vector<16x8x16xf32>
    %228 = arith.addf %207, %227 : vector<16x8x16xf32>
    %229 = vector.shape_cast %228 : vector<16x8x16xf32> to vector<128x16xf32>
    %c0_31 = arith.constant 0 : index
    %c0_32 = arith.constant 0 : index
    %230 = vector.load %arg8[%c0_31, %c0_32] : memref<16x32xf32, #tpu.memory_space<vmem>>, vector<16x32xf32>
    %231 = arith.truncf %229 : vector<128x16xf32> to vector<128x16xbf16>
    %232 = arith.truncf %230 : vector<16x32xf32> to vector<16x32xbf16>
    %cst_33 = arith.constant dense<0.000000e+00> : vector<128x32xf32>
    %233 = tpu.matmul %231, %232, %cst_33 {dimension_numbers = #tpu.dot_dimension_numbers<[1], [0], [0], [1], [0, 0, 1, 1], [], []>} : vector<128x16xbf16>, vector<16x32xbf16>, vector<128x32xf32> -> vector<128x32xf32>
    %c0_34 = arith.constant 0 : index
    %c0_35 = arith.constant 0 : index
    %234 = vector.load %arg9[%c0_34, %c0_35] : memref<1x32xf32, #tpu.memory_space<vmem>>, vector<1x32xf32>
    %235 = vector.broadcast %234 : vector<1x32xf32> to vector<128x32xf32>
    %236 = arith.addf %233, %235 : vector<128x32xf32>
    %cst_36 = arith.constant 0.000000e+00 : f32
    %237 = vector.broadcast %cst_36 : f32 to vector<128x32xf32>
    %238 = arith.maximumf %236, %237 : vector<128x32xf32>
    %c0_37 = arith.constant 0 : index
    %c0_38 = arith.constant 0 : index
    %239 = vector.load %arg10[%c0_37, %c0_38] : memref<32x16xf32, #tpu.memory_space<vmem>>, vector<32x16xf32>
    %240 = arith.truncf %238 : vector<128x32xf32> to vector<128x32xbf16>
    %241 = arith.truncf %239 : vector<32x16xf32> to vector<32x16xbf16>
    %cst_39 = arith.constant dense<0.000000e+00> : vector<128x16xf32>
    %242 = tpu.matmul %240, %241, %cst_39 {dimension_numbers = #tpu.dot_dimension_numbers<[1], [0], [0], [1], [0, 0, 1, 1], [], []>} : vector<128x32xbf16>, vector<32x16xbf16>, vector<128x16xf32> -> vector<128x16xf32>
    %c0_40 = arith.constant 0 : index
    %c0_41 = arith.constant 0 : index
    %243 = vector.load %arg11[%c0_40, %c0_41] : memref<1x16xf32, #tpu.memory_space<vmem>>, vector<1x16xf32>
    %244 = vector.broadcast %243 : vector<1x16xf32> to vector<128x16xf32>
    %245 = arith.addf %242, %244 : vector<128x16xf32>
    %246 = vector.shape_cast %245 : vector<128x16xf32> to vector<16x8x16xf32>
    %247 = arith.addf %228, %246 : vector<16x8x16xf32>
    %248 = vector.shape_cast %247 : vector<16x8x16xf32> to vector<16x128xf32>
    %c0_42 = arith.constant 0 : index
    %c0_43 = arith.constant 0 : index
    %249 = vector.load %arg12[%c0_42, %c0_43] : memref<16x128xf32, #tpu.memory_space<vmem>>, vector<16x128xf32>
    tpu.vector_store %arg12[%c0_42, %c0_43], %248 {strides = array<i32>} : memref<16x128xf32, #tpu.memory_space<vmem>>, vector<16x128xf32>,
    return
  }
}

</mosaic_0001>

<bundles_post_ra>
// kernel: resblock_forward.1
= control target key start
LH: loop header
LB: loop body
LE: loop exit
PB: predicated region body
PF: predicated region fallthrough
CT: control target
= control target key end

     0   :  { %v5803_v0 = vmov 2   ;;  %v9260_v1 = vmov 0   ;;  %v5805_v3 = vmov 3   ;;  %v5806_v4 = vmov 1   ;;  %s5811_s25 = smov 80   ;;  %s5813_s26 = smov 48   ;;  %s9244_s3 = inlined_call_operand.vmem [shape: f32[8,8], index: 3, kind: input, shape index: {}]   ;;  %s9245_s0 = inlined_call_operand.vmem [shape: f32[16,128], index: 0, kind: input, shape index: {}]   ;;  %s9246_s2 = inlined_call_operand.vmem [shape: s32[16,8], index: 2, kind: input, shape index: {}]   ;;  %s9247_s1 = inlined_call_operand.vmem [shape: s32[16,8], index: 1, kind: input, shape index: {}]   ;;  %s9248_s4 = inlined_call_operand.vmem [shape: f32[8,32], index: 4, kind: input, shape index: {}]   ;;  %s9249_s6 = inlined_call_operand.vmem [shape: f32[32,8], index: 6, kind: input, shape index: {}]   ;;  %s9250_s5 = inlined_call_operand.vmem [shape: f32[1,32], index: 5, kind: input, shape index: {}]   ;;  %s9251_s7 = inlined_call_operand.vmem [shape: f32[1,8], index: 7, kind: input, shape index: {}]   ;;  %s9252_s8 = inlined_call_operand.vmem [shape: f32[16,32], index: 8, kind: input, shape index: {}]   ;;  %s9253_s10 = inlined_call_operand.vmem [shape: f32[32,16], index: 10, kind: input, shape index: {}]   ;;  %s9254_s9 = inlined_call_operand.vmem [shape: f32[1,32], index: 9, kind: input, shape index: {}]   ;;  %s9255_s11 = inlined_call_operand.vmem [shape: f32[1,16], index: 11, kind: input, shape index: {}]   ;;  %s9256_s12 = inlined_call_operand.vmem [shape: f32[16,128], index: 12, kind: output, shape index: {}]  }
   0x1   :  { %5693 = vset.pattern.permute.xlu1 %v5803_v0  ;;  %5691 = vset.pattern.permute.xlu0 %v9260_v1  ;;  %v364_v2 = vld [vmem:[%s9244_s3] sm:$0xff]  ;;  %v5807_v5 = vmov 4   ;;  %v5808_v6 = vmov 5   ;;  %v5809_v8 = vmov 6   ;;  %s5810_s3 = smov 112   ;;  %v9257_v9 = vmov 7  }
   0x2   :  { %873 = vperm.xlu1 %5693, %v364_v2   ;;  %577 = vperm.xlu0 %5691, %v364_v2   ;;  %v42_v7 = vld [vmem:[%s9245_s0] sm:$0xff]  ;;  %s5814_s27 = smov 96   ;;  %s5815_s28 = smov 16   ;;  %v43_v10 = vld [vmem:[%s9245_s0 + $0x8] sm:$0xff]  ;;  %v93_v11 = vlaneseq  ;;  %v5818_v12 = vmov 1966171168  }
   0x3   :  { %s5816_s29 = smov 64   ;;  %s5817_s14 = smov 32   ;;  %v367_v13 = vunpack.c.l.s4 %v5818_v12  ;;  %v5920_v17 = vld [vmem:[%s9246_s2] sm:$0xff] }
   0x4   :  { %v5911_v14 = vshrl.u32 %v93_v11, 7  ;;  %9301 = vst [vmem:[#allocation4_spill] sm:$0xff] %v5920_v17  ;;  %v360_v18 = vld [vmem:[%s9247_s1] sm:$0xff]  ;;  %v1648_v26 = vcombine.high %v5920_v17, %v5920_v17 }
   0x5   :  { %v368_v15 = vunpack.c.0.s8 %v367_v13  ;;  %v365_v22 = vcombine.high %v360_v18, %v360_v18 }
   0x6   :  { %5694 = vset.pattern.permute.xlu1 %v5805_v3  ;;  %5692 = vset.pattern.permute.xlu0 %v5806_v4  ;;  %9299 = vst [vmem:[#allocation2_spill] sm:$0xff] %v5911_v14  ;;  %v5937_v27 = vsub.s32 0, %v5911_v14  ;;  %v6017_v60 = vsub.s32 1, %v5911_v14  ;;  %v6278_v48 = vsub.s32 2, %v5911_v14 }
   0x7   :  { %1021 = vperm.xlu1 %5694, %v364_v2   ;;  %725 = vperm.xlu0 %5692, %v364_v2   ;;  %v5915_v16 = vsub.s32 %v368_v15, %v5911_v14 }
   0x8   :  { %9306 = vst [vmem:[#allocation5_spill] sm:$0xff] %v6017_v60  ;;  %9330 = vst [vmem:[#allocation13_spill] sm:$0xff] %v6278_v48  ;;  %v6313_v48 = vsub.s32 3, %v5911_v14  ;;  %v9333_v60 = vmov 0  }
   0x9   :  { %9300 = vst [vmem:[#allocation3_spill] sm:$0xff] %v5915_v16  ;;  %v1655_v19 = vrot.slane %v5920_v17, %v5915_v16  ;;  %v372_v20 = vrot.slane %v360_v18, %v5915_v16  ;;  %v5932_v25 = vrot.slane %v365_v22, %v5915_v16  ;;  %v5955_v36 = vrot.slane %v1648_v26, %v5915_v16 }
   0xa   :  { %9332 = vst [vmem:[#allocation15_spill] sm:$0xff] %v6313_v48 }
   0xb   :  { %5695 = vset.pattern.permute.xlu1 %v5807_v5  ;;  %5696 = vset.pattern.permute.xlu0 %v5808_v6  ;;  %v1671_v21 = vrot.slane %v1655_v19, %v5915_v16  ;;  %v388_v23 = vrot.slane %v372_v20, %v5915_v16  ;;  %v380_v28 = vcombine.high %v372_v20, %v372_v20  ;;  %v9258_v6 = vmov 0.0  }
   0xc   :  { %1169 = vperm.xlu1 %5695, %v364_v2   ;;  %1317 = vperm.xlu0 %5696, %v364_v2   ;;  %v1663_v29 = vcombine.high %v1655_v19, %v1655_v19  ;;  %v5947_v32 = vrot.slane %v5932_v25, %v5915_v16  ;;  %v381_v37 = vcombine.high %v5932_v25, %v5932_v25 }
   0xd   :  { %vm1826_vm0 = vcmp.ne.s32.totalorder %v1671_v21, 0  ;;  %vm463_vm1 = vcmp.eq.s32.totalorder %v388_v23, 0  ;;  %vm612_vm2 = vcmp.eq.s32.totalorder %v388_v23, 1  ;;  %vm760_vm3 = vcmp.eq.s32.totalorder %v388_v23, 2 }
   0xe   :  { %v1842_v24 = vsel %vm1826_vm0, 1, %v9260_v1  ;;  %v5940_v30 = vsel %vm463_vm1, 1, %v9260_v1  ;;  %v5943_v31 = vsel %vm612_vm2, 1, %v9260_v1  ;;  %vm908_vm4 = vcmp.eq.s32.totalorder %v388_v23, 3 }
   0xf   :  { %vm1056_vm5 = vcmp.eq.s32.totalorder %v388_v23, 4  ;;  %vm1204_vm6 = vcmp.eq.s32.totalorder %v388_v23, 5  ;;  %v1749_v33 = vrot.slane %v1671_v21, %v5937_v27  ;;  %v1861_v34 = vrot.slane %v1842_v24, %v5937_v27 }
  0x10   :  { %5697 = vset.pattern.permute.xlu1 %v5809_v8  ;;  %46 = vrot.lane.b32.xlu0 %v42_v7, %s5810_s3  ;;  %v5952_v35 = vsel %vm760_vm3, 1, %v9260_v1  ;;  %vm1352_vm7 = vcmp.eq.s32.totalorder %v388_v23, 6  ;;  %v5962_v39 = vsel %vm908_vm4, 1, %v9260_v1  ;;  %vm1500_vm8 = vcmp.eq.s32.totalorder %v388_v23, 7 }
  0x11   :  { %1465 = vperm.xlu1 %5697, %v364_v2   ;;  %v1685_v40 = vrot.slane %v1663_v29, %v5915_v16  ;;  %v5968_v42 = vsel %vm1056_vm5, 1, %v9260_v1  ;;  %v5971_v43 = vsel %vm1204_vm6, 1, %v9260_v1  ;;  %v402_v44 = vrot.slane %v380_v28, %v5915_v16 }
  0x12   :  { %v5975_v45 = vsel %vm1352_vm7, 1, %v9260_v1  ;;  %vm5978_vm9 = vcmp.eq.s32.totalorder %v1749_v33, %v5920_v17  ;;  %vm5982_vm10 = vcmp.eq.s32.totalorder %v1861_v34, 1  ;;  %v5989_v49 = vsel %vm1500_vm8, 1, %v9260_v1 }
  0x13   :  { %vm1827_vm11 = vcmp.ne.s32.totalorder %v1685_v40, 0  ;;  %vm464_vm12 = vcmp.eq.s32.totalorder %v402_v44, 0  ;;  %vm613_vm13 = vcmp.eq.s32.totalorder %v402_v44, 1  ;;  %vm761_vm14 = vcmp.eq.s32.totalorder %v402_v44, 2  ;;  %vm1938_vm15 = vmand %vm5978_vm9, %vm5982_vm10 }
  0x14   :  { %58 = vrot.lane.b32.xlu0 %v42_v7, %s5811_s25  ;;  %v1693_v52 = vcombine.high %v1671_v21, %v1671_v21  ;;  %vm9275_vm0 = vcmp.ne.s32.totalorder %v5920_v17, 0  ;;  %v1843_v55 = vsel %vm1827_vm11, 1, %v9260_v1  ;;  %v6008_v57 = vsel %vm464_vm12, 1, %v9260_v1 }
  0x15   :  { %5698 = vset.pattern.permute.xlu1 %v9257_v9  ;;  %v6011_v58 = vsel %vm613_vm13, 1, %v9260_v1  ;;  %v6014_v59 = vsel %vm761_vm14, 1, %v9260_v1  ;;  %vm909_vm1 = vcmp.eq.s32.totalorder %v402_v44, 3  ;;  %vm1057_vm2 = vcmp.eq.s32.totalorder %v402_v44, 4  ;;  %vm1960_vm3 = vmand %vm1938_vm15, %vm9275_vm0 }
  0x16   :  { %1613 = vperm.xlu1 %5698, %v364_v2   ;;  %v1753_v61 = vrot.slane %v1685_v40, %v5937_v27  ;;  %v1865_v62 = vrot.slane %v1843_v55, %v5937_v27  ;;  %v410_v63 = vcombine.high %v388_v23, %v388_v23  ;;  %vm1828_vm4 = vcmp.ne.s32.totalorder %v1693_v52, 0 }
  0x17   :  { %vm1205_vm5 = vcmp.eq.s32.totalorder %v402_v44, 5  ;;  %vm1353_vm6 = vcmp.eq.s32.totalorder %v402_v44, 6  ;;  %v6030_v4 = vsel %vm909_vm1, 1, %v9260_v1  ;;  %v6033_v5 = vsel %vm1057_vm2, 1, %v9260_v1 }
  0x18   :  { %70 = vrot.lane.b32.xlu0 %v42_v7, %s5813_s26  ;;  %vm1501_vm7 = vcmp.eq.s32.totalorder %v402_v44, 7  ;;  %vm465_vm8 = vcmp.eq.s32.totalorder %v410_v63, 0  ;;  %vm614_vm9 = vcmp.eq.s32.totalorder %v410_v63, 1  ;;  %v1844_v8 = vsel %vm1828_vm4, 1, %v9260_v1 }
  0x19   :  { %v6043_v11 = vsel %vm1353_vm6, 1, %v9260_v1  ;;  %vm6046_vm10 = vcmp.eq.s32.totalorder %v1753_v61, %v5920_v17  ;;  %vm6050_vm11 = vcmp.eq.s32.totalorder %v1865_v62, 1  ;;  %v6059_v19 = vsel %vm1501_vm7, 1, %v9260_v1 }
  0x1a   :  { %52 = vrot.lane.b32.xlu1 %v42_v7, %s5814_s27  ;;  %vm762_vm12 = vcmp.eq.s32.totalorder %v410_v63, 2  ;;  %v6062_v20 = vsel %vm465_vm8, 1, %v9260_v1  ;;  %v6065_v21 = vsel %vm614_vm9, 1, %v9260_v1  ;;  %v1757_v22 = vrot.slane %v1693_v52, %v5937_v27  ;;  %vm1939_vm13 = vmand %vm6046_vm10, %vm6050_vm11 }
  0x1b   :  { %v1869_v23 = vrot.slane %v1844_v8, %v5937_v27  ;;  %vm910_vm14 = vcmp.eq.s32.totalorder %v410_v63, 3  ;;  %v1695_v28 = vcombine.high %v1685_v40, %v1685_v40  ;;  %v6078_v29 = vsel %vm762_vm12, 1, %v9260_v1 }
  0x1c   :  { %82 = vrot.lane.b32.xlu0 %v42_v7, %s5815_s28  ;;  %vm1058_vm15 = vcmp.eq.s32.totalorder %v410_v63, 4  ;;  %vm1206_vm1 = vcmp.eq.s32.totalorder %v410_v63, 5  ;;  %v412_v33 = vcombine.high %v402_v44, %v402_v44  ;;  %vm1354_vm2 = vcmp.eq.s32.totalorder %v410_v63, 6 }
  0x1d   :  { %v6089_v40 = vsel %vm910_vm14, 1, %v9260_v1  ;;  %vm1502_vm4 = vcmp.eq.s32.totalorder %v410_v63, 7  ;;  %vm6096_vm6 = vcmp.eq.s32.totalorder %v1869_v23, 1  ;;  %v6103_v61 = vsel %vm1058_vm15, 1, %v9260_v1 }
  0x1e   :  { %64 = vrot.lane.b32.xlu1 %v42_v7, %s5816_s29  ;;  %v6106_v62 = vsel %vm1206_vm1, 1, %v9260_v1  ;;  %vm1829_vm7 = vcmp.ne.s32.totalorder %v1695_v28, 0  ;;  %v6109_v63 = vsel %vm1354_vm2, 1, %v9260_v1  ;;  %vm466_vm8 = vcmp.eq.s32.totalorder %v412_v33, 0 }
  0x1f   :  { %vm615_vm9 = vcmp.eq.s32.totalorder %v412_v33, 1  ;;  %vm763_vm10 = vcmp.eq.s32.totalorder %v412_v33, 2  ;;  %v6117_v13 = vsel %vm1502_vm4, 1, %v9260_v1  ;;  %vm911_vm12 = vcmp.eq.s32.totalorder %v412_v33, 3 }
  0x20   :  { %54 = vrot.lane.b32.xlu0 %v43_v10, %s5814_s27  ;;  %v1845_v9 = vsel %vm1829_vm7, 1, %v9260_v1  ;;  %v6131_v56 = vsel %vm466_vm8, 1, %v9260_v1  ;;  %v6134_v52 = vsel %vm615_vm9, 1, %v9260_v1  ;;  %v6137_v44 = vsel %vm763_vm10, 1, %v9260_v1 }
  0x21   :  { %v6144_v54 = vsel %vm911_vm12, 1, %v9260_v1  ;;  %vm1207_vm15 = vcmp.eq.s32.totalorder %v412_v33, 5  ;;  %vm467_vm1 = vcmp.eq.s32.totalorder %v5947_v32, 0  ;;  %vm1355_vm2 = vcmp.eq.s32.totalorder %v412_v33, 6 }
  0x22   :  { %76 = vrot.lane.b32.xlu1 %v42_v7, %s5817_s14  ;;  %v6036_v7 = vsel %vm1960_vm3, 1.0, %v9258_v6  ;;  %vm1961_vm3 = vmand %vm1939_vm13, %vm9275_vm0  ;;  %vm1059_vm13 = vcmp.eq.s32.totalorder %v412_v33, 4  ;;  %v1761_v23 = vrot.slane %v1695_v28, %v5937_v27  ;;  %v1873_v24 = vrot.slane %v1845_v9, %v5937_v27 }
  0x23   :  { %9307 = vst [vmem:[#allocation6_spill] sm:$0xff] %v6036_v7  ;;  %v6112_v8 = vsel %vm1961_vm3, 1.0, %v9258_v6  ;;  %v6148_v34 = vsel %vm1059_vm13, 1, %v9260_v1  ;;  %vm1503_vm3 = vcmp.eq.s32.totalorder %v412_v33, 7  ;;  %v6164_v28 = vsel %vm1207_vm15, 1, %v9260_v1 }
  0x24   :  { %66 = vrot.lane.b32.xlu0 %v43_v10, %s5816_s29  ;;  %9316 = vst [vmem:[#allocation7_spill] sm:$0xff] %v6112_v8  ;;  %v1678_v9 = vrot.slane %v5955_v36, %v5915_v16  ;;  %v6171_v15 = vsel %vm1355_vm2, 1, %v9260_v1  ;;  %vm616_vm4 = vcmp.eq.s32.totalorder %v5947_v32, 1  ;;  %v6176_v33 = vsel %vm1503_vm3, 1, %v9260_v1 }
  0x25   :  { %9318 = vst [vmem:[#allocation9_spill] sm:$0xff] %v6176_v33  ;;  %vm6183_vm7 = vcmp.eq.s32.totalorder %v1873_v24, 1  ;;  %v6192_v18 = vsel %vm467_vm1, 1, %v9260_v1  ;;  %vm912_vm9 = vcmp.eq.s32.totalorder %v5947_v32, 3  ;;  %vm1060_vm10 = vcmp.eq.s32.totalorder %v5947_v32, 4 }
  0x26   :  { %48 = vrot.lane.b32.xlu1 %v43_v10, %s5810_s3  ;;  %vm1830_vm8 = vcmp.ne.s32.totalorder %v1678_v9, 0  ;;  %v1664_v12 = vcombine.high %v5955_v36, %v5955_v36  ;;  %vm1356_vm13 = vcmp.eq.s32.totalorder %v5947_v32, 6  ;;  %v6218_v36 = vsel %vm912_vm9, 1, %v9260_v1 }
  0x27   :  { %v1846_v47 = vsel %vm1830_vm8, 1, %v9260_v1  ;;  %v6235_v55 = vrot.slane %v381_v37, %v5915_v16  ;;  %v6240_v46 = vsel %vm1356_vm13, 1, %v9260_v1  ;;  %v1765_v50 = vrot.slane %v1678_v9, %v5937_v27 }
  0x28   :  { %78 = vrot.lane.b32.xlu0 %v43_v10, %s5817_s14  ;;  %9323 = vst [vmem:[#allocation10_spill] sm:$0xff] %v6240_v46  ;;  %v1877_v2 = vrot.slane %v1846_v47, %v5937_v27  ;;  %v6245_v51 = vrot.slane %v1664_v12, %v5915_v16  ;;  %v1694_v47 = vcombine.high %v1678_v9, %v1678_v9 }
  0x29   :  { %vm468_vm1 = vcmp.eq.s32.totalorder %v6235_v55, 0  ;;  %vm617_vm2 = vcmp.eq.s32.totalorder %v6235_v55, 1  ;;  %vm765_vm3 = vcmp.eq.s32.totalorder %v6235_v55, 2  ;;  %vm1061_vm8 = vcmp.eq.s32.totalorder %v6235_v55, 4 }
  0x2a   :  { %60 = vrot.lane.b32.xlu1 %v43_v10, %s5811_s25  ;;  %v6281_v41 = vsel %vm468_vm1, 1, %v9260_v1  ;;  %v6284_v25 = vsel %vm617_vm2, 1, %v9260_v1  ;;  %v6287_v3 = vsel %vm765_vm3, 1, %v9260_v1  ;;  %vm1209_vm9 = vcmp.eq.s32.totalorder %v6235_v55, 5 }
  0x2b   :  { %vm1505_vm13 = vcmp.eq.s32.totalorder %v6235_v55, 7  ;;  %v1773_v48 = vrot.slane %v1694_v47, %v5937_v27 }
  0x2e   :  { %72 = vrot.lane.b32.xlu1 %v43_v10, %s5813_s26 }
  0x32   :  { %84 = vrot.lane.b32.xlu1 %v43_v10, %s5815_s28  ;;  %v6040_v10 = vsel %vm1205_vm5, 1, %v9260_v1  ;;  %vm6092_vm5 = vcmp.eq.s32.totalorder %v1757_v22, %v5920_v17  ;;  %v6221_v22 = vsel %vm1060_vm10, 1, %v9260_v1  ;;  %vm1832_vm10 = vcmp.ne.s32.totalorder %v1694_v47, 0 }
  0x33   :  { %vm1940_vm11 = vmand %vm6092_vm5, %vm6096_vm6  ;;  %vm764_vm5 = vcmp.eq.s32.totalorder %v5947_v32, 2  ;;  %vm6179_vm6 = vcmp.eq.s32.totalorder %v1761_v23, %v5920_v17  ;;  %v6197_v23 = vsel %vm616_vm4, 1, %v9260_v1  ;;  %vm1831_vm4 = vcmp.ne.s32.totalorder %v6245_v51, 0 }
  0x34   :  { %vm1962_vm14 = vmand %vm1940_vm11, %vm9275_vm0  ;;  %v6200_v24 = vsel %vm764_vm5, 1, %v9260_v1  ;;  %vm1208_vm11 = vcmp.eq.s32.totalorder %v5947_v32, 5  ;;  %vm913_vm5 = vcmp.eq.s32.totalorder %v6235_v55, 3  ;;  %v1848_v8 = vsel %vm1832_vm10, 1, %v9333_v60 }
  0x35   :  { %v6159_v53 = vsel %vm1962_vm14, 1.0, %v9258_v6  ;;  %vm1941_vm12 = vmand %vm6179_vm6, %vm6183_vm7  ;;  %vm1504_vm14 = vcmp.eq.s32.totalorder %v5947_v32, 7  ;;  %v6229_v26 = vsel %vm1208_vm11, 1, %v9260_v1  ;;  %vm6269_vm6 = vcmp.eq.s32.totalorder %v1765_v50, %v5920_v17 }
  0x36   :  { %9317 = vst [vmem:[#allocation8_spill] sm:$0xff] %v6159_v53  ;;  %vm1963_vm15 = vmand %vm1941_vm12, %vm9275_vm0  ;;  %v6252_v37 = vsel %vm1504_vm14, 1, %v9260_v1  ;;  %vm6273_vm7 = vcmp.eq.s32.totalorder %v1877_v2, 1  ;;  %v1847_v50 = vsel %vm1831_vm4, 1, %v9260_v1  ;;  %v6291_v38 = vsel %vm913_vm5, 1, %v9260_v1 }
  0x37   :  { %9324 = vst [vmem:[#allocation11_spill] sm:$0xff] %v6252_v37  ;;  %v6259_v12 = vsel %vm1963_vm15, 1.0, %v9258_v6  ;;  %9331 = vst [vmem:[#allocation14_spill] sm:$0xff] %v6291_v38  ;;  %vm1357_vm12 = vcmp.eq.s32.totalorder %v6235_v55, 6  ;;  %v1769_v2 = vrot.slane %v6245_v51, %v5937_v27  ;;  %v6305_v6 = vcombine.high %v5947_v32, %v5947_v32 }
  0x38   :  { %9325 = vst [vmem:[#allocation12_spill] sm:$0xff] %v6259_v12  ;;  %vm1942_vm11 = vmand %vm6269_vm6, %vm6273_vm7  ;;  %v1881_v0 = vrot.slane %v1847_v50, %v5937_v27  ;;  %v6320_v32 = vsel %vm1061_vm8, 1, %v9333_v60  ;;  %v6328_v50 = vsel %vm1209_vm9, 1, %v9333_v60  ;;  %v6331_v1 = vsel %vm1357_vm12, 1, %v9333_v60 }
  0x39   :  { %9334 = vst [vmem:[#allocation16_spill] sm:$0xff] %v6320_v32  ;;  %vm1964_vm14 = vmand %vm1942_vm11, %vm9275_vm0  ;;  %v6334_v12 = vsel %vm1505_vm13, 1, %v9333_v60  ;;  %vm469_vm15 = vcmp.eq.s32.totalorder %v6305_v6, 0  ;;  %vm6338_vm1 = vcmp.eq.s32.totalorder %v1769_v2, %v5920_v17  ;;  %vm618_vm2 = vcmp.eq.s32.totalorder %v6305_v6, 1 }
  0x3a   :  { %9335 = vst [vmem:[#allocation17_spill] sm:$0xff] %v6328_v50  ;;  %9336 = vst [vmem:[#allocation18_spill] sm:$0xff] %v6331_v1  ;;  %vm766_vm3 = vcmp.eq.s32.totalorder %v6305_v6, 2  ;;  %vm914_vm4 = vcmp.eq.s32.totalorder %v6305_v6, 3  ;;  %vm6345_vm5 = vcmp.eq.s32.totalorder %v1881_v0, 1  ;;  %vm1062_vm6 = vcmp.eq.s32.totalorder %v6305_v6, 4 }
  0x3b   :  { %9337 = vst [vmem:[#allocation19_spill] sm:$0xff] %v6334_v12  ;;  %v1885_v7 = vrot.slane %v1848_v8, %v5937_v27  ;;  %v9342_v2 = vmov 0.0   ;;  %v6360_v0 = vsel %vm469_vm15, 1, %v9333_v60  ;;  %v6363_v33 = vsel %vm618_vm2, 1, %v9333_v60  ;;  %vm1943_vm8 = vmand %vm6338_vm1, %vm6345_vm5 }
  0x3c   :  { %v6353_v37 = vsel %vm1964_vm14, 1.0, %v9342_v2  ;;  %9344 = vst [vmem:[#allocation21_spill] sm:$0xff] %v6360_v0  ;;  %v6366_v16 = vsel %vm766_vm3, 1, %v9333_v60  ;;  %v6369_v8 = vsel %vm914_vm4, 1, %v9333_v60  ;;  %vm1210_vm7 = vcmp.eq.s32.totalorder %v6305_v6, 5 }
  0x3d   :  { %9343 = vst [vmem:[#allocation20_spill] sm:$0xff] %v6353_v37  ;;  %9345 = vst [vmem:[#allocation22_spill] sm:$0xff] %v6366_v16  ;;  %v6381_v46 = vsel %vm1062_vm6, 1, %v9333_v60  ;;  %v413_v37 = vcombine.high %v6235_v55, %v6235_v55  ;;  %vm6389_vm10 = vcmp.eq.s32.totalorder %v1773_v48, %v5920_v17  ;;  %vm6393_vm11 = vcmp.eq.s32.totalorder %v1885_v7, 1 }
  0x3e   :  { %9346 = vst [vmem:[#allocation23_spill] sm:$0xff] %v6369_v8  ;;  %9347 = vst [vmem:[#allocation24_spill] sm:$0xff] %v6381_v46  ;;  %v9352_v12 = vrot.slane %v5940_v30, %v5937_v27  ;;  %v9355_v55 = vrot.slane %v5952_v35, %v5937_v27  ;;  %v9358_v48 = vrot.slane %v6008_v57, %v5937_v27  ;;  %v9372_v8 = vmov 0 }
  0x3f   :  { %v9361_v30 = vrot.slane %v6014_v59, %v5937_v27  ;;  %v9365_v59 = vrot.slane %v5943_v31, %v5937_v27  ;;  %v9368_v35 = vrot.slane %v6011_v58, %v5937_v27  ;;  %v9371_v57 = vrot.slane %v6062_v20, %v5937_v27 }
  0x40   :  { %vm6400_vm12 = vcmp.eq.s32.totalorder %v9352_v12, 1  ;;  %vm6407_vm13 = vcmp.eq.s32.totalorder %v9355_v55, 1  ;;  %vm6414_vm14 = vcmp.eq.s32.totalorder %v9358_v48, 1  ;;  %v6434_v48 = vsel %vm1210_vm7, 1, %v9333_v60  ;;  %vm6471_vm7 = vmand %vm1943_vm8, %vm9275_vm0 }
  0x41   :  { %vm6421_vm15 = vcmp.eq.s32.totalorder %v9361_v30, 1  ;;  %9364 = vst [vmem:[#allocation25_spill] sm:$0xff] %v6434_v48  ;;  %vm6439_vm2 = vcmp.eq.s32.totalorder %v9365_v59, 1  ;;  %vm6446_vm3 = vcmp.eq.s32.totalorder %v9368_v35, 1  ;;  %v9369_v55 = vmov 0 }
  0x42   :  { %v9370_v55 = vsel %vm6446_vm3, 4294967295, %v9369_v55  ;;  %vm6453_vm4 = vcmp.eq.s32.totalorder %v9371_v57, 1  ;;  %v9374_v31 = vrot.slane %v6078_v29, %v5937_v27  ;;  %v9375_v59 = vmov 0 }
  0x43   :  { %v9373_v8 = vsel %vm6453_vm4, 4294967295, %v9372_v8  ;;  %v9379_v29 = vrot.slane %v6065_v21, %v5937_v27  ;;  %v9382_v53 = vrot.slane %v6131_v56, %v5937_v27  ;;  %vm9385_vm5 = vcmp.eq.s32.totalorder %v6305_v6, 6 }
  0x44   :  { %vm6460_vm6 = vcmp.eq.s32.totalorder %v9374_v31, 1  ;;  %v6495_v57 = vsel %vm9385_vm5, 1, %v9333_v60  ;;  %v9387_v56 = vrot.slane %v6134_v52, %v5937_v27  ;;  %v9388_v21 = vmov 0  ;;  %v9546_v9 = vld [vmem:[#allocation22_spill] sm:$0xff] }
  0x45   :  { %v9376_v59 = vsel %vm6460_vm6, 4294967295, %v9375_v59  ;;  %vm6481_vm6 = vcmp.eq.s32.totalorder %v9379_v29, 1  ;;  %vm6488_vm1 = vcmp.eq.s32.totalorder %v9382_v53, 1  ;;  %9386 = vst [vmem:[#allocation26_spill] sm:$0xff] %v6495_v57  ;;  %v9390_v31 = vrot.slane %v6137_v44, %v5937_v27 }
  0x46   :  { %vm6504_vm9 = vcmp.eq.s32.totalorder %v9387_v56, 1  ;;  %v9393_v53 = vrot.slane %v6197_v23, %v5937_v27  ;;  %v9394_v20 = vmov 0  ;;  %v6524_v52 = vcombine.high %v6245_v51, %v6245_v51 }
  0x47   :  { %v9389_v21 = vsel %vm6504_vm9, 4294967295, %v9388_v21  ;;  %vm6511_vm5 = vcmp.eq.s32.totalorder %v9390_v31, 1  ;;  %v9396_v44 = vrot.slane %v6192_v18, %v5937_v27  ;;  %v9397_v56 = vmov 0 }
  0x48   :  { %vm6518_vm0 = vcmp.eq.s32.totalorder %v9393_v53, 1  ;;  %vm9401_vm8 = vcmp.eq.s32.totalorder %v413_v37, 0  ;;  %vm9402_vm3 = vcmp.eq.s32.totalorder %v413_v37, 1  ;;  %v9403_v18 = vrot.slane %v5962_v39, %v5937_v27 }
  0x49   :  { %v9395_v20 = vsel %vm6518_vm0, 4294967295, %v9394_v20  ;;  %vm6529_vm9 = vcmp.eq.s32.totalorder %v9396_v44, 1  ;;  %vm9399_vm0 = vcmp.eq.s32.totalorder %v6305_v6, 7  ;;  %v6542_v53 = vsel %vm9401_vm8, 1, %v9333_v60 }
  0x4a   :  { %v9398_v56 = vsel %vm6529_vm9, 4294967295, %v9397_v56  ;;  %v6538_v31 = vsel %vm9399_vm0, 1, %v9333_v60  ;;  %v6546_v51 = vsel %vm9402_vm3, 1, %v9333_v60  ;;  %vm6551_vm4 = vcmp.eq.s32.totalorder %v9403_v18, 1 }
  0x4b   :  { %9400 = vst [vmem:[#allocation27_spill] sm:$0xff] %v6538_v31  ;;  %v9404_v44 = vmov 0  ;;  %v9406_v6 = vrot.slane %v6030_v4, %v5937_v27  ;;  %v9407_v23 = vmov 0  ;;  %v9409_v48 = vrot.slane %v6089_v40, %v5937_v27 }
  0x4c   :  { %v9405_v44 = vsel %vm6551_vm4, 4294967295, %v9404_v44  ;;  %v9410_v46 = vmov 0  ;;  %v6572_v39 = vsel %vm6471_vm7, 1.0, %v9342_v2  ;;  %vm9413_vm3 = vcmp.ne.s32.totalorder %v5920_v17, 0  ;;  %vm9414_vm4 = vmand %vm6389_vm10, %vm6393_vm11 }
  0x4d   :  { %vm6558_vm0 = vcmp.eq.s32.totalorder %v9406_v6, 1  ;;  %vm6565_vm8 = vcmp.eq.s32.totalorder %v9409_v48, 1  ;;  %9412 = vst [vmem:[#allocation28_spill] sm:$0xff] %v6572_v39  ;;  %vm9417_vm9 = vcmp.eq.s32.totalorder %v413_v37, 2  ;;  %vm9419_vm7 = vcmp.eq.s32.totalorder %v413_v37, 4 }
  0x4e   :  { %v9408_v23 = vsel %vm6558_vm0, 4294967295, %v9407_v23  ;;  %v9411_v46 = vsel %vm6565_vm8, 4294967295, %v9410_v46  ;;  %vm6581_vm0 = vmand %vm9414_vm4, %vm9413_vm3  ;;  %v6587_v40 = vsel %vm9417_vm9, 1, %v9333_v60  ;;  %vm9418_vm8 = vcmp.eq.s32.totalorder %v413_v37, 3 }
  0x4f   :  { %v6591_v48 = vsel %vm9418_vm8, 1, %v9333_v60  ;;  %v6595_v58 = vsel %vm9419_vm7, 1, %v9333_v60  ;;  %v9420_v18 = vrot.slane %v5968_v42, %v5937_v27  ;;  %vm9423_vm9 = vcmp.eq.s32.totalorder %v413_v37, 5 }
  0x50   :  { %v6612_v16 = vsel %vm9423_vm9, 1, %v9333_v60  ;;  %vm9425_vm11 = vcmp.eq.s32.totalorder %v413_v37, 6  ;;  %vm9427_vm4 = vcmp.eq.s32.totalorder %v413_v37, 7  ;;  %v9429_v42 = vrot.slane %v5971_v43, %v5937_v27 }
  0x51   :  { %vm6604_vm10 = vcmp.eq.s32.totalorder %v9420_v18, 1  ;;  %9424 = vst [vmem:[#allocation29_spill] sm:$0xff] %v6612_v16  ;;  %v6616_v32 = vsel %vm9425_vm11, 1, %v9333_v60  ;;  %v6620_v0 = vsel %vm9427_vm4, 1, %v9333_v60  ;;  %v9432_v39 = vrot.slane %v6033_v5, %v5937_v27 }
  0x52   :  { %9426 = vst [vmem:[#allocation30_spill] sm:$0xff] %v6616_v32  ;;  %9428 = vst [vmem:[#allocation31_spill] sm:$0xff] %v6620_v0  ;;  %vm6625_vm8 = vcmp.eq.s32.totalorder %v9429_v42, 1  ;;  %v9435_v17 = vrot.slane %v6103_v61, %v5937_v27  ;;  %vm1833_vm9 = vcmp.ne.s32.totalorder %v6524_v52, 0  ;;  %v9445_v5 = vrot.slane %v6106_v62, %v5937_v27 }
  0x53   :  { %vm6632_vm3 = vcmp.eq.s32.totalorder %v9432_v39, 1  ;;  %v9438_v39 = vrot.slane %v6040_v10, %v5937_v27  ;;  %v9442_v10 = vrot.slane %v6144_v54, %v5937_v27  ;;  %v6701_v43 = vsub.s32 4, %v5911_v14 }
  0x54   :  { %vm6639_vm7 = vcmp.eq.s32.totalorder %v9435_v17, 1  ;;  %v6660_v17 = vsel %vm6581_vm0, 1.0, %v9342_v2  ;;  %vm6686_vm0 = vcmp.eq.s32.totalorder %v9445_v5, 1  ;;  %v6704_v42 = vsub.s32 5, %v5911_v14 }
  0x55   :  { %vm6653_vm11 = vcmp.eq.s32.totalorder %v9438_v39, 1  ;;  %9441 = vst [vmem:[#allocation32_spill] sm:$0xff] %v6660_v17  ;;  %vm6671_vm4 = vcmp.eq.s32.totalorder %v9442_v10, 1  ;;  %v9443_v39 = vmov 0  ;;  %v9448_v10 = vrot.slane %v6200_v24, %v5937_v27  ;;  %9451 = vst [vmem:[#allocation33_spill] sm:$0xff] %v6701_v43 }
  0x56   :  { %v9444_v39 = vsel %vm6671_vm4, 4294967295, %v9443_v39  ;;  %v6698_v17 = vsel %vm1833_vm9, 1, %v9333_v60  ;;  %9452 = vst [vmem:[#allocation34_spill] sm:$0xff] %v6704_v42  ;;  %v6707_v62 = vsub.s32 6, %v5911_v14  ;;  %v9454_v42 = vrot.slane %v6148_v34, %v5937_v27 }
  0x57   :  { %vm6693_vm4 = vcmp.eq.s32.totalorder %v9448_v10, 1  ;;  %v9457_v50 = vrot.slane %v5975_v45, %v5937_v27  ;;  %v9458_v7 = vmov 0  ;;  %v9461_v34 = vrot.slane %v6043_v11, %v5937_v27 }
  0x58   :  { %9453 = vst [vmem:[#allocation35_spill] sm:$0xff] %v6707_v62  ;;  %vm6728_vm9 = vcmp.eq.s32.totalorder %v9454_v42, 1  ;;  %v9502_v18 = vrot.slane %v6171_v15, %v5937_v27  ;;  %v9509_v61 = vrot.slane %v6363_v33, %v5937_v27  ;;  %v9527_v32 = vmov 0 }
  0x59   :  { %v9581_v4 = vrot.slane %v6587_v40, %v5937_v27 }
  0x7d   :  { %v6597_v47 = vpop.permute.xlu1 %873  ;;  %v6599_v38 = vpop.permute.xlu0 %577 }
  0x7e   :  { %v580_v24 = vsel %vm6400_vm12, %v6599_v38, 0.0  ;;  %v876_v10 = vsel %vm6407_vm13, %v6597_v47, 0.0  ;;  %v581_v43 = vsel %vm6414_vm14, %v6599_v38, 0.0  ;;  %v877_v62 = vsel %vm6421_vm15, %v6597_v47, 0.0 }
  0x7f   :  { %vm6738_vm12 = vcmp.eq.s32.totalorder %v9457_v50, 1  ;;  %vm9460_vm13 = vnez %v9370_v55  ;;  %vm6748_vm14 = vcmp.eq.s32.totalorder %v9461_v34, 1  ;;  %vm9464_vm15 = vnez %v9373_v8  ;;  %v9535_v55 = vld [vmem:[#allocation16_spill] sm:$0xff] }
  0x80   :  { %v9459_v7 = vsel %vm6738_vm12, 4294967295, %v9458_v7  ;;  %v582_v30 = vsel %vm9464_vm15, %v6599_v38, 0.0  ;;  %v9466_v50 = vrot.slane %v6284_v25, %v5937_v27  ;;  %v583_v8 = vsel %vm6488_vm1, %v6599_v38, 0.0 }
  0x81   :  { %v9472_v25 = vrot.slane %v6281_v41, %v5937_v27  ;;  %vm9478_vm1 = vnez %v9389_v21  ;;  %v879_v41 = vsel %vm6511_vm5, %v6597_v47, 0.0  ;;  %vm9484_vm5 = vnez %v9405_v44 }
  0x82   :  { %v6709_v5 = vpop.permute.xlu1 %1021  ;;  %v6711_v0 = vpop.permute.xlu0 %725  ;;  %vm6761_vm12 = vcmp.eq.s32.totalorder %v9466_v50, 1 }
  0x83   :  { %v728_v1 = vsel %vm6439_vm2, %v6711_v0, 0.0  ;;  %v729_v12 = vsel %vm9460_vm13, %v6711_v0, 0.0  ;;  %vm9465_vm2 = vnez %v9376_v59  ;;  %v730_v16 = vsel %vm6481_vm6, %v6711_v0, 0.0 }
  0x84   :  { %v878_v45 = vsel %vm9465_vm2, %v6597_v47, 0.0  ;;  %v744_v11 = vadd.f32 %v728_v1, %v580_v24  ;;  %v745_v34 = vadd.f32 %v729_v12, %v581_v43  ;;  %v9469_v59 = vrot.slane %v6218_v36, %v5937_v27 }
  0x85   :  { %vm6781_vm15 = vcmp.eq.s32.totalorder %v9472_v25, 1  ;;  %v9473_v43 = vmov 0  ;;  %v746_v35 = vadd.f32 %v730_v16, %v582_v30  ;;  %v9475_v24 = vrot.slane %v6109_v63, %v5937_v27 }
  0x86   :  { %vm6774_vm13 = vcmp.eq.s32.totalorder %v9469_v59, 1  ;;  %v9474_v43 = vsel %vm6781_vm15, 4294967295, %v9473_v43  ;;  %v731_v36 = vsel %vm9478_vm1, %v6711_v0, 0.0  ;;  %v9479_v1 = vrot.slane %v6164_v28, %v5937_v27 }
  0x87   :  { %vm6788_vm6 = vcmp.eq.s32.totalorder %v9475_v24, 1  ;;  %v9480_v16 = vmov 0  ;;  %vm9482_vm15 = vnez %v9395_v20  ;;  %v892_v12 = vadd.f32 %v876_v10, %v744_v11  ;;  %v6811_v29 = vpop.permute.xlu1 %1169  ;;  %v6813_v59 = vpop.permute.xlu0 %1317 }
  0x88   :  { %vm6801_vm2 = vcmp.eq.s32.totalorder %v9479_v1, 1  ;;  %v732_v63 = vsel %vm9482_vm15, %v6711_v0, 0.0  ;;  %v893_v30 = vadd.f32 %v877_v62, %v745_v34  ;;  %v747_v50 = vadd.f32 %v731_v36, %v583_v8 }
  0x89   :  { %v9481_v16 = vsel %vm6801_vm2, 4294967295, %v9480_v16  ;;  %vm9483_vm1 = vnez %v9398_v56  ;;  %v1024_v28 = vsel %vm9484_vm5, %v6709_v5, 0.0  ;;  %v9485_v25 = vrot.slane %v5989_v49, %v5937_v27 }
  0x8a   :  { %v584_v21 = vsel %vm9483_vm1, %v6599_v38, 0.0  ;;  %v9486_v20 = vmov 0  ;;  %vm9488_vm15 = vnez %v9408_v23  ;;  %v9489_v62 = vrot.slane %v6059_v19, %v5937_v27 }
  0x8b   :  { %vm6821_vm2 = vcmp.eq.s32.totalorder %v9485_v25, 1  ;;  %v1025_v56 = vsel %vm9488_vm15, %v6709_v5, 0.0  ;;  %v894_v44 = vadd.f32 %v878_v45, %v746_v35  ;;  %vm9492_vm5 = vnez %v9411_v46 }
  0x8c   :  { %v9487_v20 = vsel %vm6821_vm2, 4294967295, %v9486_v20  ;;  %vm6831_vm1 = vcmp.eq.s32.totalorder %v9489_v62, 1  ;;  %v1026_v49 = vsel %vm9492_vm5, %v6709_v5, 0.0  ;;  %v9493_v11 = vrot.slane %v6221_v22, %v5937_v27  ;;  %v6917_v33 = vpop.permute.xlu1 %1465 }
  0x8d   :  { %v1040_v23 = vadd.f32 %v1024_v28, %v892_v12  ;;  %v1172_v19 = vsel %vm6604_vm10, %v6811_v29, 0.0  ;;  %v1041_v8 = vadd.f32 %v1025_v56, %v893_v30  ;;  %v748_v24 = vadd.f32 %v732_v63, %v584_v21  ;;  %v9516_v56 = vld [vmem:[#allocation3_spill] sm:$0xff] }
  0x8e   :  { %vm6841_vm2 = vcmp.eq.s32.totalorder %v9493_v11, 1  ;;  %v9496_v45 = vrot.slane %v6287_v3, %v5937_v27  ;;  %v1320_v22 = vsel %vm6625_vm8, %v6813_v59, 0.0  ;;  %v1173_v35 = vsel %vm6632_vm3, %v6811_v29, 0.0 }
  0x8f   :  { %v1042_v36 = vadd.f32 %v1026_v49, %v894_v44  ;;  %v1174_v6 = vsel %vm6639_vm7, %v6811_v29, 0.0  ;;  %v9499_v3 = vrot.slane %v6117_v13, %v5937_v27  ;;  %vm6874_vm8 = vcmp.eq.s32.totalorder %v9502_v18, 1  ;;  %v6884_v13 = vld [vmem:[%s9247_s1 + $0x8] sm:$0xff] }
  0x90   :  { %vm6851_vm15 = vcmp.eq.s32.totalorder %v9496_v45, 1  ;;  %v1188_v57 = vadd.f32 %v1172_v19, %v1040_v23  ;;  %v1189_v12 = vadd.f32 %v1173_v35, %v1041_v8  ;;  %v1321_v37 = vsel %vm6653_vm11, %v6813_v59, 0.0  ;;  %v9517_v8 = vld [vmem:[#allocation9_spill] sm:$0xff]  ;;  %v6952_v18 = vld [vmem:[%s9246_s2 + $0x8] sm:$0xff] }
  0x91   :  { %vm6867_vm10 = vcmp.eq.s32.totalorder %v9499_v3, 1  ;;  %v895_v30 = vadd.f32 %v879_v41, %v747_v50  ;;  %vm9505_vm3 = vnez %v9444_v39  ;;  %v9506_v21 = vrot.slane %v6229_v26, %v5937_v27  ;;  %v9512_v50 = vld [vmem:[#allocation4_spill] sm:$0xff] }
  0x92   :  { %v1027_v15 = vsel %vm9505_vm3, %v6709_v5, 0.0  ;;  %vm6899_vm11 = vcmp.eq.s32.totalorder %v9509_v61, 1  ;;  %v9513_v25 = vrot.slane %v6524_v52, %v5937_v27  ;;  %v1889_v26 = vrot.slane %v6698_v17, %v5937_v27 }
  0x93   :  { %vm6892_vm7 = vcmp.eq.s32.totalorder %v9506_v21, 1  ;;  %v6915_v62 = vrot.slane %v6884_v13, %v9516_v56  ;;  %v1190_v44 = vadd.f32 %v1174_v6, %v1042_v36  ;;  %v1322_v49 = vsel %vm6686_vm0, %v6813_v59, 0.0  ;;  %v9521_v36 = vld [vmem:[#allocation14_spill] sm:$0xff] }
  0x94   :  { %vm6907_vm5 = vcmp.eq.s32.totalorder %v9513_v25, %v9512_v50  ;;  %v1043_v11 = vadd.f32 %v1027_v15, %v895_v30  ;;  %v880_v52 = vsel %vm6693_vm4, %v6597_v47, 0.0  ;;  %v1336_v23 = vadd.f32 %v1320_v22, %v1188_v57  ;;  %v9525_v22 = vld [vmem:[#allocation21_spill] sm:$0xff]  ;;  %v9530_v15 = vld [vmem:[#allocation10_spill] sm:$0xff] }
  0x95   :  { %v1337_v19 = vadd.f32 %v1321_v37, %v1189_v12  ;;  %v1175_v17 = vsel %vm6728_vm9, %v6811_v29, 0.0  ;;  %v9518_v45 = vrot.slane %v9517_v8, %v5937_v27  ;;  %v896_v54 = vadd.f32 %v880_v52, %v748_v24 }
  0x96   :  { %v9522_v6 = vrot.slane %v9521_v36, %v5937_v27  ;;  %v9526_v3 = vrot.slane %v9525_v22, %v5937_v27  ;;  %vm9529_vm9 = vnez %v9459_v7  ;;  %v1469_v57 = vsel %vm6748_vm14, %v6917_v33, 0.0 }
  0x97   :  { %vm6931_vm3 = vcmp.eq.s32.totalorder %v9518_v45, 1  ;;  %v1468_v24 = vsel %vm9529_vm9, %v6917_v33, 0.0  ;;  %v733_v12 = vsel %vm6761_vm12, %v6711_v0, 0.0  ;;  %v6965_v37 = vrot.slane %v6952_v18, %v9516_v56 }
  0x98   :  { %vm6938_vm0 = vcmp.eq.s32.totalorder %v9522_v6, 1  ;;  %vm6945_vm4 = vcmp.eq.s32.totalorder %v9526_v3, 1  ;;  %v1028_v30 = vsel %vm6774_vm13, %v6709_v5, 0.0  ;;  %v9531_v7 = vrot.slane %v9530_v15, %v5937_v27  ;;  %v6999_v6 = vpop.permute.xlu1 %1613  ;;  %v9542_v15 = vld [vmem:[#allocation11_spill] sm:$0xff] }
  0x99   :  { %v9528_v32 = vsel %vm6945_vm4, 4294967295, %v9527_v32  ;;  %vm9534_vm14 = vnez %v9474_v43  ;;  %v9536_v61 = vrot.slane %v9535_v55, %v5937_v27  ;;  %vm6987_vm4 = vcmp.eq.s32.totalorder %v1889_v26, 1 }
  0x9a   :  { %vm6973_vm9 = vcmp.eq.s32.totalorder %v9531_v7, 1  ;;  %v585_v42 = vsel %vm9534_vm14, %v6599_v38, 0.0  ;;  %v414_v52 = vcombine.high %v6884_v13, %v6884_v13  ;;  %v1338_v8 = vadd.f32 %v1322_v49, %v1190_v44 }
  0x9b   :  { %vm6983_vm12 = vcmp.eq.s32.totalorder %v9536_v61, 1  ;;  %v1470_v43 = vsel %vm6788_vm6, %v6917_v33, 0.0  ;;  %v1191_v45 = vadd.f32 %v1175_v17, %v1043_v11  ;;  %vm9541_vm13 = vnez %v9481_v16 }
  0x9c   :  { %v1323_v36 = vsel %vm9541_vm13, %v6813_v59, 0.0  ;;  %v1484_v22 = vadd.f32 %v1468_v24, %v1336_v23  ;;  %v1485_v26 = vadd.f32 %v1469_v57, %v1337_v19  ;;  %v1044_v3 = vadd.f32 %v1028_v30, %v896_v54 }
  0x9d   :  { %v9543_v7 = vrot.slane %v9542_v15, %v5937_v27  ;;  %v749_v44 = vadd.f32 %v733_v12, %v585_v42  ;;  %v9547_v49 = vrot.slane %v9546_v9, %v5937_v27  ;;  %vm9550_vm13 = vnez %v9487_v20  ;;  %v9551_v12 = vld [vmem:[#allocation17_spill] sm:$0xff] }
  0x9e   :  { %v1616_v16 = vsel %vm9550_vm13, %v6999_v6, 0.0  ;;  %v1617_v23 = vsel %vm6831_vm1, %v6999_v6, 0.0  ;;  %v1176_v19 = vsel %vm6841_vm2, %v6811_v29, 0.0  ;;  %v429_v17 = vcombine.high %v6915_v62, %v6915_v62 }
  0x9f   :  { %vm7004_vm14 = vcmp.eq.s32.totalorder %v9543_v7, 1  ;;  %vm7011_vm6 = vcmp.eq.s32.totalorder %v9547_v49, 1  ;;  %v1632_v54 = vadd.f32 %v1616_v16, %v1484_v22  ;;  %v1633_v24 = vadd.f32 %v1617_v23, %v1485_v26  ;;  %v9558_v26 = vld [vmem:[#allocation6_spill] sm:$0xff]  ;;  %v9560_v16 = vld [vmem:[#allocation23_spill] sm:$0xff] }
  0xa0   :  { %v881_v57 = vsel %vm6851_vm15, %v6597_v47, 0.0  ;;  %v9552_v20 = vrot.slane %v9551_v12, %v5937_v27  ;;  %v9555_v10 = vrot.slane %v6546_v51, %v5937_v27  ;;  %v1712_v42 = vcombine.high %v6965_v37, %v6965_v37  ;;  %v9559_v51 = vld [vmem:[#allocation7_spill] sm:$0xff]  ;;  %v9567_v23 = vld [vmem:[#allocation18_spill] sm:$0xff] }
  0xa1   :  { %v1486_v55 = vadd.f32 %v1470_v43, %v1338_v8  ;;  %v1618_v46 = vsel %vm6867_vm10, %v6999_v6, 0.0  ;;  %v1339_v61 = vadd.f32 %v1323_v36, %v1191_v45  ;;  %v1471_v22 = vsel %vm6874_vm8, %v6917_v33, 0.0 }
  0xa2   :  { %vm7032_vm13 = vcmp.eq.s32.totalorder %v9552_v20, 1  ;;  %vm7039_vm2 = vcmp.eq.s32.totalorder %v9555_v10, 1  ;;  %v7052_v15 = vmul.f32 %v9558_v26, %v1632_v54  ;;  %v7055_v7 = vmul.f32 %v9559_v51, %v1633_v24  ;;  %v9577_v51 = vld [vmem:[#allocation19_spill] sm:$0xff] }
  0xa3   :  { %v1192_v9 = vadd.f32 %v1176_v19, %v1044_v3  ;;  %v897_v49 = vadd.f32 %v881_v57, %v749_v44  ;;  %v9561_v8 = vrot.slane %v9560_v16, %v5937_v27  ;;  %v9564_v1 = vrot.slane %v6542_v53, %v5937_v27  ;;  %v9587_v16 = vld [vmem:[#allocation8_spill] sm:$0xff] }
  0xa4   :  { %v1324_v45 = vsel %vm6892_vm7, %v6813_v59, 0.0  ;;  %v734_v36 = vsel %vm6899_vm11, %v6711_v0, 0.0  ;;  %v7083_v53 = vrot.slane %v6915_v62, %v9516_v56  ;;  %v7087_v3 = vrot.slane %v6965_v37, %v9516_v56  ;;  %v9571_v62 = vld [vmem:[#allocation24_spill] sm:$0xff] }
  0xa5   :  { %vm7060_vm1 = vcmp.eq.s32.totalorder %v9561_v8, 1  ;;  %vm7067_vm15 = vcmp.eq.s32.totalorder %v9564_v1, 1  ;;  %v2027_v28 = vrot.slane %v7052_v15, %v5937_v27  ;;  %v2171_v41 = vrot.slane %v7055_v7, %v5937_v27  ;;  %v9588_v1 = vld [vmem:[#allocation25_spill] sm:$0xff] }
  0xa6   :  { %v1634_v44 = vadd.f32 %v1618_v46, %v1486_v55  ;;  %v9568_v19 = vrot.slane %v9567_v23, %v5937_v27  ;;  %v9572_v24 = vrot.slane %v9571_v62, %v5937_v27  ;;  %v9573_v37 = vmov 0 }
  0xa7   :  { %v7108_v57 = vrot.slane %v414_v52, %v9516_v56  ;;  %v1487_v12 = vadd.f32 %v1471_v22, %v1339_v61  ;;  %v1619_v20 = vsel %vm6931_vm3, %v6999_v6, 0.0  ;;  %v1029_v10 = vsel %vm6938_vm0, %v6709_v5, 0.0  ;;  %2029 = vbcast.lane.b32.xlu1 %v2027_v28, 256  ;;  %2173 = vbcast.lane.b32.xlu0 %v2171_v41, 256 }
  0xa8   :  { %vm7096_vm8 = vcmp.eq.s32.totalorder %v9568_v19, 1  ;;  %vm7103_vm7 = vcmp.eq.s32.totalorder %v9572_v24, 1  ;;  %vm9576_vm11 = vnez %v9528_v32  ;;  %v1340_v46 = vadd.f32 %v1324_v45, %v1192_v9 }
  0xa9   :  { %v9574_v37 = vsel %vm7103_vm7, 4294967295, %v9573_v37  ;;  %9575 = vst [vmem:[#allocation4_spill] sm:$0xff] %v7108_v57  ;;  %v586_v55 = vsel %vm9576_vm11, %v6599_v38, 0.0  ;;  %v1045_v26 = vadd.f32 %v1029_v10, %v897_v49  ;;  %v9578_v52 = vrot.slane %v9577_v51, %v5937_v27  ;;  %vm9585_vm11 = vmand %vm6907_vm5, %vm6987_vm4 }
  0xaa   :  { %v750_v35 = vadd.f32 %v734_v36, %v586_v55  ;;  %vm7129_vm3 = vcmp.eq.s32.totalorder %v9581_v4, 1  ;;  %v9582_v22 = vmov 0  ;;  %vm9584_vm0 = vcmp.ne.s32.totalorder %v9512_v50, 0  ;;  %v9586_v50 = vld [vmem:[#allocation5_spill] sm:$0xff]  ;;  %v9596_v55 = vld [vmem:[#allocation26_spill] sm:$0xff] }
  0xab   :  { %vm7122_vm10 = vcmp.eq.s32.totalorder %v9578_v52, 1  ;;  %v9583_v22 = vsel %vm7129_vm3, 4294967295, %v9582_v22  ;;  %vm1967_vm7 = vmand %vm9585_vm11, %vm9584_vm0  ;;  %v7141_v32 = vsub.s32 7, %v5911_v14  ;;  %v1472_v9 = vsel %vm6973_vm9, %v6917_v33, 0.0 }
  0xac   :  { %v1177_v40 = vsel %vm6983_vm12, %v6811_v29, 0.0  ;;  %v7150_v49 = vrot.slane %v429_v17, %v9516_v56  ;;  %vm471_vm3 = vcmp.eq.s32.totalorder %v7083_v53, 0  ;;  %v2034_v39 = vrot.slane %v7052_v15, %v9586_v50 }
  0xad   :  { %v2178_v31 = vrot.slane %v7055_v7, %v9586_v50  ;;  %v7158_v8 = vmul.f32 %v9587_v16, %v1634_v44  ;;  %v1635_v21 = vadd.f32 %v1619_v20, %v1487_v12  ;;  %v9589_v45 = vrot.slane %v9588_v1, %v5937_v27  ;;  %v9595_v20 = vld [vmem:[#allocation12_spill] sm:$0xff] }
  0xae   :  { %v1620_v17 = vsel %vm7004_vm14, %v6999_v6, 0.0  ;;  %v882_v36 = vsel %vm7011_vm6, %v6597_v47, 0.0  ;;  %v7174_v28 = vsel %vm1967_vm7, 1.0, %v9342_v2  ;;  %v7177_v41 = vrot.slane %v1712_v42, %v9516_v56  ;;  %2036 = vbcast.lane.b32.xlu1 %v2034_v39, 256 }
  0xaf   :  { %vm7163_vm5 = vcmp.eq.s32.totalorder %v9589_v45, 1  ;;  %2180 = vbcast.lane.b32.xlu0 %v2178_v31, 256  ;;  %v1488_v44 = vadd.f32 %v1472_v9, %v1340_v46  ;;  %v1193_v23 = vadd.f32 %v1177_v40, %v1045_v26  ;;  %v898_v19 = vadd.f32 %v882_v36, %v750_v35  ;;  %v9603_v40 = vld [vmem:[#allocation27_spill] sm:$0xff]  ;;  %v9623_v46 = vld [vmem:[#allocation28_spill] sm:$0xff] }
  0xb0   :  { %v9592_v62 = vrot.slane %v6591_v48, %v5937_v27  ;;  %vm472_vm9 = vcmp.eq.s32.totalorder %v7150_v49, 0  ;;  %v1325_v11 = vsel %vm7032_vm13, %v6813_v59, 0.0  ;;  %v735_v42 = vsel %vm7039_vm2, %v6711_v0, 0.0 }
  0xb1   :  { %vm621_vm12 = vcmp.eq.s32.totalorder %v7150_v49, 1  ;;  %v7197_v48 = vsel %vm471_vm3, 1, %v9333_v60  ;;  %v2315_v24 = vrot.slane %v7158_v8, %v5937_v27  ;;  %v2322_v12 = vrot.slane %v7158_v8, %v9586_v50 }
  0xb2   :  { %vm7182_vm4 = vcmp.eq.s32.totalorder %v9592_v62, 1  ;;  %v7204_v30 = vmul.f32 %v9595_v20, %v1635_v21  ;;  %v1636_v10 = vadd.f32 %v1620_v17, %v1488_v44  ;;  %v9597_v34 = vrot.slane %v9596_v55, %v5937_v27  ;;  %v9608_v17 = vld [vmem:[#allocation20_spill] sm:$0xff]  ;;  %v9609_v44 = vld [vmem:[#allocation29_spill] sm:$0xff] }
  0xb3   :  { %v9600_v26 = vrot.slane %v6595_v58, %v5937_v27  ;;  %v1030_v52 = vsel %vm7060_vm1, %v6709_v5, 0.0  ;;  %v587_v35 = vsel %vm7067_vm15, %v6599_v38, 0.0  ;;  %v7227_v4 = vsel %vm472_vm9, 1, %v9333_v60  ;;  %2317 = vbcast.lane.b32.xlu1 %v2315_v24, 256  ;;  %2324 = vbcast.lane.b32.xlu0 %v2322_v12, 256 }
  0xb4   :  { %vm7209_vm14 = vcmp.eq.s32.totalorder %v9597_v34, 1  ;;  %vm769_vm13 = vcmp.eq.s32.totalorder %v7150_v49, 2  ;;  %v1341_v58 = vadd.f32 %v1325_v11, %v1193_v23  ;;  %v1046_v9 = vadd.f32 %v1030_v52, %v898_v19 }
  0xb5   :  { %vm7216_vm6 = vcmp.eq.s32.totalorder %v9600_v26, 1  ;;  %v9604_v39 = vrot.slane %v9603_v40, %v5937_v27  ;;  %v751_v43 = vadd.f32 %v735_v42, %v587_v35  ;;  %v7240_v63 = vsel %vm621_vm12, 1, %v9333_v60  ;;  %v9614_v26 = vld [vmem:[#allocation30_spill] sm:$0xff] }
  0xb6   :  { %v1473_v16 = vsel %vm7096_vm8, %v6917_v33, 0.0  ;;  %vm9607_vm1 = vnez %v9574_v37  ;;  %vm917_vm15 = vcmp.eq.s32.totalorder %v7150_v49, 3  ;;  %vm620_vm7 = vcmp.eq.s32.totalorder %v7083_v53, 1 }
  0xb7   :  { %vm7233_vm2 = vcmp.eq.s32.totalorder %v9604_v39, 1  ;;  %v1178_v21 = vsel %vm9607_vm1, %v6811_v29, 0.0  ;;  %v2459_v1 = vrot.slane %v7204_v30, %v5937_v27  ;;  %v2466_v45 = vrot.slane %v7204_v30, %v9586_v50 }
  0xb8   :  { %v7255_v36 = vmul.f32 %v9608_v17, %v1636_v10  ;;  %v9610_v54 = vrot.slane %v9609_v44, %v5937_v27  ;;  %v7267_v37 = vsel %vm769_vm13, 1, %v9333_v60  ;;  %v1621_v19 = vsel %vm7122_vm10, %v6999_v6, 0.0 }
  0xb9   :  { %vm9613_vm3 = vnez %v9583_v22  ;;  %v534_v11 = vrot.slane %v7227_v4, %v5937_v27  ;;  %v683_v42 = vrot.slane %v7240_v63, %v5937_v27  ;;  %2461 = vbcast.lane.b32.xlu1 %v2459_v1, 256  ;;  %2468 = vbcast.lane.b32.xlu0 %v2466_v45, 256  ;;  %v1489_v24 = vadd.f32 %v1473_v16, %v1341_v58 }
  0xba   :  { %vm7260_vm8 = vcmp.eq.s32.totalorder %v9610_v54, 1  ;;  %v883_v62 = vsel %vm9613_vm3, %v6597_v47, 0.0  ;;  %v1194_v12 = vadd.f32 %v1178_v21, %v1046_v9  ;;  %v7282_v61 = vsel %vm917_vm15, 1, %v9333_v60 }
  0xbb   :  { %v899_v20 = vadd.f32 %v883_v62, %v751_v43  ;;  %v1326_v22 = vsel %vm7163_vm5, %v6813_v59, 0.0  ;;  %vm1065_vm10 = vcmp.eq.s32.totalorder %v7150_v49, 4  ;;  %vm1213_vm0 = vcmp.eq.s32.totalorder %v7150_v49, 5  ;;  %v9618_v43 = vld [vmem:[#allocation31_spill] sm:$0xff] }
  0xbc   :  { %vm1835_vm11 = vcmp.ne.s32.totalorder %v7177_v41, 0  ;;  %vm768_vm9 = vcmp.eq.s32.totalorder %v7083_v53, 2  ;;  %vm916_vm12 = vcmp.eq.s32.totalorder %v7083_v53, 3  ;;  %v2603_v10 = vrot.slane %v7255_v36, %v5937_v27 }
  0xbd   :  { %v2610_v55 = vrot.slane %v7255_v36, %v9586_v50  ;;  %v1637_v34 = vadd.f32 %v1621_v19, %v1489_v24  ;;  %v9615_v25 = vrot.slane %v9614_v26, %v5937_v27  ;;  %vm1361_vm13 = vcmp.eq.s32.totalorder %v7150_v49, 6 }
  0xbe   :  { %v1031_v35 = vsel %vm7182_vm4, %v6709_v5, 0.0  ;;  %v831_v58 = vrot.slane %v7267_v37, %v5937_v27  ;;  %v979_v9 = vrot.slane %v7282_v61, %v5937_v27  ;;  %vm1509_vm1 = vcmp.eq.s32.totalorder %v7150_v49, 7  ;;  %2605 = vbcast.lane.b32.xlu1 %v2603_v10, 256  ;;  %v9622_v37 = vld [vmem:[#allocation13_spill] sm:$0xff] }
  0xbf   :  { %vm7299_vm5 = vcmp.eq.s32.totalorder %v9615_v25, 1  ;;  %2612 = vbcast.lane.b32.xlu0 %v2610_v55, 256  ;;  %v1342_v40 = vadd.f32 %v1326_v22, %v1194_v12  ;;  %v1047_v39 = vadd.f32 %v1031_v35, %v899_v20  ;;  %v9619_v16 = vrot.slane %v9618_v43, %v5937_v27 }
  0xc0   :  { %v7322_v13 = vsel %vm1065_vm10, 1, %v9333_v60  ;;  %v1851_v1 = vsel %vm1835_vm11, 1, %v9333_v60  ;;  %v1474_v45 = vsel %vm7209_vm14, %v6917_v33, 0.0  ;;  %v1179_v17 = vsel %vm7216_vm6, %v6811_v29, 0.0 }
  0xc1   :  { %vm7315_vm15 = vcmp.eq.s32.totalorder %v9619_v16, 1  ;;  %v7336_v44 = vsel %vm1213_vm0, 1, %v9333_v60  ;;  %v7339_v54 = vsel %vm1361_vm13, 1, %v9333_v60  ;;  %v2041_v19 = vrot.slane %v7052_v15, %v9622_v37 }
  0xc2   :  { %v2185_v62 = vrot.slane %v7055_v7, %v9622_v37  ;;  %v7346_v24 = vmul.f32 %v9623_v46, %v1637_v34  ;;  %v7349_v51 = vsel %vm1509_vm1, 1, %v9333_v60  ;;  %vm9291_vm4 = vcmp.ne.s32.totalorder %v6952_v18, 0 }
  0xc3   :  { %v1622_v12 = vsel %vm7233_vm2, %v6999_v6, 0.0  ;;  %v1127_v20 = vrot.slane %v7322_v13, %v5937_v27  ;;  %v1785_v22 = vrot.slane %v7177_v41, %v5937_v27  ;;  %v1897_v10 = vrot.slane %v1851_v1, %v5937_v27  ;;  %2043 = vbcast.lane.b32.xlu1 %v2041_v19, 256 }
  0xc4   :  { %2187 = vbcast.lane.b32.xlu0 %v2185_v62, 256  ;;  %v1490_v55 = vadd.f32 %v1474_v45, %v1342_v40  ;;  %v1195_v34 = vadd.f32 %v1179_v17, %v1047_v39  ;;  %v1275_v26 = vrot.slane %v7336_v44, %v5937_v27  ;;  %v636_v31 = vsel %vm620_vm7, 1, %v9333_v60  ;;  %v9624_v39 = vld [vmem:[#allocation15_spill] sm:$0xff] }
  0xc5   :  { %v1327_v25 = vsel %vm7260_vm8, %v6813_v59, 0.0  ;;  %v1423_v35 = vrot.slane %v7339_v54, %v5937_v27  ;;  %v530_v43 = vrot.slane %v7197_v48, %v5937_v27  ;;  %vm1064_vm14 = vcmp.eq.s32.totalorder %v7083_v53, 4 }
  0xc6   :  { %v2747_v40 = vrot.slane %v7346_v24, %v5937_v27  ;;  %v2048_v16 = vrot.slane %v7052_v15, %v9624_v39  ;;  %v1638_v1 = vadd.f32 %v1622_v12, %v1490_v55  ;;  %vm1212_vm6 = vcmp.eq.s32.totalorder %v7083_v53, 5 }
  0xc7   :  { %vm7379_vm2 = vcmp.eq.s32.totalorder %v1785_v22, %v6952_v18  ;;  %vm7383_vm7 = vcmp.eq.s32.totalorder %v1897_v10, 1  ;;  %v679_v48 = vrot.slane %v636_v31, %v5937_v27  ;;  %vm1360_vm8 = vcmp.eq.s32.totalorder %v7083_v53, 6 }
  0xc8   :  { %2749 = vbcast.lane.b32.xlu1 %v2747_v40, 256  ;;  %2050 = vbcast.lane.b32.xlu0 %v2048_v16, 256  ;;  %v1343_v17 = vadd.f32 %v1327_v25, %v1195_v34  ;;  %v784_v44 = vsel %vm768_vm9, 1, %v9333_v60  ;;  %v932_v54 = vsel %vm916_vm12, 1, %v9333_v60  ;;  %vm1508_vm3 = vcmp.eq.s32.totalorder %v7083_v53, 7  ;;  %vm1947_vm12 = vmand %vm7379_vm2, %vm7383_vm7 }
  0xc9   :  { %v1475_v19 = vsel %vm7299_vm5, %v6917_v33, 0.0  ;;  %vm7402_vm10 = vcmp.eq.s32.totalorder %v534_v11, 1  ;;  %vm7409_vm0 = vcmp.eq.s32.totalorder %v683_v42, 1  ;;  %vm7413_vm11 = vcmp.eq.s32.totalorder %v831_v58, 1  ;;  %v9635_v42 = vld [vmem:[#allocation32_spill] sm:$0xff]  ;;  %vm7456_vm5 = vmand %vm1947_vm12, %vm9291_vm4 }
  0xca   :  { %v1080_v52 = vsel %vm1064_vm14, 1, %v9333_v60  ;;  %v1228_v4 = vsel %vm1212_vm6, 1, %v9333_v60  ;;  %vm1834_vm9 = vcmp.ne.s32.totalorder %v7087_v3, 0  ;;  %v2192_v63 = vrot.slane %v7055_v7, %v9624_v39 }
  0xcb   :  { %v2754_v11 = vrot.slane %v7346_v24, %v9586_v50  ;;  %v7429_v58 = vmul.f32 %v9635_v42, %v1638_v1  ;;  %v1376_v22 = vsel %vm1360_vm8, 1, %v9333_v60  ;;  %v1623_v10 = vsel %vm7315_vm15, %v6999_v6, 0.0 }
  0xcc   :  { %v827_v55 = vrot.slane %v784_v44, %v5937_v27  ;;  %v975_v34 = vrot.slane %v932_v54, %v5937_v27  ;;  %v1524_v31 = vsel %vm1508_vm3, 1, %v9333_v60  ;;  %2194 = vbcast.lane.b32.xlu1 %v2192_v63, 256  ;;  %v1491_v25 = vadd.f32 %v1475_v19, %v1343_v17  ;;  %v9673_v63 = vld [vmem:[#allocation33_spill] sm:$0xff] }
  0xcd   :  { %2756 = vbcast.lane.b32.xlu0 %v2754_v11, 256  ;;  %v1123_v40 = vrot.slane %v1080_v52, %v5937_v27  ;;  %v1850_v16 = vsel %vm1834_vm9, 1, %v9333_v60  ;;  %v7450_v1 = vcombine.high %v7083_v53, %v7083_v53  ;;  %v1571_v21 = vrot.slane %v7349_v51, %v5937_v27 }
  0xce   :  { %v1271_v45 = vrot.slane %v1228_v4, %v5937_v27  ;;  %v1419_v17 = vrot.slane %v1376_v22, %v5937_v27  ;;  %v1781_v44 = vrot.slane %v7087_v3, %v5937_v27  ;;  %v2329_v53 = vrot.slane %v7158_v8, %v9622_v37 }
  0xcf   :  { %v2891_v54 = vrot.slane %v7429_v58, %v5937_v27  ;;  %v1639_v51 = vadd.f32 %v1623_v10, %v1491_v25  ;;  %v1567_v19 = vrot.slane %v1524_v31, %v5937_v27  ;;  %vm7472_vm13 = vcmp.eq.s32.totalorder %v979_v9, 1 }
  0xd0   :  { %vm7476_vm1 = vcmp.eq.s32.totalorder %v530_v43, 1  ;;  %vm7480_vm15 = vcmp.eq.s32.totalorder %v679_v48, 1  ;;  %vm7484_vm14 = vcmp.eq.s32.totalorder %v827_v55, 1  ;;  %v1893_v42 = vrot.slane %v1850_v16, %v5937_v27  ;;  %2331 = vbcast.lane.b32.xlu1 %v2329_v53, 256 }
  0xd1   :  { %2893 = vbcast.lane.b32.xlu0 %v2891_v54, 256  ;;  %vm7492_vm6 = vcmp.eq.s32.totalorder %v1127_v20, 1  ;;  %vm7496_vm2 = vcmp.eq.s32.totalorder %v1275_v26, 1  ;;  %v7503_v43 = vsel %vm7456_vm5, 1.0, %v9342_v2  ;;  %vm7505_vm7 = vcmp.eq.s32.totalorder %v975_v34, 1 }
  0xd2   :  { %v9650_v48 = vmov 0  ;;  %vm7509_vm8 = vcmp.eq.s32.totalorder %v1123_v40, 1  ;;  %vm7516_vm4 = vcmp.eq.s32.totalorder %v1423_v35, 1  ;;  %v9654_v13 = vmov 0 }
  0xd3   :  { %v9651_v48 = vsel %vm7505_vm7, 4294967295, %v9650_v48  ;;  %v9655_v13 = vsel %vm7516_vm4, 4294967295, %v9654_v13  ;;  %vm7520_vm5 = vcmp.eq.s32.totalorder %v1571_v21, 1  ;;  %v9656_v20 = vmov 0 }
  0xd4   :  { %v9657_v20 = vsel %vm7520_vm5, 4294967295, %v9656_v20  ;;  %vm7525_vm7 = vcmp.eq.s32.totalorder %v1781_v44, %v6952_v18  ;;  %v7531_v10 = vcombine.high %v7087_v3, %v7087_v3  ;;  %v7535_v55 = vcombine.high %v7150_v49, %v7150_v49 }
  0xd5   :  { %v7539_v35 = vcombine.high %v7177_v41, %v7177_v41  ;;  %v2336_v34 = vrot.slane %v7158_v8, %v9624_v39  ;;  %v2898_v31 = vrot.slane %v7429_v58, %v9586_v50  ;;  %v7546_v25 = vmul.f32 %v7174_v28, %v1639_v51 }
  0xd6   :  { %vm7548_vm12 = vcmp.eq.s32.totalorder %v1271_v45, 1  ;;  %vm7552_vm9 = vcmp.eq.s32.totalorder %v1419_v17, 1  ;;  %v9663_v49 = vmov 0  ;;  %vm7556_vm3 = vcmp.eq.s32.totalorder %v1567_v19, 1 }
  0xd7   :  { %9660 = vst [vmem:[#allocation9_spill] sm:$0xff] %v7539_v35  ;;  %v9664_v49 = vsel %vm7552_vm9, 4294967295, %v9663_v49  ;;  %v9665_v41 = vmov 0  ;;  %v7562_v40 = vrot.slane %v7108_v57, %v9516_v56  ;;  %vm7564_vm5 = vcmp.eq.s32.totalorder %v1893_v42, 1  ;;  %2338 = vbcast.lane.b32.xlu1 %v2336_v34, 256  ;;  %2900 = vbcast.lane.b32.xlu0 %v2898_v31, 256 }
  0xd8   :  { %v9666_v41 = vsel %vm7556_vm3, 4294967295, %v9665_v41  ;;  %vm9670_vm4 = vcmp.eq.s32.totalorder %v7450_v1, 0  ;;  %vm9671_vm9 = vcmp.eq.s32.totalorder %v7450_v1, 1  ;;  %vm9672_vm3 = vcmp.eq.s32.totalorder %v7450_v1, 2  ;;  %v9674_v31 = vld [vmem:[#allocation34_spill] sm:$0xff] }
  0xd9   :  { %9667 = vst [vmem:[#allocation14_spill] sm:$0xff] %v7562_v40  ;;  %v7571_v28 = vsel %vm9670_vm4, 1, %v9333_v60  ;;  %v7576_v21 = vsel %vm9671_vm9, 1, %v9333_v60  ;;  %v7581_v23 = vsel %vm9672_vm3, 1, %v9333_v60  ;;  %v589_v45 = vsel %vm7402_vm10, %v6599_v38, 0.0  ;;  %vm1946_vm10 = vmand %vm7525_vm7, %vm7564_vm5 }
  0xda   :  { %v737_v17 = vsel %vm7409_vm0, %v6711_v0, 0.0  ;;  %v885_v44 = vsel %vm7413_vm11, %v6597_v47, 0.0  ;;  %v736_v53 = vsel %vm7480_vm15, %v6711_v0, 0.0  ;;  %vm918_vm4 = vcmp.eq.s32.totalorder %v7450_v1, 3 }
  0xdb   :  { %v2473_v54 = vrot.slane %v7204_v30, %v9622_v37  ;;  %v2480_v62 = vrot.slane %v7204_v30, %v9624_v39  ;;  %v2617_v46 = vrot.slane %v7255_v36, %v9622_v37  ;;  %v588_v12 = vsel %vm7476_vm1, %v6599_v38, 0.0 }
  0xdc   :  { %v3035_v51 = vrot.slane %v7546_v25, %v5937_v27  ;;  %v2624_v19 = vrot.slane %v7255_v36, %v9624_v39  ;;  %v2055_v42 = vrot.slane %v7052_v15, %v9673_v63  ;;  %v2199_v34 = vrot.slane %v7055_v7, %v9673_v63 }
  0xdd   :  { %v2206_v57 = vrot.slane %v7055_v7, %v9674_v31  ;;  %v753_v4 = vadd.f32 %v737_v17, %v589_v45  ;;  %v752_v56 = vadd.f32 %v736_v53, %v588_v12  ;;  %2475 = vbcast.lane.b32.xlu1 %v2473_v54, 256  ;;  %v2761_v40 = vrot.slane %v7346_v24, %v9622_v37 }
  0xde   :  { %3037 = vbcast.lane.b32.xlu0 %v3035_v51, 256  ;;  %v884_v45 = vsel %vm7484_vm14, %v6597_v47, 0.0  ;;  %v2768_v17 = vrot.slane %v7346_v24, %v9624_v39  ;;  %v2487_v53 = vrot.slane %v7204_v30, %v9673_v63  ;;  %v3042_v51 = vrot.slane %v7546_v25, %v9586_v50 }
  0xdf   :  { %v901_v54 = vadd.f32 %v885_v44, %v753_v4  ;;  %v900_v12 = vadd.f32 %v884_v45, %v752_v56  ;;  %v2494_v35 = vrot.slane %v7204_v30, %v9674_v31  ;;  %v2638_v14 = vrot.slane %v7255_v36, %v9674_v31 }
  0xe0   :  { %v1033_v11 = vsel %vm7472_vm13, %v6709_v5, 0.0  ;;  %vm9675_vm0 = vcmp.ne.s32.totalorder %v6952_v18, 0  ;;  %v1181_v56 = vsel %vm7492_vm6, %v6811_v29, 0.0  ;;  %v1329_v44 = vsel %vm7496_vm2, %v6813_v59, 0.0 }
  0xe1   :  { %vm1968_vm11 = vmand %vm1946_vm10, %vm9675_vm0  ;;  %vm9676_vm1 = vnez %v9651_v48  ;;  %v1180_v26 = vsel %vm7509_vm8, %v6811_v29, 0.0  ;;  %2482 = vbcast.lane.b32.xlu1 %v2480_v62, 256  ;;  %v1049_v16 = vadd.f32 %v1033_v11, %v901_v54  ;;  %vm9677_vm13 = vnez %v9655_v13 }
  0xe2   :  { %v1032_v52 = vsel %vm9676_vm1, %v6709_v5, 0.0  ;;  %3044 = vbcast.lane.b32.xlu0 %v3042_v51, 256  ;;  %v1477_v61 = vsel %vm9677_vm13, %v6917_v33, 0.0  ;;  %vm9678_vm15 = vnez %v9657_v20  ;;  %v1328_v48 = vsel %vm7548_vm12, %v6813_v59, 0.0 }
  0xe3   :  { %v1625_v9 = vsel %vm9678_vm15, %v6999_v6, 0.0  ;;  %v1048_v4 = vadd.f32 %v1032_v52, %v900_v12  ;;  %vm9679_vm14 = vnez %v9664_v49  ;;  %vm9680_vm6 = vnez %v9666_v41 }
  0xe4   :  { %v1476_v22 = vsel %vm9679_vm14, %v6917_v33, 0.0  ;;  %v1624_v62 = vsel %vm9680_vm6, %v6999_v6, 0.0  ;;  %v5449_v13 = vsel %vm1968_vm11, 1.0, %v9342_v2  ;;  %v1197_v45 = vadd.f32 %v1181_v56, %v1049_v16 }
  0xe5   :  { %v1196_v54 = vadd.f32 %v1180_v26, %v1048_v4  ;;  %v538_v20 = vrot.slane %v7571_v28, %v5937_v27  ;;  %v687_v12 = vrot.slane %v7576_v21, %v5937_v27  ;;  %v835_v3 = vrot.slane %v7581_v23, %v5937_v27  ;;  %2619 = vbcast.lane.b32.xlu1 %v2617_v46, 256 }
  0xe6   :  { %v934_v49 = vsel %vm918_vm4, 1, %v9333_v60  ;;  %vm1066_vm2 = vcmp.eq.s32.totalorder %v7450_v1, 4  ;;  %vm1214_vm7 = vcmp.eq.s32.totalorder %v7450_v1, 5  ;;  %2626 = vbcast.lane.b32.xlu0 %v2624_v19, 256  ;;  %v1345_v41 = vadd.f32 %v1329_v44, %v1197_v45 }
  0xe7   :  { %v1344_v51 = vadd.f32 %v1328_v48, %v1196_v54  ;;  %vm569_vm8 = vcmp.eq.s32.totalorder %v538_v20, 1  ;;  %vm718_vm3 = vcmp.eq.s32.totalorder %v687_v12, 1  ;;  %vm866_vm9 = vcmp.eq.s32.totalorder %v835_v3, 1 }
  0xe8   :  { %v590_v28 = vsel %vm569_vm8, %v6599_v38, 0.0  ;;  %v738_v21 = vsel %vm718_vm3, %v6711_v0, 0.0  ;;  %v983_v23 = vrot.slane %v934_v49, %v5937_v27  ;;  %v1493_v11 = vadd.f32 %v1477_v61, %v1345_v41 }
  0xe9   :  { %v1492_v56 = vadd.f32 %v1476_v22, %v1344_v51  ;;  %v754_v52 = vadd.f32 %v738_v21, %v590_v28  ;;  %v886_v26 = vsel %vm866_vm9, %v6597_v47, 0.0  ;;  %v1082_v46 = vsel %vm1066_vm2, 1, %v9333_v60  ;;  %2057 = vbcast.lane.b32.xlu1 %v2055_v42, 256  ;;  %v9686_v51 = vld [vmem:[#allocation35_spill] sm:$0xff] }
  0xea   :  { %vm7693_vm12 = vcmp.eq.s32.totalorder %v983_v23, 1  ;;  %v1230_v19 = vsel %vm1214_vm7, 1, %v9333_v60  ;;  %vm1362_vm5 = vcmp.eq.s32.totalorder %v7450_v1, 6  ;;  %2201 = vbcast.lane.b32.xlu0 %v2199_v34, 256  ;;  %v1641_v44 = vadd.f32 %v1625_v9, %v1493_v11 }
  0xeb   :  { %v1640_v61 = vadd.f32 %v1624_v62, %v1492_v56  ;;  %v902_v4 = vadd.f32 %v886_v26, %v754_v52  ;;  %v1034_v48 = vsel %vm7693_vm12, %v6709_v5, 0.0  ;;  %v1131_v22 = vrot.slane %v1082_v46, %v5937_v27 }
  0xec   :  { %v1279_v45 = vrot.slane %v1230_v19, %v5937_v27  ;;  %v1378_v54 = vsel %vm1362_vm5, 1, %v9333_v60  ;;  %vm1510_vm4 = vcmp.eq.s32.totalorder %v7450_v1, 7  ;;  %v7712_v20 = vmul.f32 %v7503_v43, %v1641_v44 }
  0xed   :  { %v7714_v42 = vmul.f32 %v5449_v13, %v1640_v61  ;;  %v1050_v34 = vadd.f32 %v1034_v48, %v902_v4  ;;  %v1427_v9 = vrot.slane %v1378_v54, %v5937_v27  ;;  %vm1162_vm10 = vcmp.eq.s32.totalorder %v1131_v22, 1  ;;  %2763 = vbcast.lane.b32.xlu1 %v2761_v40, 256 }
  0xee   :  { %vm7717_vm0 = vcmp.eq.s32.totalorder %v1279_v45, 1  ;;  %v1526_v12 = vsel %vm1510_vm4, 1, %v9333_v60  ;;  %v1789_v3 = vrot.slane %v7531_v10, %v5937_v27  ;;  %v9685_v1 = vrot.slane %v7052_v15, %v9674_v31 }
  0xef   :  { %v2905_v43 = vrot.slane %v7429_v58, %v9622_v37  ;;  %v2912_v13 = vrot.slane %v7429_v58, %v9624_v39  ;;  %v2631_v49 = vrot.slane %v7255_v36, %v9673_v63  ;;  %v1182_v41 = vsel %vm1162_vm10, %v6811_v29, 0.0 }
  0xf0   :  { %2064 = vbcast.lane.b32.xlu0 %v9685_v1, 256  ;;  %v2213_v28 = vrot.slane %v7055_v7, %v9686_v51  ;;  %v1198_v21 = vadd.f32 %v1182_v41, %v1050_v34  ;;  %v1330_v40 = vsel %vm7717_vm0, %v6813_v59, 0.0  ;;  %vm1458_vm11 = vcmp.eq.s32.totalorder %v1427_v9, 1 }
  0xf1   :  { %v2069_v23 = vrot.slane %v7052_v15, %v9686_v51  ;;  %v1478_v11 = vsel %vm1458_vm11, %v6917_v33, 0.0  ;;  %v1575_v56 = vrot.slane %v1526_v12, %v5937_v27  ;;  %vm1836_vm1 = vcmp.ne.s32.totalorder %v7531_v10, 0  ;;  %2208 = vbcast.lane.b32.xlu1 %v2206_v57, 256 }
  0xf2   :  { %v3049_v52 = vrot.slane %v7546_v25, %v9622_v37  ;;  %v1346_v26 = vadd.f32 %v1330_v40, %v1198_v21  ;;  %vm7750_vm13 = vcmp.eq.s32.totalorder %v1789_v3, %v6952_v18  ;;  %v1852_v46 = vsel %vm1836_vm1, 1, %v9333_v60 }
  0xf3   :  { %vm1606_vm15 = vcmp.eq.s32.totalorder %v1575_v56, 1  ;;  %v1901_v10 = vrot.slane %v1852_v46, %v5937_v27  ;;  %vm474_vm14 = vcmp.eq.s32.totalorder %v7535_v55, 0  ;;  %vm623_vm6 = vcmp.eq.s32.totalorder %v7535_v55, 1 }
  0xf4   :  { %2770 = vbcast.lane.b32.xlu0 %v2768_v17, 256  ;;  %v1494_v19 = vadd.f32 %v1478_v11, %v1346_v26  ;;  %v1626_v44 = vsel %vm1606_vm15, %v6999_v6, 0.0  ;;  %v490_v61 = vsel %vm474_vm14, 1, %v9333_v60  ;;  %v639_v4 = vsel %vm623_vm6, 1, %v9333_v60 }
  0xf5   :  { %vm1932_vm2 = vcmp.eq.s32.totalorder %v1901_v10, 1  ;;  %v542_v57 = vrot.slane %v490_v61, %v5937_v27  ;;  %v691_v48 = vrot.slane %v639_v4, %v5937_v27  ;;  %vm771_vm7 = vcmp.eq.s32.totalorder %v7535_v55, 2 }
  0xf6   :  { %v1642_v17 = vadd.f32 %v1626_v44, %v1494_v19  ;;  %vm1948_vm8 = vmand %vm7750_vm13, %vm1932_vm2  ;;  %v787_v22 = vsel %vm771_vm7, 1, %v9333_v60  ;;  %vm919_vm3 = vcmp.eq.s32.totalorder %v7535_v55, 3  ;;  %vm1067_vm9 = vcmp.eq.s32.totalorder %v7535_v55, 4 }
  0xf7   :  { %v9689_v45 = vrot.slane %v7158_v8, %v9673_v63  ;;  %vm9690_vm12 = vcmp.ne.s32.totalorder %v6952_v18, 0  ;;  %vm570_vm4 = vcmp.eq.s32.totalorder %v542_v57, 1  ;;  %vm719_vm10 = vcmp.eq.s32.totalorder %v691_v48, 1  ;;  %v9692_v48 = vld [vmem:[#allocation9_spill] sm:$0xff] }
  0xf8   :  { %2907 = vbcast.lane.b32.xlu0 %v2905_v43, 256  ;;  %vm1970_vm5 = vmand %vm1948_vm8, %vm9690_vm12  ;;  %v839_v54 = vrot.slane %v787_v22, %v5937_v27  ;;  %v935_v34 = vsel %vm919_vm3, 1, %v9333_v60  ;;  %v591_v62 = vsel %vm570_vm4, %v6599_v38, 0.0  ;;  %v739_v12 = vsel %vm719_vm10, %v6711_v0, 0.0 }
  0xf9   :  { %2345 = vbcast.lane.b32.xlu1 %v9689_v45, 256  ;;  %v5451_v9 = vsel %vm1970_vm5, 1.0, %v9342_v2  ;;  %v987_v3 = vrot.slane %v935_v34, %v5937_v27  ;;  %v755_v43 = vadd.f32 %v739_v12, %v591_v62  ;;  %v1083_v41 = vsel %vm1067_vm9, 1, %v9333_v60  ;;  %v7823_v62 = vpop.permute.xlu1 %52 }
  0xfa   :  { %v7786_v1 = vmul.f32 %v5451_v9, %v1642_v17  ;;  %vm867_vm0 = vcmp.eq.s32.totalorder %v839_v54, 1  ;;  %v1135_v40 = vrot.slane %v1083_v41, %v5937_v27  ;;  %vm1215_vm1 = vcmp.eq.s32.totalorder %v7535_v55, 5 }
  0xfb   :  { %v887_v21 = vsel %vm867_vm0, %v6597_v47, 0.0  ;;  %vm1015_vm11 = vcmp.eq.s32.totalorder %v987_v3, 1  ;;  %v9691_v11 = vrot.slane %v7158_v8, %v9674_v31  ;;  %v3056_v56 = vrot.slane %v7546_v25, %v9624_v39 }
  0xfc   :  { %2914 = vbcast.lane.b32.xlu0 %v2912_v13, 256  ;;  %v2076_v26 = vrot.slane %v7052_v15, %v7141_v32  ;;  %v903_v16 = vadd.f32 %v887_v21, %v755_v43  ;;  %v1035_v46 = vsel %vm1015_vm11, %v6709_v5, 0.0  ;;  %vm1163_vm13 = vcmp.eq.s32.totalorder %v1135_v40, 1  ;;  %v9697_v21 = vld [vmem:[#allocation14_spill] sm:$0xff] }
  0xfd   :  { %2352 = vbcast.lane.b32.xlu1 %v9691_v11, 256  ;;  %v1231_v10 = vsel %vm1215_vm1, 1, %v9333_v60  ;;  %vm1363_vm15 = vcmp.eq.s32.totalorder %v7535_v55, 6  ;;  %vm1511_vm14 = vcmp.eq.s32.totalorder %v7535_v55, 7  ;;  %v1183_v44 = vsel %vm1163_vm13, %v6811_v29, 0.0 }
  0xfe   :  { %v1051_v19 = vadd.f32 %v1035_v46, %v903_v16  ;;  %v1283_v13 = vrot.slane %v1231_v10, %v5937_v27  ;;  %v1379_v61 = vsel %vm1363_vm15, 1, %v9333_v60  ;;  %v1527_v57 = vsel %vm1511_vm14, 1, %v9333_v60 }
  0xff   :  { %v1431_v4 = vrot.slane %v1379_v61, %v5937_v27  ;;  %v1793_v17 = vrot.slane %v9692_v48, %v5937_v27  ;;  %vm1837_vm6 = vcmp.ne.s32.totalorder %v9692_v48, 0  ;;  %v1579_v22 = vrot.slane %v1527_v57, %v5937_v27 }
 0x100   :  { %3051 = vbcast.lane.b32.xlu0 %v3049_v52, 256  ;;  %v1199_v55 = vadd.f32 %v1183_v44, %v1051_v19  ;;  %vm1311_vm2 = vcmp.eq.s32.totalorder %v1283_v13, 1  ;;  %v1853_v45 = vsel %vm1837_vm6, 1, %v9333_v60  ;;  %v2775_v52 = vrot.slane %v7346_v24, %v9673_v63 }
 0x101   :  { %2489 = vbcast.lane.b32.xlu1 %v2487_v53, 256  ;;  %v1331_v54 = vsel %vm1311_vm2, %v6813_v59, 0.0  ;;  %vm1459_vm7 = vcmp.eq.s32.totalorder %v1431_v4, 1  ;;  %vm7818_vm8 = vcmp.eq.s32.totalorder %v1793_v17, %v6952_v18  ;;  %v1905_v9 = vrot.slane %v1853_v45, %v5937_v27  ;;  %v7825_v53 = vpop.permute.xlu0 %46  ;;  %v7858_v4 = vpop.permute.xlu1 %64 }
 0x102   :  { %v1347_v12 = vadd.f32 %v1331_v54, %v1199_v55  ;;  %v1479_v3 = vsel %vm1459_vm7, %v6917_v33, 0.0  ;;  %vm7830_vm3 = vcmp.eq.s32.totalorder %v1579_v22, 1  ;;  %vm475_vm12 = vcmp.eq.s32.totalorder %v9697_v21, 0  ;;  %v9705_v54 = vld [vmem:[#allocation3_spill] sm:$0xff] }
 0x103   :  { %v1627_v41 = vsel %vm7830_vm3, %v6999_v6, 0.0  ;;  %vm1933_vm9 = vcmp.eq.s32.totalorder %v1905_v9, 1  ;;  %vm624_vm5 = vcmp.eq.s32.totalorder %v9697_v21, 1  ;;  %v491_v11 = vsel %vm475_vm12, 1, %v9333_v60 }
 0x104   :  { %3058 = vbcast.lane.b32.xlu0 %v3056_v56, 256  ;;  %v1495_v40 = vadd.f32 %v1479_v3, %v1347_v12  ;;  %vm1949_vm4 = vmand %vm7818_vm8, %vm1933_vm9  ;;  %v640_v16 = vsel %vm624_vm5, 1, %v9333_v60  ;;  %vm772_vm10 = vcmp.eq.s32.totalorder %v9697_v21, 2  ;;  %vm9698_vm0 = vcmp.ne.s32.totalorder %v6952_v18, 0 }
 0x105   :  { %2496 = vbcast.lane.b32.xlu1 %v2494_v35, 256  ;;  %vm1971_vm11 = vmand %vm1949_vm4, %vm9698_vm0  ;;  %v546_v46 = vrot.slane %v491_v11, %v5937_v27  ;;  %v695_v10 = vrot.slane %v640_v16, %v5937_v27  ;;  %v788_v35 = vsel %vm772_vm10, 1, %v9333_v60  ;;  %vm920_vm1 = vcmp.eq.s32.totalorder %v9697_v21, 3  ;;  %v7860_v57 = vpop.permute.xlu0 %58 }
 0x106   :  { %v1643_v56 = vadd.f32 %v1627_v41, %v1495_v40  ;;  %v5452_v19 = vsel %vm1971_vm11, 1.0, %v9342_v2  ;;  %v843_v44 = vrot.slane %v788_v35, %v5937_v27  ;;  %v936_v13 = vsel %vm920_vm1, 1, %v9333_v60 }
 0x107   :  { %vm571_vm13 = vcmp.eq.s32.totalorder %v546_v46, 1  ;;  %vm720_vm15 = vcmp.eq.s32.totalorder %v695_v10, 1  ;;  %v991_v61 = vrot.slane %v936_v13, %v5937_v27  ;;  %vm1068_vm14 = vcmp.eq.s32.totalorder %v9697_v21, 4 }
 0x108   :  { %2633 = vbcast.lane.b32.xlu0 %v2631_v49, 256  ;;  %v7868_v48 = vmul.f32 %v5452_v19, %v1643_v56  ;;  %v592_v17 = vsel %vm571_vm13, %v6599_v38, 0.0  ;;  %v740_v55 = vsel %vm720_vm15, %v6711_v0, 0.0  ;;  %vm868_vm6 = vcmp.eq.s32.totalorder %v843_v44, 1 }
 0x109   :  { %2640 = vbcast.lane.b32.xlu1 %v2638_v14, 256  ;;  %v2782_v22 = vrot.slane %v7346_v24, %v9674_v31  ;;  %v756_v45 = vadd.f32 %v740_v55, %v592_v17  ;;  %vm7874_vm2 = vcmp.eq.s32.totalorder %v991_v61, 1  ;;  %v1084_v14 = vsel %vm1068_vm14, 1, %v9333_v60 }
 0x10a   :  { %v2220_v49 = vrot.slane %v7055_v7, %v7141_v32  ;;  %v888_v34 = vsel %vm868_vm6, %v6597_v47, 0.0  ;;  %v1036_v9 = vsel %vm7874_vm2, %v6709_v5, 0.0  ;;  %v1139_v12 = vrot.slane %v1084_v14, %v5937_v27  ;;  %v7901_v7 = vpop.permute.xlu1 %76 }
 0x10b   :  { %v904_v3 = vadd.f32 %v888_v34, %v756_v45  ;;  %vm1216_vm7 = vcmp.eq.s32.totalorder %v9697_v21, 5  ;;  %vm1364_vm8 = vcmp.eq.s32.totalorder %v9697_v21, 6  ;;  %vm1512_vm3 = vcmp.eq.s32.totalorder %v9697_v21, 7  ;;  %v9706_v34 = vld [vmem:[#allocation4_spill] sm:$0xff] }
 0x10c   :  { %2071 = vbcast.lane.b32.xlu0 %v2069_v23, 256  ;;  %vm1164_vm9 = vcmp.eq.s32.totalorder %v1139_v12, 1  ;;  %v1232_v43 = vsel %vm1216_vm7, 1, %v9333_v60  ;;  %v1380_v41 = vsel %vm1364_vm8, 1, %v9333_v60  ;;  %v1528_v40 = vsel %vm1512_vm3, 1, %v9333_v60 }
 0x10d   :  { %2215 = vbcast.lane.b32.xlu1 %v2213_v28, 256  ;;  %v1052_v11 = vadd.f32 %v1036_v9, %v904_v3  ;;  %v1184_v16 = vsel %vm1164_vm9, %v6811_v29, 0.0  ;;  %v1287_v46 = vrot.slane %v1232_v43, %v5937_v27  ;;  %v1435_v10 = vrot.slane %v1380_v41, %v5937_v27  ;;  %v7903_v28 = vpop.permute.xlu0 %70 }
 0x10e   :  { %v2919_v23 = vrot.slane %v7429_v58, %v9673_v63  ;;  %v2357_v35 = vrot.slane %v7158_v8, %v9686_v51  ;;  %v1583_v56 = vrot.slane %v1528_v40, %v5937_v27  ;;  %v1697_v19 = vcombine.high %v6952_v18, %v6952_v18 }
 0x10f   :  { %v2926_v44 = vrot.slane %v7429_v58, %v9674_v31  ;;  %v1200_v13 = vadd.f32 %v1184_v16, %v1052_v11  ;;  %vm1312_vm12 = vcmp.eq.s32.totalorder %v1287_v46, 1  ;;  %vm7914_vm5 = vcmp.eq.s32.totalorder %v1435_v10, 1  ;;  %v7959_v46 = vpop.permute.xlu1 %48 }
 0x110   :  { %2777 = vbcast.lane.b32.xlu0 %v2775_v52, 256  ;;  %v1332_v17 = vsel %vm1312_vm12, %v6813_v59, 0.0  ;;  %v1480_v55 = vsel %vm7914_vm5, %v6917_v33, 0.0  ;;  %vm7928_vm4 = vcmp.eq.s32.totalorder %v1583_v56, 1  ;;  %v7933_v14 = vrot.slane %v1697_v19, %v9705_v54 }
 0x111   :  { %2078 = vbcast.lane.b32.xlu1 %v2076_v26, 256  ;;  %v2364_v15 = vrot.slane %v7158_v8, %v7141_v32  ;;  %v3063_v26 = vrot.slane %v7546_v25, %v9673_v63  ;;  %v1348_v52 = vadd.f32 %v1332_v17, %v1200_v13  ;;  %v430_v9 = vcombine.high %v9706_v34, %v9706_v34  ;;  %v7961_v10 = vpop.permute.xlu0 %82 }
 0x112   :  { %v2501_v12 = vrot.slane %v7204_v30, %v9686_v51  ;;  %v3070_v3 = vrot.slane %v7546_v25, %v9674_v31  ;;  %v1628_v43 = vsel %vm7928_vm4, %v6999_v6, 0.0  ;;  %v7950_v8 = vrot.slane %v7933_v14, %v9705_v54 }
 0x113   :  { %v2508_v41 = vrot.slane %v7204_v30, %v7141_v32  ;;  %v2652_v40 = vrot.slane %v7255_v36, %v7141_v32  ;;  %v1496_v11 = vadd.f32 %v1480_v55, %v1348_v52  ;;  %v7957_v16 = vrot.slane %v430_v9, %v9705_v54 }
 0x114   :  { %2222 = vbcast.lane.b32.xlu0 %v2220_v49, 256  ;;  %v1797_v19 = vrot.slane %v7950_v8, %v5937_v27  ;;  %vm1838_vm10 = vcmp.ne.s32.totalorder %v7950_v8, 0  ;;  %v1713_v13 = vcombine.high %v7933_v14, %v7933_v14  ;;  %vm9709_vm3 = vcmp.ne.s32.totalorder %v6952_v18, 0 }
 0x115   :  { %2784 = vbcast.lane.b32.xlu1 %v2782_v22, 256  ;;  %v1644_v61 = vadd.f32 %v1628_v43, %v1496_v11  ;;  %v1854_v17 = vsel %vm1838_vm10, 1, %v9333_v60  ;;  %vm476_vm0 = vcmp.eq.s32.totalorder %v7957_v16, 0  ;;  %vm625_vm11 = vcmp.eq.s32.totalorder %v7957_v16, 1  ;;  %v7976_v22 = vld [vmem:[%s9246_s2 + $0x8] sm:$0xff] }
 0x116   :  { %vm7979_vm1 = vcmp.eq.s32.totalorder %v1797_v19, %v7976_v22  ;;  %v1909_v55 = vrot.slane %v1854_v17, %v5937_v27  ;;  %v492_v45 = vsel %vm476_vm0, 1, %v9333_v60  ;;  %v641_v14 = vsel %vm625_vm11, 1, %v9333_v60  ;;  %v7997_v17 = vpop.permute.xlu1 %60 }
 0x117   :  { %v550_v52 = vrot.slane %v492_v45, %v5937_v27  ;;  %v699_v34 = vrot.slane %v641_v14, %v5937_v27  ;;  %vm773_vm13 = vcmp.eq.s32.totalorder %v7957_v16, 2  ;;  %vm921_vm15 = vcmp.eq.s32.totalorder %v7957_v16, 3 }
 0x118   :  { %2359 = vbcast.lane.b32.xlu0 %v2357_v35, 256  ;;  %vm1934_vm14 = vcmp.eq.s32.totalorder %v1909_v55, 1  ;;  %v789_v9 = vsel %vm773_vm13, 1, %v9333_v60  ;;  %v937_v43 = vsel %vm921_vm15, 1, %v9333_v60  ;;  %vm1069_vm6 = vcmp.eq.s32.totalorder %v7957_v16, 4 }
 0x119   :  { %2921 = vbcast.lane.b32.xlu1 %v2919_v23, 256  ;;  %vm1950_vm2 = vmand %vm7979_vm1, %vm1934_vm14  ;;  %vm572_vm7 = vcmp.eq.s32.totalorder %v550_v52, 1  ;;  %vm721_vm8 = vcmp.eq.s32.totalorder %v699_v34, 1  ;;  %v847_v11 = vrot.slane %v789_v9, %v5937_v27  ;;  %v995_v19 = vrot.slane %v937_v43, %v5937_v27  ;;  %v7999_v23 = vpop.permute.xlu0 %54 }
 0x11a   :  { %vm1972_vm9 = vmand %vm1950_vm2, %vm9709_vm3  ;;  %v593_v35 = vsel %vm572_vm7, %v6599_v38, 0.0  ;;  %v741_v55 = vsel %vm721_vm8, %v6711_v0, 0.0  ;;  %v1085_v49 = vsel %vm1069_vm6, 1, %v9333_v60  ;;  %vm1217_vm12 = vcmp.eq.s32.totalorder %v7957_v16, 5 }
 0x11b   :  { %v5453_v45 = vsel %vm1972_vm9, 1.0, %v9342_v2  ;;  %v757_v14 = vadd.f32 %v741_v55, %v593_v35  ;;  %vm869_vm5 = vcmp.eq.s32.totalorder %v847_v11, 1  ;;  %vm1017_vm4 = vcmp.eq.s32.totalorder %v995_v19, 1 }
 0x11c   :  { %2366 = vbcast.lane.b32.xlu0 %v2364_v15, 256  ;;  %v8011_v52 = vmul.f32 %v5453_v45, %v1644_v61  ;;  %v889_v34 = vsel %vm869_vm5, %v6597_v47, 0.0  ;;  %v1143_v9 = vrot.slane %v1085_v49, %v5937_v27  ;;  %v8017_v43 = vcombine.high %v9697_v21, %v9697_v21  ;;  %v8030_v49 = vpop.permute.xlu1 %72 }
 0x11d   :  { %2928 = vbcast.lane.b32.xlu1 %v2926_v44, 256  ;;  %v905_v56 = vadd.f32 %v889_v34, %v757_v14  ;;  %v1233_v35 = vsel %vm1217_vm12, 1, %v9333_v60  ;;  %vm1365_vm10 = vcmp.eq.s32.totalorder %v7957_v16, 6  ;;  %vm1513_vm0 = vcmp.eq.s32.totalorder %v7957_v16, 7  ;;  %v8032_v45 = vpop.permute.xlu0 %66 }
 0x11e   :  { %v1037_v44 = vsel %vm1017_vm4, %v6709_v5, 0.0  ;;  %vm1165_vm11 = vcmp.eq.s32.totalorder %v1143_v9, 1  ;;  %v1291_v15 = vrot.slane %v1233_v35, %v5937_v27  ;;  %v8025_v61 = vrot.slane %v1713_v13, %v9705_v54  ;;  %9710 = vst [vmem:[#allocation21_spill] sm:$0xff] %v8032_v45 }
 0x11f   :  { %v1053_v11 = vadd.f32 %v1037_v44, %v905_v56  ;;  %v1185_v19 = vsel %vm1165_vm11, %v6811_v29, 0.0  ;;  %v1381_v21 = vsel %vm1365_vm10, 1, %v9333_v60  ;;  %v1529_v55 = vsel %vm1513_vm0, 1, %v9333_v60 }
 0x120   :  { %2503 = vbcast.lane.b32.xlu0 %v2501_v12, 256  ;;  %vm1313_vm1 = vcmp.eq.s32.totalorder %v1291_v15, 1  ;;  %v1439_v54 = vrot.slane %v1381_v21, %v5937_v27  ;;  %v1587_v56 = vrot.slane %v1529_v55, %v5937_v27  ;;  %v1801_v13 = vrot.slane %v8025_v61, %v5937_v27 }
 0x121   :  { %3065 = vbcast.lane.b32.xlu1 %v3063_v26, 256  ;;  %v1201_v14 = vadd.f32 %v1185_v19, %v1053_v11  ;;  %v1333_v34 = vsel %vm1313_vm1, %v6813_v59, 0.0  ;;  %vm1839_vm13 = vcmp.ne.s32.totalorder %v8025_v61, 0  ;;  %vm477_vm15 = vcmp.eq.s32.totalorder %v8017_v43, 0 }
 0x122   :  { %vm1461_vm14 = vcmp.eq.s32.totalorder %v1439_v54, 1  ;;  %vm8047_vm6 = vcmp.eq.s32.totalorder %v1587_v56, 1  ;;  %vm8052_vm2 = vcmp.eq.s32.totalorder %v1801_v13, %v7976_v22  ;;  %v1855_v9 = vsel %vm1839_vm13, 1, %v9333_v60  ;;  %v8074_v56 = vpop.permute.xlu1 %84 }
 0x123   :  { %v1349_v35 = vadd.f32 %v1333_v34, %v1201_v14  ;;  %v1481_v44 = vsel %vm1461_vm14, %v6917_v33, 0.0  ;;  %v1629_v15 = vsel %vm8047_vm6, %v6999_v6, 0.0  ;;  %v1913_v11 = vrot.slane %v1855_v9, %v5937_v27 }
 0x124   :  { %2510 = vbcast.lane.b32.xlu0 %v2508_v41, 256  ;;  %v493_v19 = vsel %vm477_vm15, 1, %v9333_v60  ;;  %vm626_vm7 = vcmp.eq.s32.totalorder %v8017_v43, 1  ;;  %vm774_vm8 = vcmp.eq.s32.totalorder %v8017_v43, 2  ;;  %vm922_vm3 = vcmp.eq.s32.totalorder %v8017_v43, 3 }
 0x125   :  { %3072 = vbcast.lane.b32.xlu1 %v3070_v3, 256  ;;  %v1497_v21 = vadd.f32 %v1481_v44, %v1349_v35  ;;  %vm1935_vm9 = vcmp.eq.s32.totalorder %v1913_v11, 1  ;;  %v554_v55 = vrot.slane %v493_v19, %v5937_v27  ;;  %v642_v54 = vsel %vm626_vm7, 1, %v9333_v60  ;;  %v8076_v3 = vpop.permute.xlu0 %78 }
 0x126   :  { %vm1951_vm12 = vmand %vm8052_vm2, %vm1935_vm9  ;;  %v703_v30 = vrot.slane %v642_v54, %v5937_v27  ;;  %v790_v41 = vsel %vm774_vm8, 1, %v9333_v60  ;;  %v938_v13 = vsel %vm922_vm3, 1, %v9333_v60  ;;  %vm1070_vm5 = vcmp.eq.s32.totalorder %v8017_v43, 4 }
 0x127   :  { %v1645_v14 = vadd.f32 %v1629_v15, %v1497_v21  ;;  %vm9715_vm4 = vcmp.ne.s32.totalorder %v6952_v18, 0  ;;  %vm8086_vm0 = vcmp.eq.s32.totalorder %v554_v55, 1  ;;  %v851_v26 = vrot.slane %v790_v41, %v5937_v27  ;;  %v8108_v21 = vpop.permute.xlu1 %2029 }
 0x128   :  { %vm1973_vm10 = vmand %vm1951_vm12, %vm9715_vm4  ;;  %v999_v12 = vrot.slane %v938_v13, %v5937_v27  ;;  %v9718_v9 = vrot.slane %v7255_v36, %v9686_v51  ;;  %v2227_v35 = vrot.slane %v7712_v20, %v5937_v27  ;;  %vm722_vm11 = vcmp.eq.s32.totalorder %v703_v30, 1 }
 0x129   :  { %2654 = vbcast.lane.b32.xlu1 %v2652_v40, 256  ;;  %v5454_v44 = vsel %vm1973_vm10, 1.0, %v9342_v2  ;;  %v1086_v15 = vsel %vm1070_vm5, 1, %v9333_v60  ;;  %v594_v19 = vsel %vm8086_vm0, %v6599_v38, 0.0  ;;  %v742_v40 = vsel %vm722_vm11, %v6711_v0, 0.0  ;;  %v8110_v36 = vpop.permute.xlu0 %2173 }
 0x12a   :  { %2647 = vbcast.lane.b32.xlu0 %v9718_v9, 256  ;;  %v8102_v11 = vmul.f32 %v5454_v44, %v1645_v14  ;;  %vm870_vm1 = vcmp.eq.s32.totalorder %v851_v26, 1  ;;  %v2083_v55 = vrot.slane %v7714_v42, %v5937_v27  ;;  %v758_v54 = vadd.f32 %v742_v40, %v594_v19 }
 0x12b   :  { %vm8114_vm13 = vcmp.eq.s32.totalorder %v999_v12, 1  ;;  %v1147_v41 = vrot.slane %v1086_v15, %v5937_v27  ;;  %v2090_v13 = vrot.slane %v7714_v42, %v9586_v50  ;;  %v2789_v14 = vrot.slane %v7346_v24, %v9686_v51  ;;  %v8140_v19 = vpop.permute.xlu1 %2036 }
 0x12c   :  { %v890_v34 = vsel %vm870_vm1, %v6597_v47, 0.0  ;;  %v1743_v26 = vcombine.high %v7950_v8, %v7950_v8  ;;  %vm1218_vm14 = vcmp.eq.s32.totalorder %v8017_v43, 5  ;;  %vm1366_vm6 = vcmp.eq.s32.totalorder %v8017_v43, 6 }
 0x12d   :  { %2229 = vbcast.lane.b32.xlu1 %v2227_v35, 256  ;;  %v906_v9 = vadd.f32 %v890_v34, %v758_v54  ;;  %vm8126_vm15 = vcmp.eq.s32.totalorder %v1147_v41, 1  ;;  %v1038_v44 = vsel %vm8114_vm13, %v6709_v5, 0.0  ;;  %v1234_v8 = vsel %vm1218_vm14, 1, %v9333_v60  ;;  %v8142_v40 = vpop.permute.xlu0 %2180 }
 0x12e   :  { %2085 = vbcast.lane.b32.xlu0 %v2083_v55, 256  ;;  %v1186_v15 = vsel %vm8126_vm15, %v6811_v29, 0.0  ;;  %v1382_v35 = vsel %vm1366_vm6, 1, %v9333_v60  ;;  %v1295_v54 = vrot.slane %v1234_v8, %v5937_v27  ;;  %vm1514_vm2 = vcmp.eq.s32.totalorder %v8017_v43, 7 }
 0x12f   :  { %v1054_v55 = vadd.f32 %v1038_v44, %v906_v9  ;;  %v1443_v41 = vrot.slane %v1382_v35, %v5937_v27  ;;  %v1530_v30 = vsel %vm1514_vm2, 1, %v9333_v60  ;;  %v1805_v34 = vrot.slane %v1743_v26, %v5937_v27  ;;  %v8160_v35 = vpop.permute.xlu1 %2317 }
 0x130   :  { %vm1314_vm7 = vcmp.eq.s32.totalorder %v1295_v54, 1  ;;  %v1591_v9 = vrot.slane %v1530_v30, %v5937_v27  ;;  %v2796_v44 = vrot.slane %v7346_v24, %v7141_v32  ;;  %vm1840_vm9 = vcmp.ne.s32.totalorder %v1743_v26, 0 }
 0x131   :  { %2092 = vbcast.lane.b32.xlu1 %v2090_v13, 256  ;;  %v1202_v12 = vadd.f32 %v1186_v15, %v1054_v55  ;;  %vm8149_vm8 = vcmp.eq.s32.totalorder %v1443_v41, 1  ;;  %v1334_v8 = vsel %vm1314_vm7, %v6813_v59, 0.0  ;;  %v8162_v13 = vpop.permute.xlu0 %2324  ;;  %vm8168_vm12 = vcmp.eq.s32.totalorder %v1805_v34, %v7976_v22 }
 0x132   :  { %2791 = vbcast.lane.b32.xlu0 %v2789_v14, 256  ;;  %v1482_v43 = vsel %vm8149_vm8, %v6917_v33, 0.0  ;;  %v2234_v14 = vrot.slane %v7712_v20, %v9586_v50  ;;  %vm1610_vm3 = vcmp.eq.s32.totalorder %v1591_v9, 1  ;;  %v1856_v45 = vsel %vm1840_vm9, 1, %v9333_v60 }
 0x133   :  { %v1350_v15 = vadd.f32 %v1334_v8, %v1202_v12  ;;  %v1630_v55 = vsel %vm1610_vm3, %v6999_v6, 0.0  ;;  %v1917_v41 = vrot.slane %v1856_v45, %v5937_v27  ;;  %v8176_v30 = vcombine.high %v7957_v16, %v7957_v16  ;;  %v8182_v12 = vpop.permute.xlu1 %2461 }
 0x134   :  { %v2933_v26 = vrot.slane %v7429_v58, %v9686_v51  ;;  %v2371_v34 = vrot.slane %v7786_v1, %v5937_v27  ;;  %vm9728_vm11 = vcmp.ne.s32.totalorder %v6952_v18, 0 }
 0x135   :  { %2798 = vbcast.lane.b32.xlu1 %v2796_v44, 256  ;;  %v1498_v54 = vadd.f32 %v1482_v43, %v1350_v15  ;;  %v8184_v9 = vpop.permute.xlu0 %2468  ;;  %vm1936_vm5 = vcmp.eq.s32.totalorder %v1917_v41, 1  ;;  %vm478_vm4 = vcmp.eq.s32.totalorder %v8176_v30, 0  ;;  %vm627_vm10 = vcmp.eq.s32.totalorder %v8176_v30, 1 }
 0x136   :  { %2236 = vbcast.lane.b32.xlu0 %v2234_v14, 256  ;;  %9727 = vst [vmem:[#allocation10_spill] sm:$0xff] %v8184_v9  ;;  %vm1952_vm0 = vmand %vm8168_vm12, %vm1936_vm5  ;;  %v494_v16 = vsel %vm478_vm4, 1, %v9333_v60  ;;  %v643_v44 = vsel %vm627_vm10, 1, %v9333_v60  ;;  %v2940_v43 = vrot.slane %v7429_v58, %v7141_v32  ;;  %vm775_vm13 = vcmp.eq.s32.totalorder %v8176_v30, 2 }
 0x137   :  { %v1646_v8 = vadd.f32 %v1630_v55, %v1498_v54  ;;  %vm1974_vm1 = vmand %vm1952_vm0, %vm9728_vm11  ;;  %v558_v14 = vrot.slane %v494_v16, %v5937_v27  ;;  %v707_v15 = vrot.slane %v643_v44, %v5937_v27  ;;  %v2378_v55 = vrot.slane %v7786_v1, %v9586_v50  ;;  %v8204_v54 = vpop.permute.xlu1 %2605 }
 0x138   :  { %v5455_v24 = vsel %vm1974_vm1, 1.0, %v9342_v2  ;;  %v791_v45 = vsel %vm775_vm13, 1, %v9333_v60  ;;  %vm923_vm15 = vcmp.eq.s32.totalorder %v8176_v30, 3  ;;  %v3077_v9 = vrot.slane %v7546_v25, %v9686_v51 }
 0x139   :  { %2935 = vbcast.lane.b32.xlu1 %v2933_v26, 256  ;;  %v8206_v58 = vpop.permute.xlu0 %2612  ;;  %v8208_v41 = vmul.f32 %v5455_v24, %v1646_v8  ;;  %vm574_vm14 = vcmp.eq.s32.totalorder %v558_v14, 1  ;;  %vm723_vm6 = vcmp.eq.s32.totalorder %v707_v15, 1  ;;  %v855_v26 = vrot.slane %v791_v45, %v5937_v27 }
 0x13a   :  { %2373 = vbcast.lane.b32.xlu0 %v2371_v34, 256  ;;  %9729 = vst [vmem:[#allocation16_spill] sm:$0xff] %v8206_v58  ;;  %v595_v34 = vsel %vm574_vm14, %v6599_v38, 0.0  ;;  %v743_v16 = vsel %vm723_vm6, %v6711_v0, 0.0  ;;  %v2515_v58 = vrot.slane %v7868_v48, %v5937_v27  ;;  %v939_v14 = vsel %vm923_vm15, 1, %v9333_v60 }
 0x13b   :  { %v759_v44 = vadd.f32 %v743_v16, %v595_v34  ;;  %vm871_vm2 = vcmp.eq.s32.totalorder %v855_v26, 1  ;;  %v8221_v15 = vpop.permute.xlu1 %2043  ;;  %vm1071_vm7 = vcmp.eq.s32.totalorder %v8176_v30, 4  ;;  %vm1219_vm8 = vcmp.eq.s32.totalorder %v8176_v30, 5 }
 0x13c   :  { %v891_v8 = vsel %vm871_vm2, %v6597_v47, 0.0  ;;  %9730 = vst [vmem:[#allocation11_spill] sm:$0xff] %v8221_v15  ;;  %v2522_v47 = vrot.slane %v7868_v48, %v9586_v50  ;;  %v1087_v24 = vsel %vm1071_vm7, 1, %v9333_v60  ;;  %v1235_v45 = vsel %vm1219_vm8, 1, %v9333_v60 }
 0x13d   :  { %2942 = vbcast.lane.b32.xlu1 %v2940_v43, 256  ;;  %v8223_v38 = vpop.permute.xlu0 %2187  ;;  %v907_v0 = vadd.f32 %v891_v8, %v759_v44  ;;  %v1003_v43 = vrot.slane %v939_v14, %v5937_v27  ;;  %v1151_v26 = vrot.slane %v1087_v24, %v5937_v27  ;;  %v1299_v34 = vrot.slane %v1235_v45, %v5937_v27 }
 0x13e   :  { %2380 = vbcast.lane.b32.xlu0 %v2378_v55, 256  ;;  %9731 = vst [vmem:[#allocation22_spill] sm:$0xff] %v8223_v38  ;;  %v3084_v55 = vrot.slane %v7546_v25, %v7141_v32  ;;  %vm1367_vm9 = vcmp.eq.s32.totalorder %v8176_v30, 6  ;;  %vm1515_vm12 = vcmp.eq.s32.totalorder %v8176_v30, 7  ;;  %v1745_v44 = vcombine.high %v8025_v61, %v8025_v61 }
 0x13f   :  { %vm1019_vm3 = vcmp.eq.s32.totalorder %v1003_v43, 1  ;;  %v1383_v25 = vsel %vm1367_vm9, 1, %v9333_v60  ;;  %v8242_v8 = vpop.permute.xlu1 %2749  ;;  %vm1167_vm5 = vcmp.eq.s32.totalorder %v1151_v26, 1  ;;  %vm8246_vm4 = vcmp.eq.s32.totalorder %v1299_v34, 1 }
 0x140   :  { %v1039_v16 = vsel %vm1019_vm3, %v6709_v5, 0.0  ;;  %v1447_v43 = vrot.slane %v1383_v25, %v5937_v27  ;;  %v1187_v5 = vsel %vm1167_vm5, %v6811_v29, 0.0  ;;  %v1335_v30 = vsel %vm8246_vm4, %v6813_v59, 0.0 }
 0x141   :  { %3079 = vbcast.lane.b32.xlu1 %v3077_v9, 256  ;;  %v8244_v9 = vpop.permute.xlu0 %2050  ;;  %v1809_v45 = vrot.slane %v1745_v44, %v5937_v27  ;;  %vm1841_vm0 = vcmp.ne.s32.totalorder %v1745_v44, 0  ;;  %vm9739_vm14 = vcmp.ne.s32.totalorder %v6952_v18, 0  ;;  %vm3810_vm2 = vcmask 1043456  }
 0x142   :  { %2517 = vbcast.lane.b32.xlu0 %v2515_v58, 256  ;;  %v1055_v58 = vadd.f32 %v1039_v16, %v907_v0  ;;  %vm8255_vm10 = vcmp.eq.s32.totalorder %v1447_v43, 1  ;;  %v1531_v0 = vsel %vm1515_vm12, 1, %v9333_v60  ;;  %v1857_v25 = vsel %vm1841_vm0, 1, %v9333_v60 }
 0x143   :  { %v1483_v26 = vsel %vm8255_vm10, %v6917_v33, 0.0  ;;  %v1595_v29 = vrot.slane %v1531_v0, %v5937_v27  ;;  %v8265_v34 = vpop.permute.xlu1 %2194  ;;  %vm8275_vm1 = vcmp.eq.s32.totalorder %v1809_v45, %v7976_v22  ;;  %v1921_v44 = vrot.slane %v1857_v25, %v5937_v27 }
 0x144   :  { %v1203_v61 = vadd.f32 %v1187_v5, %v1055_v58  ;;  %v5820_v58 = vmov 1983009808   ;;  %v2241_v60 = vrot.slane %v7712_v20, %v9622_v37  ;;  %v2097_v22 = vrot.slane %v7714_v42, %v9622_v37 }
 0x145   :  { %3086 = vbcast.lane.b32.xlu1 %v3084_v55, 256  ;;  %v8267_v59 = vpop.permute.xlu0 %2756  ;;  %v2666_v55 = vrot.slane %v8011_v52, %v9586_v50  ;;  %vm1611_vm11 = vcmp.eq.s32.totalorder %v1595_v29, 1  ;;  %v91_v14 = vunpack.c.l.s4 %v5820_v58  ;;  %vm1937_vm13 = vcmp.eq.s32.totalorder %v1921_v44, 1 }
 0x146   :  { %2524 = vbcast.lane.b32.xlu0 %v2522_v47, 256  ;;  %v2659_v47 = vrot.slane %v8011_v52, %v5937_v27  ;;  %v1351_v16 = vadd.f32 %v1335_v30, %v1203_v61  ;;  %v1631_v5 = vsel %vm1611_vm11, %v6999_v6, 0.0  ;;  %vm1953_vm15 = vmand %vm8275_vm1, %vm1937_vm13  ;;  %v5821_v25 = vmov 1934713408  }
 0x147   :  { %v8281_v24 = vpop.permute.xlu1 %2331  ;;  %vm1975_vm6 = vmand %vm1953_vm15, %vm9739_vm14  ;;  %v92_v0 = vunpack.c.0.s8 %v91_v14  ;;  %v155_v33 = vunpack.c.l.s4 %v5821_v25  ;;  %v104_v58 = vcombine.low %v7825_v53, %v7860_v57  ;;  %v120_v14 = vcombine.low %v7858_v4, %v7901_v7 }
 0x148   :  { %v1499_v43 = vadd.f32 %v1483_v26, %v1351_v16  ;;  %9738 = vst [vmem:[#allocation17_spill] sm:$0xff] %v8281_v24  ;;  %v5456_v6 = vsel %vm1975_vm6, 1.0, %v9342_v2  ;;  %v9740_v16 = vld [vmem:[#allocation2_spill] sm:$0xff]  ;;  %v105_v24 = vcombine.high %v7825_v53, %v7860_v57  ;;  %vm3761_vm7 = vcmask 64512  }
 0x149   :  { %2668 = vbcast.lane.b32.xlu1 %v2666_v55, 256  ;;  %v8283_v30 = vpop.permute.xlu0 %2893  ;;  %v2104_v55 = vrot.slane %v7714_v42, %v9624_v39  ;;  %v8305_v18 = vsub.s32 %v92_v0, %v9740_v16  ;;  %v5801_v2 = vld [vmem:[%s9245_s0] sm:$0xff]  ;;  %v156_v0 = vunpack.c.0.s8 %v155_v33  ;;  %v2947_v33 = vrot.slane %v8208_v41, %v5937_v27 }
 0x14a   :  { %2661 = vbcast.lane.b32.xlu0 %v2659_v47, 256  ;;  %v1647_v61 = vadd.f32 %v1631_v5, %v1499_v43  ;;  %v2803_v47 = vrot.slane %v8102_v11, %v5937_v27  ;;  %v88_v44 = vcombine.low %v5801_v2, %v7823_v62  ;;  %v136_v43 = vcombine.low %v7903_v28, %v7961_v10 }
 0x14b   :  { %v8296_v26 = vpop.permute.xlu1 %2338  ;;  %vm4036_vm8 = vcmask 261120   ;;  %vm4792_vm3 = vcmask 130048   ;;  %vm5420_vm9 = vcmask 392192   ;;  %vm5423_vm12 = vcmask 523264  }
 0x14c   :  { %v8294_v45 = vmul.f32 %v5456_v6, %v1647_v61  ;;  %v2248_v61 = vrot.slane %v7712_v20, %v9624_v39  ;;  %v96_v6 = vrot.slane %v88_v44, %v8305_v18  ;;  %v144_v25 = vrot.slane %v136_v43, %v8305_v18 }
 0x14d   :  { %2243 = vbcast.lane.b32.xlu1 %v2241_v60, 256  ;;  %v8298_v29 = vpop.permute.xlu0 %2900  ;;  %v2385_v44 = vrot.slane %v7786_v1, %v9622_v37  ;;  %v119_v43 = vrot.slane %v105_v24, %v8305_v18  ;;  %vm5426_vm5 = vcmask 654336   ;;  %vm5429_vm4 = vcmask 785408  }
 0x14e   :  { %2099 = vbcast.lane.b32.xlu0 %v2097_v22, 256  ;;  %v2810_v22 = vrot.slane %v8102_v11, %v9586_v50  ;;  %vm5432_vm10 = vcmask 916480  }
 0x14f   :  { %v8317_v5 = vpop.permute.xlu1 %2475 }
 0x150   :  { %9741 = vst [vmem:[#allocation6_spill] sm:$0xff] %v8317_v5  ;;  %v89_v5 = vcombine.high %v5801_v2, %v7823_v62  ;;  %v8343_v62 = vsub.s32 %v156_v0, %v9740_v16 }
 0x151   :  { %2106 = vbcast.lane.b32.xlu1 %v2104_v55, 256  ;;  %v8319_v60 = vpop.permute.xlu0 %3037  ;;  %v112_v55 = vrot.slane %v104_v58, %v8305_v18  ;;  %v121_v58 = vcombine.high %v7858_v4, %v7901_v7  ;;  %v2954_v4 = vrot.slane %v8208_v41, %v9586_v50  ;;  %v2392_v7 = vrot.slane %v7786_v1, %v9624_v39 }
 0x152   :  { %2805 = vbcast.lane.b32.xlu0 %v2803_v47, 256  ;;  %v128_v47 = vrot.slane %v120_v14, %v8305_v18  ;;  %v137_v14 = vcombine.high %v7903_v28, %v7961_v10  ;;  %v103_v2 = vrot.slane %v89_v5, %v8305_v18 }
 0x153   :  { %v2483_v38 = vpop.permute.xlu1 %2482  ;;  %v152_v53 = vcombine.low %v96_v6, %v112_v55  ;;  %v153_v28 = vcombine.high %v96_v6, %v112_v55  ;;  %v135_v10 = vrot.slane %v121_v58, %v8305_v18  ;;  %v2529_v6 = vrot.slane %v7868_v48, %v9622_v37 }
 0x154   :  { %v184_v57 = vcombine.low %v128_v47, %v144_v25  ;;  %v151_v16 = vrot.slane %v137_v14, %v8305_v18  ;;  %v185_v0 = vcombine.high %v128_v47, %v144_v25 }
 0x155   :  { %2812 = vbcast.lane.b32.xlu1 %v2810_v22, 256  ;;  %v8332_v15 = vpop.permute.xlu0 %3044  ;;  %v160_v5 = vrot.slane %v152_v53, %v8343_v62  ;;  %v167_v55 = vrot.slane %v153_v28, %v8343_v62 }
 0x156   :  { %2250 = vbcast.lane.b32.xlu0 %v2248_v61, 256  ;;  %9742 = vst [vmem:[#allocation7_spill] sm:$0xff] %v8332_v15  ;;  %v192_v24 = vrot.slane %v184_v57, %v8343_v62  ;;  %v3091_v15 = vrot.slane %v8294_v45, %v5937_v27  ;;  %v199_v47 = vrot.slane %v185_v0, %v8343_v62 }
 0x157   :  { %v8347_v22 = vpop.permute.xlu1 %2619  ;;  %v200_v25 = vcombine.low %v135_v10, %v151_v16  ;;  %v3098_v27 = vrot.slane %v8294_v45, %v9586_v50 }
 0x158   :  { %9743 = vst [vmem:[#allocation23_spill] sm:$0xff] %v8347_v22  ;;  %v8367_v58 = vcombine.high %v160_v5, %v192_v24  ;;  %v8377_v28 = vcombine.low %v160_v5, %v192_v24  ;;  %v8379_v0 = vcombine.low %v167_v55, %v199_v47  ;;  %v2680_v24 = vrot.slane %v8011_v52, %v9624_v39 }
 0x159   :  { %2949 = vbcast.lane.b32.xlu1 %v2947_v33, 256  ;;  %v2627_v61 = vpop.permute.xlu0 %2626  ;;  %v168_v33 = vcombine.low %v103_v2, %v119_v43 }
 0x15a   :  { %2387 = vbcast.lane.b32.xlu0 %v2385_v44, 256  ;;  %v2139_v50 = vmul.f32 %v8244_v9, %v8377_v28 }
 0x15b   :  { %v8357_v44 = vpop.permute.xlu1 %2057  ;;  %v176_v14 = vrot.slane %v168_v33, %v8343_v62  ;;  %v201_v33 = vcombine.high %v135_v10, %v151_v16 }
 0x15d   :  { %2956 = vbcast.lane.b32.xlu1 %v2954_v4, 256  ;;  %v8359_v22 = vpop.permute.xlu0 %2201  ;;  %v2536_v4 = vrot.slane %v7868_v48, %v9624_v39  ;;  %v215_v9 = vrot.slane %v201_v33, %v8343_v62 }
 0x15e   :  { %2394 = vbcast.lane.b32.xlu0 %v2392_v7, 256  ;;  %9744 = vst [vmem:[#allocation18_spill] sm:$0xff] %v8359_v22  ;;  %v208_v7 = vrot.slane %v200_v25, %v8343_v62  ;;  %v2427_v22 = vmul.f32 %v8296_v26, %v8379_v0 }
 0x15f   :  { %v8370_v53 = vpop.permute.xlu1 %2763 }
 0x160   :  { %9745 = vst [vmem:[#allocation24_spill] sm:$0xff] %v8370_v53  ;;  %v8383_v53 = vcombine.high %v167_v55, %v199_v47  ;;  %v8398_v26 = vcombine.high %v176_v14, %v208_v7 }
 0x161   :  { %3093 = vbcast.lane.b32.xlu1 %v3091_v15, 256  ;;  %v2283_v15 = vmul.f32 %v8265_v34, %v8367_v58  ;;  %v2673_v34 = vrot.slane %v8011_v52, %v9622_v37 }
 0x162   :  { %2531 = vbcast.lane.b32.xlu0 %v2529_v6, 256  ;;  %v2065_v57 = vpop.permute.xlu0 %2064  ;;  %v169_v6 = vcombine.high %v103_v2, %v119_v43  ;;  %v8393_v2 = vcombine.low %v176_v14, %v208_v7  ;;  %v2571_v10 = vmul.f32 %v2483_v38, %v8383_v53  ;;  %v2111_v38 = vrot.slane %v7714_v42, %v9673_v63 }
 0x163   :  { %v2209_v25 = vpop.permute.xlu1 %2208  ;;  %v2299_v43 = vadd.f32 %v2283_v15, %v2139_v50  ;;  %v2255_v15 = vrot.slane %v7712_v20, %v9673_v63  ;;  %v2141_v14 = vmul.f32 %v2065_v57, %v8377_v28 }
 0x164   :  { %v183_v16 = vrot.slane %v169_v6, %v8343_v62  ;;  %v2715_v47 = vmul.f32 %v2627_v61, %v8393_v2  ;;  %v2285_v50 = vmul.f32 %v2209_v25, %v8367_v58 }
 0x165   :  { %3100 = vbcast.lane.b32.xlu1 %v3098_v27, 256  ;;  %v2443_v55 = vadd.f32 %v2427_v22, %v2299_v43  ;;  %v2817_v43 = vrot.slane %v8102_v11, %v9622_v37 }
 0x166   :  { %2538 = vbcast.lane.b32.xlu0 %v2536_v4, 256  ;;  %v2771_v5 = vpop.permute.xlu0 %2770  ;;  %v8411_v22 = vcombine.low %v183_v16, %v215_v9 }
 0x167   :  { %v2587_v6 = vadd.f32 %v2571_v10, %v2443_v55  ;;  %v2859_v33 = vmul.f32 %v2771_v5, %v8398_v26  ;;  %v2301_v10 = vadd.f32 %v2285_v50, %v2141_v14  ;;  %v8428_v50 = vcombine.high %v183_v16, %v215_v9 }
 0x168   :  { %v2961_v14 = vrot.slane %v8208_v41, %v9622_v37 }
 0x169   :  { %2682 = vbcast.lane.b32.xlu1 %v2680_v24, 256  ;;  %v2731_v61 = vadd.f32 %v2715_v47, %v2587_v6  ;;  %v2824_v6 = vrot.slane %v8102_v11, %v9624_v39 }
 0x16a   :  { %2675 = vbcast.lane.b32.xlu0 %v2673_v34, 256  ;;  %v8403_v4 = vpop.permute.xlu0 %2907  ;;  %v2118_v34 = vrot.slane %v7714_v42, %v9674_v31 }
 0x16b   :  { %v8401_v27 = vpop.permute.xlu1 %2345  ;;  %9746 = vst [vmem:[#allocation19_spill] sm:$0xff] %v8403_v4  ;;  %v2875_v55 = vadd.f32 %v2859_v33, %v2731_v61  ;;  %v2262_v4 = vrot.slane %v7712_v20, %v9674_v31 }
 0x16d   :  { %2257 = vbcast.lane.b32.xlu1 %v2255_v15, 256 }
 0x16e   :  { %2113 = vbcast.lane.b32.xlu0 %v2111_v38, 256  ;;  %v2915_v24 = vpop.permute.xlu0 %2914 }
 0x16f   :  { %v2353_v7 = vpop.permute.xlu1 %2352  ;;  %v3003_v5 = vmul.f32 %v2915_v24, %v8411_v22 }
 0x170   :  { %v2429_v25 = vmul.f32 %v2353_v7, %v8379_v0  ;;  %v2399_v7 = vrot.slane %v7786_v1, %v9673_v63 }
 0x171   :  { %2120 = vbcast.lane.b32.xlu1 %v2118_v34, 256  ;;  %v3019_v47 = vadd.f32 %v3003_v5, %v2875_v55  ;;  %v2406_v55 = vrot.slane %v7786_v1, %v9674_v31 }
 0x172   :  { %2819 = vbcast.lane.b32.xlu0 %v2817_v43, 256  ;;  %v2445_v15 = vadd.f32 %v2429_v25, %v2301_v10  ;;  %v8422_v57 = vpop.permute.xlu0 %3051 }
 0x173   :  { %v8420_v38 = vpop.permute.xlu1 %2489  ;;  %9747 = vst [vmem:[#allocation5_spill] sm:$0xff] %v8422_v57 }
 0x175   :  { %2826 = vbcast.lane.b32.xlu1 %v2824_v6, 256 }
 0x176   :  { %2264 = vbcast.lane.b32.xlu0 %v2262_v4, 256  ;;  %v3059_v61 = vpop.permute.xlu0 %3058  ;;  %v2968_v4 = vrot.slane %v8208_v41, %v9624_v39 }
 0x177   :  { %v2497_v33 = vpop.permute.xlu1 %2496  ;;  %v3147_v34 = vmul.f32 %v3059_v61, %v8428_v50  ;;  %v3112_v61 = vrot.slane %v8294_v45, %v9624_v39 }
 0x178   :  { %v2573_v24 = vmul.f32 %v2497_v33, %v8383_v53 }
 0x179   :  { %2963 = vbcast.lane.b32.xlu1 %v2961_v14, 256  ;;  %v8438_v10 = vadd.f32 %v3147_v34, %v3019_v47  ;;  %v2543_v47 = vrot.slane %v7868_v48, %v9673_v63  ;;  %v2550_v14 = vrot.slane %v7868_v48, %v9674_v31  ;;  %v2687_v34 = vrot.slane %v8011_v52, %v9673_v63 }
 0x17a   :  { %2401 = vbcast.lane.b32.xlu0 %v2399_v7, 256  ;;  %v8436_v43 = vadd.f32 %v2573_v24, %v2445_v15  ;;  %v8442_v9 = vpop.permute.xlu0 %2633  ;;  %v3105_v15 = vrot.slane %v8294_v45, %v9622_v37  ;;  %v2694_v24 = vrot.slane %v8011_v52, %v9674_v31 }
 0x17b   :  { %9748 = vst [vmem:[#allocation8_spill] sm:$0xff] %v8438_v10  ;;  %v8440_v16 = vpop.permute.xlu1 %2640 }
 0x17d   :  { %2970 = vbcast.lane.b32.xlu1 %v2968_v4, 256 }
 0x17e   :  { %2408 = vbcast.lane.b32.xlu0 %v2406_v55, 256  ;;  %v8450_v5 = vpop.permute.xlu0 %2071  ;;  %v2269_v55 = vrot.slane %v7712_v20, %v9686_v51 }
 0x17f   :  { %v8448_v25 = vpop.permute.xlu1 %2215 }
 0x181   :  { %3107 = vbcast.lane.b32.xlu1 %v3105_v15, 256  ;;  %v2125_v15 = vrot.slane %v7714_v42, %v9686_v51 }
 0x182   :  { %2545 = vbcast.lane.b32.xlu0 %v2543_v47, 256  ;;  %v8458_v33 = vpop.permute.xlu0 %2777 }
 0x183   :  { %v8456_v6 = vpop.permute.xlu1 %2078 }
 0x185   :  { %3114 = vbcast.lane.b32.xlu1 %v3112_v61, 256 }
 0x186   :  { %2552 = vbcast.lane.b32.xlu0 %v2550_v14, 256  ;;  %v8466_v37 = vpop.permute.xlu0 %2222  ;;  %v2132_v14 = vrot.slane %v7714_v42, %v7141_v32 }
 0x187   :  { %v8464_v7 = vpop.permute.xlu1 %2784 }
 0x189   :  { %2696 = vbcast.lane.b32.xlu1 %v2694_v24, 256  ;;  %v2831_v24 = vrot.slane %v8102_v11, %v9673_v63 }
 0x18a   :  { %2689 = vbcast.lane.b32.xlu0 %v2687_v34, 256  ;;  %v8474_v39 = vpop.permute.xlu0 %2359 }
 0x18b   :  { %v8472_v4 = vpop.permute.xlu1 %2921 }
 0x18c   :  { %9749 = vst [vmem:[#allocation25_spill] sm:$0xff] %v8472_v4 }
 0x18d   :  { %2271 = vbcast.lane.b32.xlu1 %v2269_v55, 256  ;;  %v2838_v55 = vrot.slane %v8102_v11, %v9674_v31 }
 0x18e   :  { %2127 = vbcast.lane.b32.xlu0 %v2125_v15, 256  ;;  %v8482_v61 = vpop.permute.xlu0 %2366  ;;  %v2276_v15 = vrot.slane %v7712_v20, %v7141_v32  ;;  %v2982_v20 = vrot.slane %v8208_v41, %v9674_v31 }
 0x18f   :  { %v8480_v47 = vpop.permute.xlu1 %2928 }
 0x191   :  { %2134 = vbcast.lane.b32.xlu1 %v2132_v14, 256  ;;  %v2975_v14 = vrot.slane %v8208_v41, %v9673_v63 }
 0x192   :  { %2833 = vbcast.lane.b32.xlu0 %v2831_v24, 256  ;;  %v8490_v10 = vpop.permute.xlu0 %2503  ;;  %v2413_v24 = vrot.slane %v7786_v1, %v9686_v51 }
 0x193   :  { %v8488_v34 = vpop.permute.xlu1 %3065  ;;  %9751 = vst [vmem:[#allocation26_spill] sm:$0xff] %v8490_v10 }
 0x194   :  { %9750 = vst [vmem:[#allocation12_spill] sm:$0xff] %v8488_v34 }
 0x195   :  { %2840 = vbcast.lane.b32.xlu1 %v2838_v55, 256  ;;  %v2420_v55 = vrot.slane %v7786_v1, %v7141_v32  ;;  %v5802_v1 = vld [vmem:[%s9245_s0 + $0x8] sm:$0xff] }
 0x196   :  { %2278 = vbcast.lane.b32.xlu0 %v2276_v15, 256  ;;  %v8498_v42 = vpop.permute.xlu0 %2510 }
 0x197   :  { %v8496_v57 = vpop.permute.xlu1 %3072  ;;  %9753 = vst [vmem:[#allocation20_spill] sm:$0xff] %v8498_v42 }
 0x198   :  { %9752 = vst [vmem:[#allocation27_spill] sm:$0xff] %v8496_v57 }
 0x199   :  { %2977 = vbcast.lane.b32.xlu1 %v2975_v14, 256  ;;  %v3119_v14 = vrot.slane %v8294_v45, %v9673_v63  ;;  %v3126_v63 = vrot.slane %v8294_v45, %v9674_v31  ;;  %v2280_v31 = vmul.f32 %v8110_v36, %v8367_v58  ;;  %v2137_v36 = vmul.f32 %v8140_v19, %v8377_v28 }
 0x19a   :  { %2415 = vbcast.lane.b32.xlu0 %v2413_v24, 256  ;;  %v2557_v24 = vrot.slane %v7868_v48, %v9686_v51 }
 0x19b   :  { %v8504_v34 = vpop.permute.xlu1 %2654 }
 0x19c   :  { %9754 = vst [vmem:[#allocation29_spill] sm:$0xff] %v8504_v34  ;;  %v8506_v10 = vpop.permute.xlu0 %2647 }
 0x19d   :  { %9755 = vst [vmem:[#allocation30_spill] sm:$0xff] %v8506_v10  ;;  %2984 = vbcast.lane.b32.xlu1 %v2982_v20, 256  ;;  %v240_v10 = vcombine.low %v7959_v46, %v7997_v17  ;;  %v224_v20 = vcombine.low %v5802_v1, %v7999_v23 }
 0x19e   :  { %2422 = vbcast.lane.b32.xlu0 %v2420_v55, 256 }
 0x19f   :  { %v8512_v15 = vpop.permute.xlu1 %2229  ;;  %v8538_v34 = vrot.slane %v240_v10, %v8305_v18  ;;  %v2708_v10 = vrot.slane %v8011_v52, %v7141_v32 }
 0x1a0   :  { %9756 = vst [vmem:[#allocation31_spill] sm:$0xff] %v8512_v15  ;;  %v8514_v57 = vpop.permute.xlu0 %2085  ;;  %v225_v15 = vcombine.high %v5802_v1, %v7999_v23 }
 0x1a1   :  { %9757 = vst [vmem:[#allocation13_spill] sm:$0xff] %v8514_v57  ;;  %3121 = vbcast.lane.b32.xlu1 %v3119_v14, 256  ;;  %v2564_v14 = vrot.slane %v7868_v48, %v7141_v32  ;;  %v272_v48 = vcombine.low %v8030_v49, %v8074_v56 }
 0x1a2   :  { %2559 = vbcast.lane.b32.xlu0 %v2557_v24, 256  ;;  %v241_v24 = vcombine.high %v7959_v46, %v7997_v17  ;;  %v9760_v46 = vld [vmem:[#allocation21_spill] sm:$0xff] }
 0x1a3   :  { %v8526_v55 = vpop.permute.xlu1 %2092  ;;  %v256_v17 = vcombine.low %v9760_v46, %v8076_v3 }
 0x1a4   :  { %9758 = vst [vmem:[#allocation28_spill] sm:$0xff] %v8526_v55  ;;  %v8528_v57 = vpop.permute.xlu0 %2791  ;;  %v8541_v55 = vrot.slane %v224_v20, %v8305_v18  ;;  %v2701_v20 = vrot.slane %v8011_v52, %v9686_v51  ;;  %v257_v52 = vcombine.high %v9760_v46, %v8076_v3  ;;  %v2852_v3 = vrot.slane %v8102_v11, %v7141_v32 }
 0x1a5   :  { %9759 = vst [vmem:[#allocation15_spill] sm:$0xff] %v8528_v57  ;;  %3128 = vbcast.lane.b32.xlu1 %v3126_v63, 256  ;;  %v2136_v57 = vmul.f32 %v8108_v21, %v8377_v28  ;;  %v8560_v21 = vrot.slane %v241_v24, %v8305_v18  ;;  %v2281_v63 = vmul.f32 %v8142_v40, %v8367_v58 }
 0x1a6   :  { %2566 = vbcast.lane.b32.xlu0 %v2564_v14, 256  ;;  %v2424_v14 = vmul.f32 %v8160_v35, %v8379_v0  ;;  %v288_v19 = vcombine.low %v8541_v55, %v8538_v34  ;;  %v2425_v40 = vmul.f32 %v8162_v13, %v8379_v0  ;;  %v2568_v35 = vmul.f32 %v8182_v12, %v8383_v53  ;;  %v9765_v13 = vld [vmem:[#allocation10_spill] sm:$0xff] }
 0x1a7   :  { %v8551_v23 = vpop.permute.xlu1 %2798  ;;  %v2296_v24 = vadd.f32 %v2280_v31, %v2136_v57  ;;  %v264_v4 = vrot.slane %v256_v17, %v8305_v18  ;;  %v2845_v57 = vrot.slane %v8102_v11, %v9686_v51  ;;  %v2297_v31 = vadd.f32 %v2281_v63, %v2137_v36 }
 0x1a8   :  { %9761 = vst [vmem:[#allocation32_spill] sm:$0xff] %v8551_v23  ;;  %v8553_v1 = vpop.permute.xlu0 %2236  ;;  %v273_v23 = vcombine.high %v8030_v49, %v8074_v56  ;;  %v2712_v12 = vmul.f32 %v8204_v54, %v8393_v2  ;;  %v271_v17 = vrot.slane %v257_v52, %v8305_v18  ;;  %v2856_v11 = vmul.f32 %v8242_v8, %v8398_v26 }
 0x1a9   :  { %9762 = vst [vmem:[#allocation33_spill] sm:$0xff] %v8553_v1  ;;  %v8569_v1 = vrot.slane %v225_v15, %v8305_v18  ;;  %2710 = vbcast.lane.b32.xlu1 %v2708_v10, 256  ;;  %v280_v15 = vrot.slane %v272_v48, %v8305_v18  ;;  %v2440_v46 = vadd.f32 %v2424_v14, %v2296_v24 }
 0x1aa   :  { %2703 = vbcast.lane.b32.xlu0 %v2701_v20, 256  ;;  %v2569_v10 = vmul.f32 %v9765_v13, %v8383_v53  ;;  %v287_v48 = vrot.slane %v273_v23, %v8305_v18  ;;  %v2441_v20 = vadd.f32 %v2425_v40, %v2297_v31  ;;  %v289_v36 = vcombine.high %v8541_v55, %v8538_v34 }
 0x1ab   :  { %v8583_v49 = vpop.permute.xlu1 %2935  ;;  %v296_v63 = vrot.slane %v288_v19, %v8343_v62  ;;  %v2996_v14 = vrot.slane %v8208_v41, %v7141_v32  ;;  %v2989_v52 = vrot.slane %v8208_v41, %v9686_v51  ;;  %v304_v24 = vcombine.low %v8569_v1, %v8560_v21 }
 0x1ac   :  { %9763 = vst [vmem:[#allocation34_spill] sm:$0xff] %v8583_v49  ;;  %v8585_v56 = vpop.permute.xlu0 %2373  ;;  %v2584_v49 = vadd.f32 %v2568_v35, %v2440_v46  ;;  %v320_v40 = vcombine.low %v264_v4, %v280_v15  ;;  %v2585_v8 = vadd.f32 %v2569_v10, %v2441_v20  ;;  %v305_v34 = vcombine.high %v8569_v1, %v8560_v21  ;;  %v9767_v21 = vld [vmem:[#allocation11_spill] sm:$0xff] }
 0x1ad   :  { %9764 = vst [vmem:[#allocation35_spill] sm:$0xff] %v8585_v56  ;;  %2854 = vbcast.lane.b32.xlu1 %v2852_v3, 256  ;;  %v9766_v56 = vld [vmem:[#allocation16_spill] sm:$0xff]  ;;  %v2857_v55 = vmul.f32 %v8267_v59, %v8398_v26  ;;  %v3000_v19 = vmul.f32 %v8283_v30, %v8411_v22  ;;  %v336_v3 = vcombine.low %v271_v17, %v287_v48 }
 0x1ae   :  { %2847 = vbcast.lane.b32.xlu0 %v2845_v57, 256  ;;  %v2713_v42 = vmul.f32 %v9766_v56, %v8393_v2  ;;  %v2728_v35 = vadd.f32 %v2712_v12, %v2584_v49  ;;  %v321_v56 = vcombine.high %v264_v4, %v280_v15  ;;  %v3001_v31 = vmul.f32 %v8298_v29, %v8411_v22  ;;  %v9768_v29 = vld [vmem:[#allocation22_spill] sm:$0xff]  ;;  %v9769_v12 = vld [vmem:[#allocation7_spill] sm:$0xff] }
 0x1af   :  { %v8604_v54 = vpop.permute.xlu1 %2942  ;;  %v3144_v49 = vmul.f32 %v8319_v60, %v8428_v50  ;;  %v3140_v59 = vrot.slane %v8294_v45, %v7141_v32  ;;  %v3133_v30 = vrot.slane %v8294_v45, %v9686_v51  ;;  %v328_v4 = vrot.slane %v320_v40, %v8343_v62 }
 0x1b0   :  { %v8606_v23 = vpop.permute.xlu0 %2380  ;;  %v2729_v41 = vadd.f32 %v2713_v42, %v2585_v8  ;;  %v2872_v57 = vadd.f32 %v2856_v11, %v2728_v35  ;;  %v337_v42 = vcombine.high %v271_v17, %v287_v48  ;;  %v2138_v15 = vmul.f32 %v9767_v21, %v8377_v28  ;;  %v9770_v11 = vld [vmem:[#allocation17_spill] sm:$0xff] }
 0x1b1   :  { %2998 = vbcast.lane.b32.xlu1 %v2996_v14, 256  ;;  %v2282_v13 = vmul.f32 %v9768_v29, %v8367_v58  ;;  %v3145_v20 = vmul.f32 %v9769_v12, %v8428_v50  ;;  %v303_v32 = vrot.slane %v289_v36, %v8343_v62  ;;  %v312_v51 = vrot.slane %v304_v24, %v8343_v62 }
 0x1b2   :  { %2991 = vbcast.lane.b32.xlu0 %v2989_v52, 256  ;;  %v2873_v60 = vadd.f32 %v2857_v55, %v2729_v41  ;;  %v3016_v10 = vadd.f32 %v3000_v19, %v2872_v57  ;;  %v335_v45 = vrot.slane %v321_v56, %v8343_v62  ;;  %v344_v48 = vrot.slane %v336_v3, %v8343_v62  ;;  %v9771_v19 = vld [vmem:[#allocation18_spill] sm:$0xff] }
 0x1b3   :  { %v8624_v46 = vpop.permute.xlu1 %3079  ;;  %v319_v17 = vrot.slane %v305_v34, %v8343_v62  ;;  %v2426_v14 = vmul.f32 %v9770_v11, %v8379_v0  ;;  %v351_v55 = vrot.slane %v337_v42, %v8343_v62  ;;  %v8651_v36 = vcombine.low %v296_v63, %v328_v4  ;;  %v9772_v41 = vld [vmem:[#allocation6_spill] sm:$0xff] }
 0x1b4   :  { %v8626_v1 = vpop.permute.xlu0 %2517  ;;  %v3017_v52 = vadd.f32 %v3001_v31, %v2873_v60  ;;  %v3160_v40 = vadd.f32 %v3144_v49, %v3016_v10  ;;  %v2140_v24 = vmul.f32 %v8357_v44, %v8377_v28  ;;  %v2284_v56 = vmul.f32 %v9771_v19, %v8367_v58 }
 0x1b5   :  { %3142 = vbcast.lane.b32.xlu1 %v3140_v59, 256  ;;  %v8657_v34 = vcombine.high %v296_v63, %v328_v4  ;;  %v2298_v3 = vadd.f32 %v2282_v13, %v2138_v15  ;;  %v2570_v57 = vmul.f32 %v9772_v41, %v8383_v53  ;;  %v8661_v49 = vcombine.low %v303_v32, %v335_v45  ;;  %v9773_v63 = vld [vmem:[#allocation23_spill] sm:$0xff] }
 0x1b6   :  { %3135 = vbcast.lane.b32.xlu0 %v3133_v30, 256  ;;  %v3161_v31 = vadd.f32 %v3145_v20, %v3017_v52  ;;  %v8663_v59 = vcombine.high %v303_v32, %v335_v45  ;;  %v8665_v30 = vcombine.low %v312_v51, %v344_v48  ;;  %v2428_v42 = vmul.f32 %v8401_v27, %v8379_v0 }
 0x1b7   :  { %v8646_v8 = vpop.permute.xlu1 %3086  ;;  %v8669_v44 = vcombine.high %v312_v51, %v344_v48  ;;  %v2442_v21 = vadd.f32 %v2426_v14, %v2298_v3  ;;  %v3192_v29 = vmax.f32 %v3160_v40, 0.0  ;;  %v2714_v4 = vmul.f32 %v9773_v63, %v8393_v2  ;;  %v9774_v48 = vld [vmem:[#allocation24_spill] sm:$0xff] }
 0x1b8   :  { %v8648_v35 = vpop.permute.xlu0 %2524  ;;  %v8677_v60 = vcombine.low %v319_v17, %v351_v55  ;;  %v8679_v10 = vcombine.high %v319_v17, %v351_v55  ;;  %v2300_v12 = vadd.f32 %v2284_v56, %v2140_v24  ;;  %v2572_v20 = vmul.f32 %v8420_v38, %v8383_v53 }
 0x1b9   :  { %v2586_v27 = vadd.f32 %v2570_v57, %v2442_v21  ;;  %v3176_v32 = vmul.f32 2.0, %v8377_v28  ;;  %v3177_v51 = vmul.f32 2.0, %v8367_v58  ;;  %v3193_v45 = vmax.f32 %v3161_v31, 0.0 }
 0x1ba   :  { %v2858_v11 = vmul.f32 %v9774_v48, %v8398_v26  ;;  %v2444_v14 = vadd.f32 %v2428_v42, %v2300_v12  ;;  %v2716_v52 = vmul.f32 %v8442_v9, %v8393_v2  ;;  %v8690_v17 = vmul.f32 2.0, %v8398_v26  ;;  %v9779_v48 = vld [vmem:[#allocation27_spill] sm:$0xff] }
 0x1bb   :  { %v8673_v15 = vpop.permute.xlu1 %2668  ;;  %v8692_v40 = vadd.f32 %v3192_v29, %v3176_v32  ;;  %v2730_v55 = vadd.f32 %v2714_v4, %v2586_v27  ;;  %v2717_v38 = vmul.f32 %v8440_v16, %v8393_v2  ;;  %v2287_v24 = vmul.f32 %v8466_v37, %v8367_v58  ;;  %v9777_v27 = vld [vmem:[#allocation25_spill] sm:$0xff] }
 0x1bc   :  { %v8675_v13 = vpop.permute.xlu0 %2661  ;;  %v2588_v3 = vadd.f32 %v2572_v20, %v2444_v14  ;;  %v2286_v9 = vmul.f32 %v8448_v25, %v8367_v58  ;;  %v2142_v41 = vmul.f32 %v8450_v5, %v8377_v28  ;;  %v2860_v57 = vmul.f32 %v8458_v33, %v8398_v26  ;;  %v9775_v58 = vld [vmem:[#allocation19_spill] sm:$0xff] }
 0x1bd   :  { %v8708_v31 = vadd.f32 %v3193_v45, %v3177_v51  ;;  %v2143_v16 = vmul.f32 %v8456_v6, %v8377_v28  ;;  %v2861_v37 = vmul.f32 %v8464_v7, %v8398_v26  ;;  %v2431_v42 = vmul.f32 %v8482_v61, %v8379_v0  ;;  %v9776_v6 = vld [vmem:[#allocation20_spill] sm:$0xff]  ;;  %v9778_v51 = vld [vmem:[#allocation26_spill] sm:$0xff] }
 0x1be   :  { %v2874_v21 = vadd.f32 %v2858_v11, %v2730_v55  ;;  %v3002_v25 = vmul.f32 %v9775_v58, %v8411_v22  ;;  %v2732_v29 = vadd.f32 %v2716_v52, %v2588_v3  ;;  %v2430_v5 = vmul.f32 %v8474_v39, %v8379_v0  ;;  %v9781_v55 = vld [vmem:[#allocation12_spill] sm:$0xff] }
 0x1bf   :  { %v8698_v19 = vpop.permute.xlu1 %2243  ;;  %v2733_v33 = vadd.f32 %v2717_v38, %v8436_v43  ;;  %v2303_v63 = vadd.f32 %v2287_v24, %v2143_v16  ;;  %v3005_v28 = vmul.f32 %v8480_v47, %v8411_v22  ;;  %v2575_v7 = vmul.f32 %v9776_v6, %v8383_v53  ;;  %v9780_v47 = vld [vmem:[#allocation29_spill] sm:$0xff]  ;;  %v9782_v24 = vld [vmem:[#allocation31_spill] sm:$0xff]  ;;  %v9785_v58 = vld [vmem:[#allocation32_spill] sm:$0xff] }
 0x1c0   :  { %v8700_v56 = vpop.permute.xlu0 %2099  ;;  %v2302_v12 = vadd.f32 %v2286_v9, %v2142_v41  ;;  %v2876_v20 = vadd.f32 %v2860_v57, %v2732_v29  ;;  %v3004_v32 = vmul.f32 %v9777_v27, %v8411_v22  ;;  %v2574_v39 = vmul.f32 %v9778_v51, %v8383_v53  ;;  %v9783_v9 = vld [vmem:[#allocation13_spill] sm:$0xff]  ;;  %v9787_v51 = vld [vmem:[#allocation35_spill] sm:$0xff] }
 0x1c1   :  { %v2877_v45 = vadd.f32 %v2861_v37, %v2733_v33  ;;  %v2447_v43 = vadd.f32 %v2431_v42, %v2303_v63  ;;  %v3149_v11 = vmul.f32 %v9779_v48, %v8428_v50  ;;  %v2719_v14 = vmul.f32 %v9780_v47, %v8393_v2  ;;  %v9784_v37 = vld [vmem:[#allocation30_spill] sm:$0xff] }
 0x1c2   :  { %v2446_v52 = vadd.f32 %v2430_v5, %v2302_v12  ;;  %v3148_v38 = vmul.f32 %v9781_v55, %v8428_v50  ;;  %v2288_v3 = vmul.f32 %v9782_v24, %v8657_v34  ;;  %v2144_v41 = vmul.f32 %v9783_v9, %v8651_v36  ;;  %v9786_v5 = vld [vmem:[#allocation5_spill] sm:$0xff] }
 0x1c3   :  { %v8725_v4 = vpop.permute.xlu1 %2106  ;;  %v3021_v57 = vadd.f32 %v3005_v28, %v2877_v45  ;;  %v2591_v16 = vadd.f32 %v2575_v7, %v2447_v43  ;;  %v2718_v42 = vmul.f32 %v9784_v37, %v8393_v2  ;;  %v2863_v29 = vmul.f32 %v9785_v58, %v8398_v26  ;;  %v9788_v7 = vld [vmem:[#allocation15_spill] sm:$0xff]  ;;  %v9789_v9 = vld [vmem:[#allocation33_spill] sm:$0xff] }
 0x1c4   :  { %v2806_v61 = vpop.permute.xlu0 %2805  ;;  %v3146_v6 = vmul.f32 %v9786_v5, %v8428_v50  ;;  %v3020_v12 = vadd.f32 %v3004_v32, %v2876_v20  ;;  %v2590_v27 = vadd.f32 %v2574_v39, %v2446_v52  ;;  %v2432_v48 = vmul.f32 %v9787_v51, %v8661_v49  ;;  %v9790_v52 = vld [vmem:[#allocation34_spill] sm:$0xff] }
 0x1c5   :  { %v3165_v47 = vadd.f32 %v3149_v11, %v3021_v57  ;;  %v2735_v28 = vadd.f32 %v2719_v14, %v2591_v16  ;;  %v2862_v45 = vmul.f32 %v9788_v7, %v8398_v26  ;;  %v3007_v43 = vmul.f32 %v8604_v54, %v8411_v22  ;;  %v9791_v54 = vld [vmem:[#allocation28_spill] sm:$0xff] }
 0x1c6   :  { %v3164_v55 = vadd.f32 %v3148_v38, %v3020_v12  ;;  %v2304_v24 = vadd.f32 %v2288_v3, %v2144_v41  ;;  %v2289_v37 = vmul.f32 %v9789_v9, %v8657_v34  ;;  %v2576_v20 = vmul.f32 %v8626_v1, %v8663_v59 }
 0x1c7   :  { %v2813_v33 = vpop.permute.xlu1 %2812  ;;  %v2734_v32 = vadd.f32 %v2718_v42, %v2590_v27  ;;  %v2879_v39 = vadd.f32 %v2863_v29, %v2735_v28  ;;  %v3006_v11 = vmul.f32 %v9790_v52, %v8411_v22  ;;  %v3151_v14 = vmul.f32 %v8646_v8, %v8428_v50 }
 0x1c8   :  { %v8745_v63 = vpop.permute.xlu0 %2250  ;;  %v2145_v38 = vmul.f32 %v9791_v54, %v8651_v36  ;;  %v2448_v3 = vadd.f32 %v2432_v48, %v2304_v24  ;;  %v2433_v41 = vmul.f32 %v8606_v23, %v8661_v49  ;;  %v2720_v1 = vmul.f32 %v8675_v13, %v8665_v30 }
 0x1c9   :  { %v3197_v16 = vmax.f32 %v3165_v47, 0.0  ;;  %v2878_v42 = vadd.f32 %v2862_v45, %v2734_v32  ;;  %v3023_v58 = vadd.f32 %v3007_v43, %v2879_v39  ;;  %v3150_v29 = vmul.f32 %v8624_v46, %v8428_v50 }
 0x1ca   :  { %v2305_v8 = vadd.f32 %v2289_v37, %v2145_v38  ;;  %v2592_v5 = vadd.f32 %v2576_v20, %v2448_v3  ;;  %v2577_v12 = vmul.f32 %v8648_v35, %v8663_v59  ;;  %v2864_v27 = vmul.f32 %v2806_v61, %v8669_v44 }
 0x1cb   :  { %v2950_v26 = vpop.permute.xlu1 %2949  ;;  %v3018_v51 = vadd.f32 %v3002_v25, %v2874_v21  ;;  %v3196_v48 = vmax.f32 %v3164_v55, 0.0  ;;  %v3022_v28 = vadd.f32 %v3006_v11, %v2878_v42  ;;  %v3167_v23 = vadd.f32 %v3151_v14, %v3023_v58 }
 0x1cc   :  { %v8763_v57 = vpop.permute.xlu0 %2387  ;;  %v2449_v13 = vadd.f32 %v2433_v41, %v2305_v8  ;;  %v2721_v47 = vmul.f32 %v8673_v15, %v8665_v30  ;;  %v2736_v45 = vadd.f32 %v2720_v1, %v2592_v5  ;;  %v3008_v46 = vmul.f32 %v2950_v26, %v8677_v60  ;;  %v9792_v15 = vld [vmem:[#allocation8_spill] sm:$0xff] }
 0x1cd   :  { %v3162_v43 = vadd.f32 %v3146_v6, %v3018_v51  ;;  %v3180_v9 = vmul.f32 2.0, %v8393_v2  ;;  %v3166_v35 = vadd.f32 %v3150_v29, %v3022_v28  ;;  %v5699_v21 = vpack.i.bf16 %v8708_v31, %v8692_v40 }
 0x1ce   :  { %v8785_v25 = vadd.f32 %v3197_v16, %v8690_v17  ;;  %v2593_v61 = vadd.f32 %v2577_v12, %v2449_v13  ;;  %v2880_v55 = vadd.f32 %v2864_v27, %v2736_v45  ;;  %v2865_v37 = vmul.f32 %v2813_v33, %v8669_v44 }
 0x1cf   :  { %v2957_v7 = vpop.permute.xlu1 %2956  ;;  %v3179_v20 = vmul.f32 2.0, %v8383_v53  ;;  %v3195_v32 = vmax.f32 %v9792_v15, 0.0  ;;  %v8790_v39 = vadd.f32 %v3196_v48, %v3180_v9  ;;  %v3199_v6 = vmax.f32 %v3167_v23, 0.0  ;;  %v3736_v53 = vld [vmem:[%s9248_s4] sm:$0xff] }
 0x1d0   :  { %v8776_v24 = vpop.permute.xlu0 %2394  ;;  %v2737_v11 = vadd.f32 %v2721_v47, %v2593_v61  ;;  %v3024_v14 = vadd.f32 %v3008_v46, %v2880_v55  ;;  %v3009_v26 = vmul.f32 %v2957_v7, %v8677_v60  ;;  %v3194_v54 = vmax.f32 %v3162_v43, 0.0 }
 0x1d1   :  { %v3198_v38 = vmax.f32 %v3166_v35, 0.0  ;;  %v3183_v33 = vmul.f32 2.0, %v8428_v50  ;;  %v5723_v1 = vpack.i.bf16 %v8785_v25, %v8790_v39  ;;  %v3753_v16 = vpack.c.bf16 %v3736_v53, %v3736_v53 }
 0x1d2   :  { %v2881_v3 = vadd.f32 %v2865_v37, %v2737_v11  ;;  %v3178_v42 = vmul.f32 2.0, %v8379_v0  ;;  %v3182_v58 = vmul.f32 2.0, %v8411_v22  ;;  %v8804_v50 = vadd.f32 %v3195_v32, %v3179_v20 }
 0x1d3   :  { %v3094_v52 = vpop.permute.xlu1 %3093  ;;  %v8802_v29 = vadd.f32 %v3199_v6, %v3183_v33  ;;  %5671 = vmatprep.subr.msk.bf16.mxu0 %vm3810_vm2, %v3753_v16  ;;  %v3812_v51 = vsel %vm3810_vm2, %v3753_v16, 0  ;;  %v3184_v45 = vmul.f32 2.0, %v8651_v36  ;;  %v3185_v46 = vmul.f32 2.0, %v8657_v34 }
 0x1d4   :  { %5700 = vxpose.xlu0.b32.start.end [1/1] (short) (narrow) %v5699_v21, 16  ;;  %v2532_v2 = vpop.permute.xlu0 %2531  ;;  %v3152_v17 = vmul.f32 %v3094_v52, %v8679_v10  ;;  %v3025_v12 = vadd.f32 %v3009_v26, %v2881_v3  ;;  %v8807_v48 = vadd.f32 %v3198_v38, %v3182_v58  ;;  %5564 = vmatpush3.bf16.msra.mxu0 %v3812_v51 }
 0x1d5   :  { %v8809_v28 = vadd.f32 %v3194_v54, %v3178_v42  ;;  %v2290_v15 = vmul.f32 %v8698_v19, %v8657_v34  ;;  %v2146_v32 = vmul.f32 %v8700_v56, %v8651_v36  ;;  %v2434_v11 = vmul.f32 %v8763_v57, %v8661_v49 }
 0x1d6   :  { %v3168_v41 = vadd.f32 %v3152_v17, %v3024_v14  ;;  %v5735_v13 = vpack.i.bf16 %v8802_v29, %v8807_v48  ;;  %v2291_v26 = vmul.f32 %v8745_v63, %v8657_v34  ;;  %v2578_v17 = vmul.f32 %v2532_v2, %v8663_v59 }
 0x1d7   :  { %v3101_v8 = vpop.permute.xlu1 %3100  ;;  %v5711_v47 = vpack.i.bf16 %v8804_v50, %v8809_v28  ;;  %v2306_v14 = vadd.f32 %v2290_v15, %v2146_v32  ;;  %v2147_v33 = vmul.f32 %v8725_v4, %v8651_v36  ;;  %v2435_v56 = vmul.f32 %v8776_v24, %v8661_v49 }
 0x1d8   :  { %v2539_v5 = vpop.permute.xlu0 %2538  ;;  %v3153_v27 = vmul.f32 %v3101_v8, %v8679_v10  ;;  %v3200_v0 = vmax.f32 %v3168_v41, 0.0 }
 0x1d9   :  { %5724 = vxpose.xlu0.b32.start.end [1/1] (short) (narrow) %v5723_v1, 16  ;;  %v2450_v19 = vadd.f32 %v2434_v11, %v2306_v14  ;;  %v2307_v3 = vadd.f32 %v2291_v26, %v2147_v33  ;;  %v2579_v57 = vmul.f32 %v2539_v5, %v8663_v59  ;;  %v3187_v11 = vmul.f32 2.0, %v8663_v59 }
 0x1da   :  { %v3169_v23 = vadd.f32 %v3153_v27, %v3025_v12  ;;  %v8817_v9 = vadd.f32 %v3200_v0, %v3184_v45 }
 0x1db   :  { %v2683_v22 = vpop.permute.xlu1 %2682  ;;  %v2594_v41 = vadd.f32 %v2578_v17, %v2450_v19  ;;  %v2451_v2 = vadd.f32 %v2435_v56, %v2307_v3 }
 0x1dc   :  { %v2676_v7 = vpop.permute.xlu0 %2675  ;;  %v3201_v43 = vmax.f32 %v3169_v23, 0.0  ;;  %v2723_v42 = vmul.f32 %v2683_v22, %v8665_v30 }
 0x1dd   :  { %v2722_v53 = vmul.f32 %v2676_v7, %v8665_v30  ;;  %v2595_v8 = vadd.f32 %v2579_v57, %v2451_v2 }
 0x1de   :  { %5736 = vxpose.xlu0.b32.start.end [1/1] (short) (narrow) %v5735_v13, 16  ;;  %v8819_v35 = vadd.f32 %v3201_v43, %v3185_v46  ;;  %5712 = vxpose.xlu1.b32.start.end [1/1] (short) (narrow) %v5711_v47, 16 }
 0x1df   :  { %v2258_v21 = vpop.permute.xlu1 %2257  ;;  %v2738_v58 = vadd.f32 %v2722_v53, %v2594_v41  ;;  %v2739_v0 = vadd.f32 %v2723_v42, %v2595_v8 }
 0x1e0   :  { %v2114_v61 = vpop.permute.xlu0 %2113  ;;  %v5747_v55 = vpack.i.bf16 %v8819_v35, %v8817_v9  ;;  %v2292_v3 = vmul.f32 %v2258_v21, %v8657_v34 }
 0x1e1   :  { %v2148_v41 = vmul.f32 %v2114_v61, %v8651_v36 }
 0x1e3   :  { %5748 = vxpose.xlu0.b32.start.end [1/1] (short) (narrow) %v5747_v55, 16  ;;  %v8823_v37 = vpop.permute.xlu1 %2120  ;;  %v2308_v2 = vadd.f32 %v2292_v3, %v2148_v41 }
 0x1e4   :  { %v2820_v20 = vpop.permute.xlu0 %2819 }
 0x1e5   :  { %v2866_v1 = vmul.f32 %v2820_v20, %v8669_v44 }
 0x1e7   :  { %v2827_v6 = vpop.permute.xlu1 %2826  ;;  %v2882_v12 = vadd.f32 %v2866_v1, %v2738_v58 }
 0x1e8   :  { %v2265_v52 = vpop.permute.xlu0 %2264  ;;  %v2867_v24 = vmul.f32 %v2827_v6, %v8669_v44  ;;  %v3186_v6 = vmul.f32 2.0, %v8661_v49 }
 0x1e9   :  { %v2293_v42 = vmul.f32 %v2265_v52, %v8657_v34 }
 0x1ea   :  { %v2883_v13 = vadd.f32 %v2867_v24, %v2739_v0 }
 0x1eb   :  { %v2964_v54 = vpop.permute.xlu1 %2963 }
 0x1ec   :  { %v2402_v38 = vpop.permute.xlu0 %2401  ;;  %v3010_v4 = vmul.f32 %v2964_v54, %v8677_v60 }
 0x1ee   :  { %v3026_v23 = vadd.f32 %v3010_v4, %v2882_v12  ;;  %v2149_v12 = vmul.f32 %v8823_v37, %v8651_v36 }
 0x1ef   :  { %v2971_v63 = vpop.permute.xlu1 %2970 }
 0x1f0   :  { %v2409_v16 = vpop.permute.xlu0 %2408  ;;  %v3011_v5 = vmul.f32 %v2971_v63, %v8677_v60  ;;  %v2436_v63 = vmul.f32 %v2402_v38, %v8661_v49  ;;  %v2309_v61 = vadd.f32 %v2293_v42, %v2149_v12 }
 0x1f2   :  { %v3027_v22 = vadd.f32 %v3011_v5, %v2883_v13  ;;  %v2452_v24 = vadd.f32 %v2436_v63, %v2308_v2 }
 0x1f3   :  { %v3108_v27 = vpop.permute.xlu1 %3107 }
 0x1f4   :  { %v2546_v51 = vpop.permute.xlu0 %2545  ;;  %v3154_v7 = vmul.f32 %v3108_v27, %v8679_v10  ;;  %v2437_v27 = vmul.f32 %v2409_v16, %v8661_v49 }
 0x1f5   :  { %v2580_v58 = vmul.f32 %v2546_v51, %v8663_v59 }
 0x1f6   :  { %v3170_v47 = vadd.f32 %v3154_v7, %v3026_v23  ;;  %v2453_v7 = vadd.f32 %v2437_v27, %v2309_v61  ;;  %v3188_v27 = vmul.f32 2.0, %v8665_v30 }
 0x1f7   :  { %v3115_v45 = vpop.permute.xlu1 %3114  ;;  %v2596_v0 = vadd.f32 %v2580_v58, %v2452_v24 }
 0x1f8   :  { %v2553_v46 = vpop.permute.xlu0 %2552  ;;  %v3155_v43 = vmul.f32 %v3115_v45, %v8679_v10  ;;  %v3202_v55 = vmax.f32 %v3170_v47, 0.0 }
 0x1f9   :  { %v2581_v23 = vmul.f32 %v2553_v46, %v8663_v59 }
 0x1fa   :  { %v3171_v20 = vadd.f32 %v3155_v43, %v3027_v22  ;;  %v8849_v26 = vadd.f32 %v3202_v55, %v3186_v6 }
 0x1fb   :  { %v2697_v15 = vpop.permute.xlu1 %2696  ;;  %v2597_v37 = vadd.f32 %v2581_v23, %v2453_v7 }
 0x1fc   :  { %v2690_v32 = vpop.permute.xlu0 %2689  ;;  %v3203_v14 = vmax.f32 %v3171_v20, 0.0  ;;  %v2725_v51 = vmul.f32 %v2697_v15, %v8665_v30 }
 0x1fd   :  { %v2724_v21 = vmul.f32 %v2690_v32, %v8665_v30 }
 0x1fe   :  { %v8851_v17 = vadd.f32 %v3203_v14, %v3187_v11  ;;  %v2741_v55 = vadd.f32 %v2725_v51, %v2597_v37 }
 0x1ff   :  { %v2272_v54 = vpop.permute.xlu1 %2271  ;;  %v2740_v13 = vadd.f32 %v2724_v21, %v2596_v0  ;;  %v3189_v21 = vmul.f32 2.0, %v8669_v44 }
 0x200   :  { %v2128_v33 = vpop.permute.xlu0 %2127  ;;  %v5759_v19 = vpack.i.bf16 %v8851_v17, %v8849_v26  ;;  %v2294_v3 = vmul.f32 %v2272_v54, %v8657_v34 }
 0x201   :  { %v2150_v41 = vmul.f32 %v2128_v33, %v8651_v36 }
 0x202   :  { %5760 = vxpose.xlu1.b32.start.end [1/1] (short) (narrow) %v5759_v19, 16 }
 0x203   :  { %v2135_v56 = vpop.permute.xlu1 %2134  ;;  %v2310_v54 = vadd.f32 %v2294_v3, %v2150_v41  ;;  %v3190_v3 = vmul.f32 2.0, %v8677_v60 }
 0x204   :  { %v2834_v53 = vpop.permute.xlu0 %2833  ;;  %v2151_v42 = vmul.f32 %v2135_v56, %v8651_v36 }
 0x205   :  { %v2868_v38 = vmul.f32 %v2834_v53, %v8669_v44 }
 0x207   :  { %v2841_v57 = vpop.permute.xlu1 %2840  ;;  %v2884_v45 = vadd.f32 %v2868_v38, %v2740_v13 }
 0x208   :  { %v2279_v1 = vpop.permute.xlu0 %2278  ;;  %v2869_v16 = vmul.f32 %v2841_v57, %v8669_v44 }
 0x209   :  { %v2295_v57 = vmul.f32 %v2279_v1, %v8657_v34 }
 0x20a   :  { %v2885_v6 = vadd.f32 %v2869_v16, %v2741_v55 }
 0x20b   :  { %v2978_v4 = vpop.permute.xlu1 %2977  ;;  %v2311_v0 = vadd.f32 %v2295_v57, %v2151_v42 }
 0x20c   :  { %v2416_v8 = vpop.permute.xlu0 %2415  ;;  %v3012_v47 = vmul.f32 %v2978_v4, %v8677_v60 }
 0x20d   :  { %v2438_v58 = vmul.f32 %v2416_v8, %v8661_v49 }
 0x20e   :  { %v3028_v20 = vadd.f32 %v3012_v47, %v2884_v45 }
 0x20f   :  { %v2985_v5 = vpop.permute.xlu1 %2984  ;;  %v2454_v56 = vadd.f32 %v2438_v58, %v2310_v54 }
 0x210   :  { %v2423_v52 = vpop.permute.xlu0 %2422  ;;  %v3013_v46 = vmul.f32 %v2985_v5, %v8677_v60 }
 0x211   :  { %v2439_v24 = vmul.f32 %v2423_v52, %v8661_v49 }
 0x212   :  { %v3029_v15 = vadd.f32 %v3013_v46, %v2885_v6 }
 0x213   :  { %v3122_v22 = vpop.permute.xlu1 %3121  ;;  %v2455_v38 = vadd.f32 %v2439_v24, %v2311_v0 }
 0x214   :  { %v2560_v43 = vpop.permute.xlu0 %2559  ;;  %v3156_v32 = vmul.f32 %v3122_v22, %v8679_v10 }
 0x215   :  { %v2582_v34 = vmul.f32 %v2560_v43, %v8663_v59 }
 0x216   :  { %v3172_v11 = vadd.f32 %v3156_v32, %v3028_v20 }
 0x217   :  { %v3129_v14 = vpop.permute.xlu1 %3128  ;;  %v2598_v7 = vadd.f32 %v2582_v34, %v2454_v56 }
 0x218   :  { %v2567_v19 = vpop.permute.xlu0 %2566  ;;  %v3157_v53 = vmul.f32 %v3129_v14, %v8679_v10  ;;  %v3204_v63 = vmax.f32 %v3172_v11, 0.0 }
 0x219   :  { %v2583_v36 = vmul.f32 %v2567_v19, %v8663_v59 }
 0x21a   :  { %v3173_v2 = vadd.f32 %v3157_v53, %v3029_v15  ;;  %v8880_v33 = vadd.f32 %v3204_v63, %v3188_v27  ;;  %v3191_v15 = vmul.f32 2.0, %v8679_v10 }
 0x21b   :  { %v2711_v4 = vpop.permute.xlu1 %2710  ;;  %v2599_v51 = vadd.f32 %v2583_v36, %v2455_v38 }
 0x21c   :  { %v2704_v12 = vpop.permute.xlu0 %2703  ;;  %v3205_v61 = vmax.f32 %v3173_v2, 0.0  ;;  %v2727_v5 = vmul.f32 %v2711_v4, %v8665_v30 }
 0x21d   :  { %v2726_v52 = vmul.f32 %v2704_v12, %v8665_v30 }
 0x21e   :  { %v8883_v1 = vadd.f32 %v3205_v61, %v3189_v21  ;;  %v2743_v45 = vadd.f32 %v2727_v5, %v2599_v51 }
 0x21f   :  { %v2855_v8 = vpop.permute.xlu1 %2854  ;;  %v2742_v16 = vadd.f32 %v2726_v52, %v2598_v7 }
 0x220   :  { %v2848_v23 = vpop.permute.xlu0 %2847  ;;  %v5771_v49 = vpack.i.bf16 %v8883_v1, %v8880_v33  ;;  %v2871_v13 = vmul.f32 %v2855_v8, %v8669_v44 }
 0x221   :  { %v2870_v47 = vmul.f32 %v2848_v23, %v8669_v44 }
 0x222   :  { %5772 = vxpose.xlu0.b32.start.end [1/1] (short) (narrow) %v5771_v49, 16  ;;  %v2887_v55 = vadd.f32 %v2871_v13, %v2743_v45 }
 0x223   :  { %v2999_v37 = vpop.permute.xlu1 %2998  ;;  %v2886_v20 = vadd.f32 %v2870_v47, %v2742_v16 }
 0x224   :  { %v2992_v59 = vpop.permute.xlu0 %2991  ;;  %v3015_v22 = vmul.f32 %v2999_v37, %v8677_v60 }
 0x225   :  { %v3014_v43 = vmul.f32 %v2992_v59, %v8677_v60 }
 0x226   :  { %v3031_v30 = vadd.f32 %v3015_v22, %v2887_v55 }
 0x227   :  { %v3143_v46 = vpop.permute.xlu1 %3142  ;;  %v3030_v6 = vadd.f32 %v3014_v43, %v2886_v20 }
 0x228   :  { %v3136_v32 = vpop.permute.xlu0 %3135  ;;  %v3159_v11 = vmul.f32 %v3143_v46, %v8679_v10 }
 0x229   :  { %v3158_v14 = vmul.f32 %v3136_v32, %v8679_v10 }
 0x22a   :  { %v3175_v44 = vadd.f32 %v3159_v11, %v3031_v30 }
 0x22b   :  { %v3174_v19 = vadd.f32 %v3158_v14, %v3030_v6 }
 0x22c   :  { %v3207_v53 = vmax.f32 %v3175_v44, 0.0 }
 0x22d   :  { %v3206_v41 = vmax.f32 %v3174_v19, 0.0 }
 0x22e   :  { %v8898_v57 = vadd.f32 %v3207_v53, %v3191_v15 }
 0x22f   :  { %v8900_v63 = vadd.f32 %v3206_v41, %v3190_v3 }
 0x231   :  { %v5783_v2 = vpack.i.bf16 %v8898_v57, %v8900_v63 }
 0x233   :  { %5784 = vxpose.xlu1.b32.start.end [1/1] (short) (narrow) %v5783_v2, 16 }
 0x250   :  { %v5701_v42 = vpop.trf.xlu0 }
 0x251   :  { %v5705_v58 = vunpack.i.h.bf16 %v5701_v42  ;;  %v5702_v4 = vunpack.i.l.bf16 %v5701_v42 }
 0x254   :  { %v5706_v12 = vpop.trf.xlu0 }
 0x255   :  { %v5710_v24 = vunpack.i.h.bf16 %v5706_v12  ;;  %v5707_v27 = vunpack.i.l.bf16 %v5706_v12 }
 0x257   :  { %v3737_v10 = vpack.c.bf16 %v5707_v27, %v5702_v4  ;;  %v3738_v21 = vpack.c.bf16 %v5710_v24, %v5705_v58 }
 0x258   :  { %v5725_v61 = vpop.trf.xlu0 }
 0x259   :  { %5565 = vmatprep.mubr.msk.bf16.mxu0 %vm3761_vm7, %v3737_v10  ;;  %v5726_v36 = vunpack.i.l.bf16 %v5725_v61  ;;  %v5729_v13 = vunpack.i.h.bf16 %v5725_v61  ;;  %v4009_v61 = vld [vmem:[%s9249_s6 + $0x10] sm:$0xff] }
 0x25a   :  { %5566 = vmatmul.mubr.msk.bf16.vlgmr.msra.gmra.mxu0 %vm3761_vm7, %v3738_v21  ;;  %v5713_v60 = vpop.trf.xlu1 }
 0x25b   :  { %v5717_v0 = vunpack.i.h.bf16 %v5713_v60  ;;  %v5714_v34 = vunpack.i.l.bf16 %v5713_v60  ;;  %v4010_v60 = vld [vmem:[%s9249_s6 + $0x18] sm:$0xff] }
 0x25c   :  { %v5730_v54 = vpop.trf.xlu0 }
 0x25d   :  { %v5731_v56 = vunpack.i.l.bf16 %v5730_v54  ;;  %v5734_v47 = vunpack.i.h.bf16 %v5730_v54  ;;  %v4007_v54 = vld [vmem:[%s9249_s6] sm:$0xff] }
 0x25e   :  { %v5718_v8 = vpop.trf.xlu1 }
 0x25f   :  { %v5722_v23 = vunpack.i.h.bf16 %v5718_v8  ;;  %v5719_v38 = vunpack.i.l.bf16 %v5718_v8  ;;  %v3741_v7 = vpack.c.bf16 %v5731_v56, %v5726_v36  ;;  %v3742_v16 = vpack.c.bf16 %v5734_v47, %v5729_v13  ;;  %v8935_v47 = vld [vmem:[%s9250_s5] ss:$0 sm:$0xff] }
 0x260   :  { %v5737_v49 = vpop.trf.xlu0 }
 0x261   :  { %v3739_v5 = vpack.c.bf16 %v5719_v38, %v5714_v34  ;;  %v3740_v52 = vpack.c.bf16 %v5722_v23, %v5717_v0  ;;  %v5738_v37 = vunpack.i.l.bf16 %v5737_v49  ;;  %v5741_v55 = vunpack.i.h.bf16 %v5737_v49  ;;  %v4008_v34 = vld [vmem:[%s9249_s6 + $0x8] sm:$0xff] }
 0x262   :  { %v4028_v0 = vpack.c.bf16 %v4010_v60, %v4009_v61  ;;  %v4027_v8 = vpack.c.bf16 %v4008_v34, %v4007_v54 }
 0x263   :  { %5569 = vmatprep.mubr.msk.bf16.mxu0 %vm3761_vm7, %v3739_v5 }
 0x264   :  { %v5742_v51 = vpop.trf.xlu0  ;;  %5570 = vmatmul.mubr.msk.bf16.gmra.mxu0 %vm3761_vm7, %v3740_v52  ;;  %5597 = vmatprep.subr.bf16.mxu1 %v4028_v0 }
 0x265   :  { %5573 = vmatprep.mubr.msk.bf16.mxu0 %vm3761_vm7, %v3741_v7  ;;  %v5743_v59 = vunpack.i.l.bf16 %v5742_v51  ;;  %v5746_v20 = vunpack.i.h.bf16 %v5742_v51  ;;  %5598 = vmatpush3.bf16.msra.mxu1 %v4028_v0 }
 0x266   :  { %5599 = vmatprep.subr.bf16.mxu1 %v4027_v8 }
 0x267   :  { %v3743_v22 = vpack.c.bf16 %v5743_v59, %v5738_v37  ;;  %v3744_v30 = vpack.c.bf16 %v5746_v20, %v5741_v55 }
 0x268   :  { %v5749_v45 = vpop.trf.xlu0 }
 0x269   :  { %v5750_v46 = vunpack.i.l.bf16 %v5749_v45  ;;  %v5753_v11 = vunpack.i.h.bf16 %v5749_v45  ;;  %5600 = vmatpush3.bf16.msra.mxu1 %v4027_v8 }
 0x26c   :  { %v5754_v43 = vpop.trf.xlu0  ;;  %5574 = vmatmul.mubr.msk.bf16.gmra.mxu0 %vm3761_vm7, %v3742_v16 }
 0x26d   :  { %5577 = vmatprep.mubr.msk.bf16.mxu0 %vm3761_vm7, %v3743_v22  ;;  %v5755_v32 = vunpack.i.l.bf16 %v5754_v43  ;;  %v5758_v14 = vunpack.i.h.bf16 %v5754_v43 }
 0x26f   :  { %v3745_v6 = vpack.c.bf16 %v5755_v32, %v5750_v46  ;;  %v3746_v44 = vpack.c.bf16 %v5758_v14, %v5753_v11 }
 0x274   :  { %5578 = vmatmul.mubr.msk.bf16.gmra.mxu0 %vm3761_vm7, %v3744_v30 }
 0x275   :  { %5581 = vmatprep.mubr.msk.bf16.mxu0 %vm3761_vm7, %v3745_v6 }
 0x27c   :  { %5582 = vmatmul.mubr.msk.bf16.gmra.mxu0 %vm3761_vm7, %v3746_v44 }
 0x27e   :  { %v5761_v19 = vpop.trf.xlu1 }
 0x27f   :  { %v5765_v15 = vunpack.i.h.bf16 %v5761_v19  ;;  %v5762_v53 = vunpack.i.l.bf16 %v5761_v19 }
 0x282   :  { %v5766_v3 = vpop.trf.xlu1 }
 0x283   :  { %v5770_v41 = vunpack.i.h.bf16 %v5766_v3  ;;  %v5767_v2 = vunpack.i.l.bf16 %v5766_v3 }
 0x285   :  { %v3747_v42 = vpack.c.bf16 %v5767_v2, %v5762_v53  ;;  %v3748_v58 = vpack.c.bf16 %v5770_v41, %v5765_v15 }
 0x287   :  { %5585 = vmatprep.mubr.msk.bf16.mxu0 %vm3761_vm7, %v3747_v42 }
 0x288   :  { %5586 = vmatmul.mubr.msk.bf16.gmra.mxu0 %vm3761_vm7, %v3748_v58 }
 0x29e   :  { %v5773_v4 = vpop.trf.xlu0 }
 0x29f   :  { %v5777_v12 = vunpack.i.h.bf16 %v5773_v4  ;;  %v5774_v24 = vunpack.i.l.bf16 %v5773_v4 }
 0x2a2   :  { %v5778_v27 = vpop.trf.xlu0 }
 0x2a3   :  { %v5782_v10 = vunpack.i.h.bf16 %v5778_v27  ;;  %v5779_v21 = vunpack.i.l.bf16 %v5778_v27 }
 0x2a5   :  { %v3749_v36 = vpack.c.bf16 %v5779_v21, %v5774_v24  ;;  %v3750_v56 = vpack.c.bf16 %v5782_v10, %v5777_v12 }
 0x2a7   :  { %5589 = vmatprep.mubr.msk.bf16.mxu0 %vm3761_vm7, %v3749_v36 }
 0x2a8   :  { %5590 = vmatmul.mubr.msk.bf16.gmra.mxu0 %vm3761_vm7, %v3750_v56 }
 0x2af   :  { %v5785_v23 = vpop.trf.xlu1 }
 0x2b0   :  { %v5789_v38 = vunpack.i.h.bf16 %v5785_v23  ;;  %v5786_v49 = vunpack.i.l.bf16 %v5785_v23 }
 0x2b3   :  { %v5790_v5 = vpop.trf.xlu1 }
 0x2b4   :  { %v5794_v52 = vunpack.i.h.bf16 %v5790_v5  ;;  %v5791_v7 = vunpack.i.l.bf16 %v5790_v5 }
 0x2b6   :  { %v3751_v51 = vpack.c.bf16 %v5791_v7, %v5786_v49  ;;  %v3752_v13 = vpack.c.bf16 %v5794_v52, %v5789_v38 }
 0x2b8   :  { %5593 = vmatprep.mubr.msk.bf16.mxu0 %vm3761_vm7, %v3751_v51 }
 0x2b9   :  { %5594 = vmatmul.mubr.msk.bf16.gmra.mxu0 %vm3761_vm7, %v3752_v13 }
 0x31a   :  { %v5567_v37 = vpop.f32.mrf.mxu0 }
 0x31b   :  { %v3857_v59 = vadd.f32 %v5567_v37, %v8935_v47 }
 0x31c   :  { %v3848_v45 = vpop.f32.mrf.mxu0 }
 0x31d   :  { %v3849_v16 = vadd.f32 %v8935_v47, %v3848_v45  ;;  %v3977_v55 = vmax.f32 %v3857_v59, 0.0 }
 0x31e   :  { %v5568_v22 = vpop.f32.mrf.mxu0 }
 0x31f   :  { %v3860_v43 = vadd.f32 %v5568_v22, %v8935_v47  ;;  %v3975_v46 = vmax.f32 %v3849_v16, 0.0 }
 0x320   :  { %v3851_v20 = vpop.f32.mrf.mxu0 }
 0x321   :  { %v3978_v32 = vmax.f32 %v3860_v43, 0.0  ;;  %v3852_v30 = vadd.f32 %v8935_v47, %v3851_v20 }
 0x323   :  { %v3976_v6 = vmax.f32 %v3852_v30, 0.0  ;;  %v4012_v11 = vpack.c.bf16 %v3978_v32, %v3977_v55 }
 0x324   :  { %v5571_v14 = vpop.f32.mrf.mxu0 }
 0x325   :  { %v4011_v44 = vpack.c.bf16 %v3976_v6, %v3975_v46  ;;  %v3873_v19 = vadd.f32 %v5571_v14, %v8935_v47 }
 0x326   :  { %v3864_v15 = vpop.f32.mrf.mxu0 }
 0x327   :  { %5601 = vmatprep.mubr.msk.bf16.mxu1 %vm4036_vm8, %v4011_v44  ;;  %v3865_v53 = vadd.f32 %v8935_v47, %v3864_v15  ;;  %v3981_v2 = vmax.f32 %v3873_v19, 0.0 }
 0x328   :  { %5602 = vmatmul.mubr.msk.bf16.vlgmr.msra.gmra.mxu1 %vm4036_vm8, %v4012_v11  ;;  %v5572_v3 = vpop.f32.mrf.mxu0 }
 0x329   :  { %v3876_v41 = vadd.f32 %v5572_v3, %v8935_v47  ;;  %v3979_v58 = vmax.f32 %v3865_v53, 0.0 }
 0x32a   :  { %v3867_v42 = vpop.f32.mrf.mxu0 }
 0x32b   :  { %v3982_v4 = vmax.f32 %v3876_v41, 0.0  ;;  %v3868_v12 = vadd.f32 %v8935_v47, %v3867_v42 }
 0x32c   :  { %v5575_v24 = vpop.f32.mrf.mxu0 }
 0x32d   :  { %v3980_v27 = vmax.f32 %v3868_v12, 0.0  ;;  %v4014_v10 = vpack.c.bf16 %v3982_v4, %v3981_v2  ;;  %v3889_v21 = vadd.f32 %v5575_v24, %v8935_v47 }
 0x32e   :  { %v3880_v61 = vpop.f32.mrf.mxu0 }
 0x32f   :  { %v4013_v60 = vpack.c.bf16 %v3980_v27, %v3979_v58  ;;  %v3881_v54 = vadd.f32 %v8935_v47, %v3880_v61  ;;  %v3985_v36 = vmax.f32 %v3889_v21, 0.0 }
 0x330   :  { %v5576_v0 = vpop.f32.mrf.mxu0 }
 0x331   :  { %v3892_v34 = vadd.f32 %v5576_v0, %v8935_v47  ;;  %5605 = vmatprep.mubr.msk.bf16.mxu1 %vm4036_vm8, %v4013_v60  ;;  %v3983_v8 = vmax.f32 %v3881_v54, 0.0 }
 0x332   :  { %v3883_v56 = vpop.f32.mrf.mxu0  ;;  %5606 = vmatmul.mubr.msk.bf16.gmra.mxu1 %vm4036_vm8, %v4014_v10 }
 0x333   :  { %v3986_v23 = vmax.f32 %v3892_v34, 0.0  ;;  %v3884_v38 = vadd.f32 %v8935_v47, %v3883_v56 }
 0x334   :  { %v5579_v49 = vpop.f32.mrf.mxu0 }
 0x335   :  { %v3984_v5 = vmax.f32 %v3884_v38, 0.0  ;;  %v4016_v52 = vpack.c.bf16 %v3986_v23, %v3985_v36  ;;  %v3905_v7 = vadd.f32 %v5579_v49, %v8935_v47 }
 0x336   :  { %v3896_v51 = vpop.f32.mrf.mxu0 }
 0x337   :  { %v4015_v13 = vpack.c.bf16 %v3984_v5, %v3983_v8  ;;  %v3897_v37 = vadd.f32 %v8935_v47, %v3896_v51  ;;  %v3989_v16 = vmax.f32 %v3905_v7, 0.0 }
 0x338   :  { %v5580_v59 = vpop.f32.mrf.mxu0 }
 0x339   :  { %v3908_v45 = vadd.f32 %v5580_v59, %v8935_v47  ;;  %5609 = vmatprep.mubr.msk.bf16.mxu1 %vm4036_vm8, %v4015_v13  ;;  %v3987_v43 = vmax.f32 %v3897_v37, 0.0 }
 0x33a   :  { %v3899_v22 = vpop.f32.mrf.mxu0  ;;  %5610 = vmatmul.mubr.msk.bf16.gmra.mxu1 %vm4036_vm8, %v4016_v52 }
 0x33b   :  { %v3990_v55 = vmax.f32 %v3908_v45, 0.0  ;;  %v3900_v20 = vadd.f32 %v8935_v47, %v3899_v22 }
 0x33c   :  { %v5583_v46 = vpop.f32.mrf.mxu0 }
 0x33d   :  { %v3988_v32 = vmax.f32 %v3900_v20, 0.0  ;;  %v4018_v30 = vpack.c.bf16 %v3990_v55, %v3989_v16  ;;  %v3921_v6 = vadd.f32 %v5583_v46, %v8935_v47 }
 0x33e   :  { %v3912_v11 = vpop.f32.mrf.mxu0 }
 0x33f   :  { %v4017_v14 = vpack.c.bf16 %v3988_v32, %v3987_v43  ;;  %v3913_v44 = vadd.f32 %v8935_v47, %v3912_v11  ;;  %v3993_v53 = vmax.f32 %v3921_v6, 0.0 }
 0x340   :  { %v5584_v19 = vpop.f32.mrf.mxu0 }
 0x341   :  { %v3924_v15 = vadd.f32 %v5584_v19, %v8935_v47  ;;  %5613 = vmatprep.mubr.msk.bf16.mxu1 %vm4036_vm8, %v4017_v14  ;;  %v3991_v41 = vmax.f32 %v3913_v44, 0.0 }
 0x342   :  { %v3915_v3 = vpop.f32.mrf.mxu0  ;;  %5614 = vmatmul.mubr.msk.bf16.gmra.mxu1 %vm4036_vm8, %v4018_v30 }
 0x343   :  { %v3994_v2 = vmax.f32 %v3924_v15, 0.0  ;;  %v3916_v42 = vadd.f32 %v8935_v47, %v3915_v3 }
 0x345   :  { %v3992_v58 = vmax.f32 %v3916_v42, 0.0  ;;  %v4020_v4 = vpack.c.bf16 %v3994_v2, %v3993_v53 }
 0x347   :  { %v4019_v12 = vpack.c.bf16 %v3992_v58, %v3991_v41  ;;  %v8988_v58 = vld [vmem:[%s9251_s7] ss:$0 sm:$0xff] }
 0x348   :  { %v5587_v24 = vpop.f32.mrf.mxu0 }
 0x349   :  { %5617 = vmatprep.mubr.msk.bf16.mxu1 %vm4036_vm8, %v4019_v12  ;;  %v3937_v27 = vadd.f32 %v5587_v24, %v8935_v47 }
 0x34a   :  { %v3928_v10 = vpop.f32.mrf.mxu0  ;;  %5618 = vmatmul.mubr.msk.bf16.gmra.mxu1 %vm4036_vm8, %v4020_v4 }
 0x34b   :  { %v3929_v21 = vadd.f32 %v8935_v47, %v3928_v10  ;;  %v3997_v54 = vmax.f32 %v3937_v27, 0.0 }
 0x34c   :  { %v5588_v61 = vpop.f32.mrf.mxu0 }
 0x34d   :  { %v3940_v60 = vadd.f32 %v5588_v61, %v8935_v47  ;;  %v3995_v34 = vmax.f32 %v3929_v21, 0.0 }
 0x34e   :  { %v3931_v0 = vpop.f32.mrf.mxu0 }
 0x34f   :  { %v3998_v36 = vmax.f32 %v3940_v60, 0.0  ;;  %v3932_v56 = vadd.f32 %v8935_v47, %v3931_v0  ;;  %v4774_v0 = vld [vmem:[%s9252_s8] sm:$0xff] }
 0x351   :  { %v3996_v8 = vmax.f32 %v3932_v56, 0.0  ;;  %v4022_v23 = vpack.c.bf16 %v3998_v36, %v3997_v54 }
 0x353   :  { %v4021_v38 = vpack.c.bf16 %v3996_v8, %v3995_v34  ;;  %v4775_v34 = vld [vmem:[%s9252_s8 + $0x8] sm:$0xff] }
 0x354   :  { %v4784_v56 = vpack.c.bf16 %v4775_v34, %v4774_v0 }
 0x355   :  { %5621 = vmatprep.mubr.msk.bf16.mxu1 %vm4036_vm8, %v4021_v38 }
 0x356   :  { %5622 = vmatmul.mubr.msk.bf16.gmra.mxu1 %vm4036_vm8, %v4022_v23  ;;  %5633 = vmatprep.subr.bf16.mxu0 %v4784_v56 }
 0x357   :  { %5634 = vmatpush3.bf16.msra.mxu0 %v4784_v56 }
 0x368   :  { %v5591_v49 = vpop.f32.mrf.mxu0 }
 0x369   :  { %v3953_v52 = vadd.f32 %v5591_v49, %v8935_v47 }
 0x36a   :  { %v3944_v5 = vpop.f32.mrf.mxu0 }
 0x36b   :  { %v3945_v51 = vadd.f32 %v8935_v47, %v3944_v5  ;;  %v4001_v45 = vmax.f32 %v3953_v52, 0.0 }
 0x36c   :  { %v5592_v7 = vpop.f32.mrf.mxu0 }
 0x36d   :  { %v3956_v13 = vadd.f32 %v5592_v7, %v8935_v47  ;;  %v3999_v22 = vmax.f32 %v3945_v51, 0.0 }
 0x36e   :  { %v3947_v37 = vpop.f32.mrf.mxu0 }
 0x36f   :  { %v3948_v59 = vadd.f32 %v8935_v47, %v3947_v37  ;;  %v4002_v16 = vmax.f32 %v3956_v13, 0.0 }
 0x371   :  { %v4000_v43 = vmax.f32 %v3948_v59, 0.0  ;;  %v4024_v20 = vpack.c.bf16 %v4002_v16, %v4001_v45 }
 0x373   :  { %v4023_v55 = vpack.c.bf16 %v4000_v43, %v3999_v22 }
 0x375   :  { %5625 = vmatprep.mubr.msk.bf16.mxu1 %vm4036_vm8, %v4023_v55 }
 0x376   :  { %5626 = vmatmul.mubr.msk.bf16.gmra.mxu1 %vm4036_vm8, %v4024_v20 }
 0x379   :  { %v5595_v46 = vpop.f32.mrf.mxu0 }
 0x37a   :  { %v3969_v14 = vadd.f32 %v5595_v46, %v8935_v47 }
 0x37b   :  { %v3960_v32 = vpop.f32.mrf.mxu0 }
 0x37c   :  { %v3961_v6 = vadd.f32 %v8935_v47, %v3960_v32  ;;  %v4005_v41 = vmax.f32 %v3969_v14, 0.0 }
 0x37d   :  { %v5596_v30 = vpop.f32.mrf.mxu0 }
 0x37e   :  { %v3972_v11 = vadd.f32 %v5596_v30, %v8935_v47  ;;  %v4003_v53 = vmax.f32 %v3961_v6, 0.0 }
 0x37f   :  { %v3963_v44 = vpop.f32.mrf.mxu0 }
 0x380   :  { %v3964_v19 = vadd.f32 %v8935_v47, %v3963_v44  ;;  %v4006_v15 = vmax.f32 %v3972_v11, 0.0 }
 0x382   :  { %v4004_v3 = vmax.f32 %v3964_v19, 0.0  ;;  %v4026_v42 = vpack.c.bf16 %v4006_v15, %v4005_v41 }
 0x384   :  { %v4025_v2 = vpack.c.bf16 %v4004_v3, %v4003_v53 }
 0x386   :  { %5629 = vmatprep.mubr.msk.bf16.mxu1 %vm4036_vm8, %v4025_v2 }
 0x387   :  { %5630 = vmatmul.mubr.msk.bf16.gmra.mxu1 %vm4036_vm8, %v4026_v42 }
 0x3e8   :  { %v5603_v4 = vpop.f32.mrf.mxu1 }
 0x3e9   :  { %v4128_v12 = vadd.f32 %v5603_v4, %v8988_v58 }
 0x3ea   :  { %v4119_v24 = vpop.f32.mrf.mxu1 }
 0x3eb   :  { %v4120_v47 = vadd.f32 %v8988_v58, %v4119_v24  ;;  %4278 = vxpose.xlu1.b32.start [1/2] (short) (narrow) %v4128_v12, 8 }
 0x3ec   :  { %v5604_v27 = vpop.f32.mrf.mxu1 }
 0x3ed   :  { %v4131_v10 = vadd.f32 %v5604_v27, %v8988_v58  ;;  %4246 = vxpose.xlu0.b32.start [1/2] (short) (narrow) %v4120_v47, 8 }
 0x3ee   :  { %v4122_v21 = vpop.f32.mrf.mxu1 }
 0x3ef   :  { %v4123_v61 = vadd.f32 %v8988_v58, %v4122_v21  ;;  %4279 = vxpose.xlu1.b32.end [2/2] (short) (narrow) %v4131_v10, 8 }
 0x3f1   :  { %4247 = vxpose.xlu0.b32.end [2/2] (short) (narrow) %v4123_v61, 8 }
 0x3f2   :  { %v5607_v60 = vpop.f32.mrf.mxu1 }
 0x3f3   :  { %v4144_v54 = vadd.f32 %v5607_v60, %v8988_v58 }
 0x3f4   :  { %v4135_v36 = vpop.f32.mrf.mxu1 }
 0x3f5   :  { %v4136_v8 = vadd.f32 %v8988_v58, %v4135_v36  ;;  %4342 = vxpose.xlu1.b32.start [1/2] (short) (narrow) %v4144_v54, 8 }
 0x3f6   :  { %v5608_v23 = vpop.f32.mrf.mxu1 }
 0x3f7   :  { %v4147_v38 = vadd.f32 %v5608_v23, %v8988_v58  ;;  %4310 = vxpose.xlu0.b32.start [1/2] (short) (narrow) %v4136_v8, 8 }
 0x3f8   :  { %v4138_v49 = vpop.f32.mrf.mxu1 }
 0x3f9   :  { %v4139_v5 = vadd.f32 %v8988_v58, %v4138_v49  ;;  %4343 = vxpose.xlu1.b32.end [2/2] (short) (narrow) %v4147_v38, 8 }
 0x3fa   :  { %v5611_v52 = vpop.f32.mrf.mxu1 }
 0x3fb   :  { %v4160_v7 = vadd.f32 %v5611_v52, %v8988_v58  ;;  %4311 = vxpose.xlu0.b32.end [2/2] (short) (narrow) %v4139_v5, 8 }
 0x3fc   :  { %v4151_v51 = vpop.f32.mrf.mxu1 }
 0x3fd   :  { %v4152_v13 = vadd.f32 %v8988_v58, %v4151_v51  ;;  %4406 = vxpose.xlu1.b32.start [1/2] (short) (narrow) %v4160_v7, 8 }
 0x3fe   :  { %v5612_v37 = vpop.f32.mrf.mxu1 }
 0x3ff   :  { %v4163_v59 = vadd.f32 %v5612_v37, %v8988_v58  ;;  %4374 = vxpose.xlu0.b32.start [1/2] (short) (narrow) %v4152_v13, 8 }
 0x400   :  { %v4154_v45 = vpop.f32.mrf.mxu1 }
 0x401   :  { %v4155_v16 = vadd.f32 %v8988_v58, %v4154_v45  ;;  %4407 = vxpose.xlu1.b32.end [2/2] (short) (narrow) %v4163_v59, 8 }
 0x402   :  { %v5615_v22 = vpop.f32.mrf.mxu1 }
 0x403   :  { %v4176_v43 = vadd.f32 %v5615_v22, %v8988_v58  ;;  %4375 = vxpose.xlu0.b32.end [2/2] (short) (narrow) %v4155_v16, 8 }
 0x404   :  { %v4167_v55 = vpop.f32.mrf.mxu1 }
 0x405   :  { %v4168_v20 = vadd.f32 %v8988_v58, %v4167_v55  ;;  %4470 = vxpose.xlu1.b32.start [1/2] (short) (narrow) %v4176_v43, 8 }
 0x406   :  { %v5616_v46 = vpop.f32.mrf.mxu1 }
 0x407   :  { %v4179_v32 = vadd.f32 %v5616_v46, %v8988_v58  ;;  %4438 = vxpose.xlu0.b32.start [1/2] (short) (narrow) %v4168_v20, 8 }
 0x408   :  { %v4170_v30 = vpop.f32.mrf.mxu1 }
 0x409   :  { %v4171_v6 = vadd.f32 %v8988_v58, %v4170_v30  ;;  %4471 = vxpose.xlu1.b32.end [2/2] (short) (narrow) %v4179_v32, 8 }
 0x40a   :  { %v5619_v11 = vpop.f32.mrf.mxu1 }
 0x40b   :  { %v4192_v14 = vadd.f32 %v5619_v11, %v8988_v58  ;;  %4439 = vxpose.xlu0.b32.end [2/2] (short) (narrow) %v4171_v6, 8 }
 0x40c   :  { %v4183_v44 = vpop.f32.mrf.mxu1 }
 0x40d   :  { %v4184_v19 = vadd.f32 %v8988_v58, %v4183_v44  ;;  %4534 = vxpose.xlu1.b32.start [1/2] (short) (narrow) %v4192_v14, 8 }
 0x40e   :  { %v5620_v15 = vpop.f32.mrf.mxu1 }
 0x40f   :  { %v4195_v53 = vadd.f32 %v5620_v15, %v8988_v58  ;;  %4502 = vxpose.xlu0.b32.start [1/2] (short) (narrow) %v4184_v19, 8 }
 0x410   :  { %v4186_v3 = vpop.f32.mrf.mxu1 }
 0x411   :  { %v4187_v41 = vadd.f32 %v8988_v58, %v4186_v3  ;;  %4535 = vxpose.xlu1.b32.end [2/2] (short) (narrow) %v4195_v53, 8 }
 0x413   :  { %4503 = vxpose.xlu0.b32.end [2/2] (short) (narrow) %v4187_v41, 8 }
 0x416   :  { %v5623_v2 = vpop.f32.mrf.mxu1 }
 0x417   :  { %v4208_v42 = vadd.f32 %v5623_v2, %v8988_v58 }
 0x418   :  { %v4199_v4 = vpop.f32.mrf.mxu1 }
 0x419   :  { %v4200_v12 = vadd.f32 %v8988_v58, %v4199_v4  ;;  %4598 = vxpose.xlu1.b32.start [1/2] (short) (narrow) %v4208_v42, 8 }
 0x41a   :  { %v5624_v24 = vpop.f32.mrf.mxu1 }
 0x41b   :  { %v4211_v47 = vadd.f32 %v5624_v24, %v8988_v58  ;;  %4566 = vxpose.xlu0.b32.start [1/2] (short) (narrow) %v4200_v12, 8  ;;  %v4933_v12 = vld [vmem:[%s9253_s10 + $0x18] sm:$0xff] }
 0x41c   :  { %v4202_v27 = vpop.f32.mrf.mxu1 }
 0x41d   :  { %v4203_v10 = vadd.f32 %v8988_v58, %v4202_v27  ;;  %4599 = vxpose.xlu1.b32.end [2/2] (short) (narrow) %v4211_v47, 8  ;;  %v4931_v47 = vld [vmem:[%s9253_s10 + $0x8] sm:$0xff] }
 0x41f   :  { %4567 = vxpose.xlu0.b32.end [2/2] (short) (narrow) %v4203_v10, 8 }
 0x436   :  { %v5627_v21 = vpop.f32.mrf.mxu1 }
 0x437   :  { %v4224_v61 = vadd.f32 %v5627_v21, %v8988_v58 }
 0x438   :  { %v4215_v60 = vpop.f32.mrf.mxu1 }
 0x439   :  { %v4216_v54 = vadd.f32 %v8988_v58, %v4215_v60  ;;  %4662 = vxpose.xlu1.b32.start [1/2] (short) (narrow) %v4224_v61, 8 }
 0x43a   :  { %v5628_v0 = vpop.f32.mrf.mxu1 }
 0x43b   :  { %v4227_v34 = vadd.f32 %v5628_v0, %v8988_v58  ;;  %4630 = vxpose.xlu0.b32.start [1/2] (short) (narrow) %v4216_v54, 8 }
 0x43c   :  { %v4218_v36 = vpop.f32.mrf.mxu1 }
 0x43d   :  { %v4219_v56 = vadd.f32 %v8988_v58, %v4218_v36  ;;  %4663 = vxpose.xlu1.b32.end [2/2] (short) (narrow) %v4227_v34, 8  ;;  %v5491_v34 = vld [vmem:[%s9254_s9] ss:$0 sm:$0xff] }
 0x43f   :  { %4631 = vxpose.xlu0.b32.end [2/2] (short) (narrow) %v4219_v56, 8 }
 0x447   :  { %v5631_v8 = vpop.f32.mrf.mxu1 }
 0x448   :  { %v4240_v23 = vadd.f32 %v5631_v8, %v8988_v58 }
 0x449   :  { %v4231_v38 = vpop.f32.mrf.mxu1 }
 0x44a   :  { %v4232_v49 = vadd.f32 %v8988_v58, %v4231_v38  ;;  %4726 = vxpose.xlu1.b32.start [1/2] (short) (narrow) %v4240_v23, 8 }
 0x44b   :  { %v5632_v5 = vpop.f32.mrf.mxu1 }
 0x44c   :  { %v4243_v52 = vadd.f32 %v5632_v5, %v8988_v58  ;;  %4694 = vxpose.xlu0.b32.start [1/2] (short) (narrow) %v4232_v49, 8 }
 0x44d   :  { %v4234_v7 = vpop.f32.mrf.mxu1 }
 0x44e   :  { %v4235_v51 = vadd.f32 %v8988_v58, %v4234_v7  ;;  %4727 = vxpose.xlu1.b32.end [2/2] (short) (narrow) %v4243_v52, 8 }
 0x450   :  { %4695 = vxpose.xlu0.b32.end [2/2] (short) (narrow) %v4235_v51, 8 }
 0x467   :  { %v4294_v13 = vpop.trf.xlu1 }
 0x468   :  { %v9029_v59 = vadd.f32 %v4294_v13, %v8708_v31 }
 0x469   :  { %v4262_v37 = vpop.trf.xlu0 }
 0x46a   :  { %v9032_v45 = vadd.f32 %v4262_v37, %v8692_v40  ;;  %v9793_v40 = vmov 7  }
 0x46c   :  { %v4776_v16 = vpack.c.bf16 %v9029_v59, %v9032_v45 }
 0x46e   :  { %5635 = vmatprep.mubr.msk.bf16.mxu0 %vm4792_vm3, %v4776_v16 }
 0x471   :  { %v4358_v22 = vpop.trf.xlu1 }
 0x472   :  { %v9038_v58 = vadd.f32 %v4358_v22, %v8804_v50 }
 0x473   :  { %v4326_v43 = vpop.trf.xlu0 }
 0x474   :  { %v9041_v55 = vadd.f32 %v4326_v43, %v8809_v28 }
 0x476   :  { %v4777_v31 = vpack.c.bf16 %v9038_v58, %v9041_v55 }
 0x478   :  { %5636 = vmatmul.mubr.msk.bf16.vlgmr.msra.gmra.mxu0 %vm4792_vm3, %v4777_v31 }
 0x479   :  { %5795 = vset.pattern.permute.xlu0 %v9793_v40  ;;  %v4422_v20 = vpop.trf.xlu1 }
 0x47a   :  { %v9048_v32 = vadd.f32 %v4422_v20, %v8785_v25 }
 0x47b   :  { %v4390_v46 = vpop.trf.xlu0 }
 0x47c   :  { %v9051_v30 = vadd.f32 %v4390_v46, %v8790_v39 }
 0x47e   :  { %v4778_v50 = vpack.c.bf16 %v9048_v32, %v9051_v30 }
 0x480   :  { %5639 = vmatprep.mubr.msk.bf16.mxu0 %vm4792_vm3, %v4778_v50 }
 0x481   :  { %v4486_v28 = vpop.trf.xlu1 }
 0x482   :  { %v9057_v11 = vadd.f32 %v4486_v28, %v8802_v29 }
 0x483   :  { %v4454_v6 = vpop.trf.xlu0 }
 0x484   :  { %v9060_v14 = vadd.f32 %v4454_v6, %v8807_v48 }
 0x486   :  { %v4779_v25 = vpack.c.bf16 %v9057_v11, %v9060_v14 }
 0x488   :  { %5640 = vmatmul.mubr.msk.bf16.gmra.mxu0 %vm4792_vm3, %v4779_v25 }
 0x489   :  { %v4550_v39 = vpop.trf.xlu1 }
 0x48a   :  { %v9066_v19 = vadd.f32 %v4550_v39, %v8819_v35 }
 0x48b   :  { %v4518_v44 = vpop.trf.xlu0 }
 0x48c   :  { %v9069_v15 = vadd.f32 %v4518_v44, %v8817_v9 }
 0x48e   :  { %v4780_v29 = vpack.c.bf16 %v9066_v19, %v9069_v15 }
 0x490   :  { %5643 = vmatprep.mubr.msk.bf16.mxu0 %vm4792_vm3, %v4780_v29 }
 0x495   :  { %v4614_v48 = vpop.trf.xlu1 }
 0x496   :  { %v9075_v3 = vadd.f32 %v4614_v48, %v8851_v17 }
 0x497   :  { %v4582_v53 = vpop.trf.xlu0 }
 0x498   :  { %v9078_v41 = vadd.f32 %v4582_v53, %v8849_v26  ;;  %v4932_v26 = vld [vmem:[%s9253_s10 + $0x10] sm:$0xff] }
 0x49a   :  { %v4781_v35 = vpack.c.bf16 %v9075_v3, %v9078_v41 }
 0x49c   :  { %5644 = vmatmul.mubr.msk.bf16.gmra.mxu0 %vm4792_vm3, %v4781_v35 }
 0x4b5   :  { %v4678_v9 = vpop.trf.xlu1 }
 0x4b6   :  { %v9084_v42 = vadd.f32 %v4678_v9, %v8883_v1  ;;  %v4930_v1 = vld [vmem:[%s9253_s10] sm:$0xff] }
 0x4b7   :  { %v4646_v2 = vpop.trf.xlu0  ;;  %v4942_v27 = vpack.c.bf16 %v4931_v47, %v4930_v1 }
 0x4b8   :  { %v9087_v4 = vadd.f32 %v4646_v2, %v8880_v33  ;;  %v4943_v33 = vpack.c.bf16 %v4933_v12, %v4932_v26 }
 0x4ba   :  { %v4782_v17 = vpack.c.bf16 %v9084_v42, %v9087_v4  ;;  %5651 = vmatprep.subr.bf16.mxu1 %v4943_v33 }
 0x4bb   :  { %5652 = vmatpush3.bf16.msra.mxu1 %v4943_v33 }
 0x4bc   :  { %5647 = vmatprep.mubr.msk.bf16.mxu0 %vm4792_vm3, %v4782_v17  ;;  %5653 = vmatprep.subr.bf16.mxu1 %v4942_v27 }
 0x4bf   :  { %5654 = vmatpush3.bf16.msra.mxu1 %v4942_v27 }
 0x4c6   :  { %v4742_v24 = vpop.trf.xlu1 }
 0x4c7   :  { %v9105_v21 = vadd.f32 %v4742_v24, %v8898_v57 }
 0x4c8   :  { %v4710_v10 = vpop.trf.xlu0 }
 0x4c9   :  { %v9108_v61 = vadd.f32 %v4710_v10, %v8900_v63 }
 0x4cb   :  { %v4783_v60 = vpack.c.bf16 %v9105_v21, %v9108_v61 }
 0x4cd   :  { %5648 = vmatmul.mubr.msk.bf16.gmra.mxu0 %vm4792_vm3, %v4783_v60 }
 0x538   :  { %v5637_v54 = vpop.f32.mrf.mxu0 }
 0x539   :  { %v4860_v8 = vadd.f32 %v5637_v54, %v5491_v34 }
 0x53a   :  { %v4851_v0 = vpop.f32.mrf.mxu0 }
 0x53b   :  { %v4852_v57 = vadd.f32 %v5491_v34, %v4851_v0  ;;  %v4916_v52 = vmax.f32 %v4860_v8, 0.0 }
 0x53c   :  { %v5638_v36 = vpop.f32.mrf.mxu0 }
 0x53d   :  { %v4863_v56 = vadd.f32 %v5638_v36, %v5491_v34  ;;  %v4914_v49 = vmax.f32 %v4852_v57, 0.0 }
 0x53e   :  { %v4854_v63 = vpop.f32.mrf.mxu0 }
 0x53f   :  { %v4855_v23 = vadd.f32 %v5491_v34, %v4854_v63  ;;  %v4917_v38 = vmax.f32 %v4863_v56, 0.0 }
 0x541   :  { %v4915_v5 = vmax.f32 %v4855_v23, 0.0  ;;  %v4935_v51 = vpack.c.bf16 %v4917_v38, %v4916_v52 }
 0x543   :  { %v4934_v7 = vpack.c.bf16 %v4915_v5, %v4914_v49 }
 0x545   :  { %5655 = vmatprep.mubr.msk.bf16.mxu1 %vm4036_vm8, %v4934_v7  ;;  %v9127_v7 = vld [vmem:[%s9255_s11] ss:$0 sm:$0xff] }
 0x546   :  { %5656 = vmatmul.mubr.msk.bf16.vlgmr.msra.gmra.mxu1 %vm4036_vm8, %v4935_v51 }
 0x548   :  { %v5641_v13 = vpop.f32.mrf.mxu0 }
 0x549   :  { %v4876_v31 = vadd.f32 %v5641_v13, %v5491_v34 }
 0x54a   :  { %v4867_v37 = vpop.f32.mrf.mxu0 }
 0x54b   :  { %v4868_v22 = vadd.f32 %v5491_v34, %v4867_v37  ;;  %v4920_v6 = vmax.f32 %v4876_v31, 0.0 }
 0x54c   :  { %v5642_v16 = vpop.f32.mrf.mxu0 }
 0x54d   :  { %v4879_v43 = vadd.f32 %v5642_v16, %v5491_v34  ;;  %v4918_v50 = vmax.f32 %v4868_v22, 0.0 }
 0x54e   :  { %v4870_v40 = vpop.f32.mrf.mxu0 }
 0x54f   :  { %v4871_v20 = vadd.f32 %v5491_v34, %v4870_v40  ;;  %v4921_v46 = vmax.f32 %v4879_v43, 0.0 }
 0x551   :  { %v4919_v28 = vmax.f32 %v4871_v20, 0.0  ;;  %v4937_v39 = vpack.c.bf16 %v4921_v46, %v4920_v6 }
 0x553   :  { %v4936_v25 = vpack.c.bf16 %v4919_v28, %v4918_v50 }
 0x555   :  { %5659 = vmatprep.mubr.msk.bf16.mxu1 %vm4036_vm8, %v4936_v25 }
 0x556   :  { %5660 = vmatmul.mubr.msk.bf16.gmra.mxu1 %vm4036_vm8, %v4937_v39 }
 0x55c   :  { %v5645_v44 = vpop.f32.mrf.mxu0 }
 0x55d   :  { %v4892_v9 = vadd.f32 %v5645_v44, %v5491_v34 }
 0x55e   :  { %v4883_v29 = vpop.f32.mrf.mxu0 }
 0x55f   :  { %v4884_v53 = vadd.f32 %v5491_v34, %v4883_v29  ;;  %v4924_v24 = vmax.f32 %v4892_v9, 0.0 }
 0x560   :  { %v5646_v48 = vpop.f32.mrf.mxu0 }
 0x561   :  { %v4895_v35 = vadd.f32 %v5646_v48, %v5491_v34  ;;  %v4922_v12 = vmax.f32 %v4884_v53, 0.0 }
 0x562   :  { %v4886_v2 = vpop.f32.mrf.mxu0 }
 0x563   :  { %v4887_v17 = vadd.f32 %v5491_v34, %v4886_v2  ;;  %v4925_v26 = vmax.f32 %v4895_v35, 0.0 }
 0x565   :  { %v4923_v1 = vmax.f32 %v4887_v17, 0.0  ;;  %v4939_v47 = vpack.c.bf16 %v4925_v26, %v4924_v24 }
 0x567   :  { %v4938_v33 = vpack.c.bf16 %v4923_v1, %v4922_v12 }
 0x569   :  { %5663 = vmatprep.mubr.msk.bf16.mxu1 %vm4036_vm8, %v4938_v33 }
 0x56a   :  { %5664 = vmatmul.mubr.msk.bf16.gmra.mxu1 %vm4036_vm8, %v4939_v47 }
 0x58d   :  { %v5649_v27 = vpop.f32.mrf.mxu0 }
 0x58e   :  { %v4908_v36 = vadd.f32 %v5649_v27, %v5491_v34 }
 0x58f   :  { %v4899_v10 = vpop.f32.mrf.mxu0 }
 0x590   :  { %v4900_v54 = vadd.f32 %v5491_v34, %v4899_v10  ;;  %v4928_v38 = vmax.f32 %v4908_v36, 0.0 }
 0x591   :  { %v5650_v60 = vpop.f32.mrf.mxu0 }
 0x592   :  { %v4911_v0 = vadd.f32 %v5650_v60, %v5491_v34  ;;  %v4926_v63 = vmax.f32 %v4900_v54, 0.0 }
 0x593   :  { %v4902_v57 = vpop.f32.mrf.mxu0 }
 0x594   :  { %v4903_v56 = vadd.f32 %v5491_v34, %v4902_v57  ;;  %v4929_v8 = vmax.f32 %v4911_v0, 0.0 }
 0x596   :  { %v4927_v23 = vmax.f32 %v4903_v56, 0.0  ;;  %v4941_v5 = vpack.c.bf16 %v4929_v8, %v4928_v38 }
 0x598   :  { %v4940_v49 = vpack.c.bf16 %v4927_v23, %v4926_v63 }
 0x59a   :  { %5667 = vmatprep.mubr.msk.bf16.mxu1 %vm4036_vm8, %v4940_v49 }
 0x59b   :  { %5668 = vmatmul.mubr.msk.bf16.gmra.mxu1 %vm4036_vm8, %v4941_v5 }
 0x606   :  { %v5657_v52 = vpop.f32.mrf.mxu1 }
 0x607   :  { %v5018_v13 = vadd.f32 %v5657_v52, %v9127_v7 }
 0x608   :  { %v5009_v51 = vpop.f32.mrf.mxu1 }
 0x609   :  { %v5010_v34 = vadd.f32 %v9127_v7, %v5009_v51  ;;  %v5074_v31 = vadd.f32 %v5018_v13, %v9041_v55 }
 0x60a   :  { %v5658_v37 = vpop.f32.mrf.mxu1 }
 0x60b   :  { %v5072_v16 = vadd.f32 %v5010_v34, %v9032_v45  ;;  %v5021_v22 = vadd.f32 %v5658_v37, %v9127_v7 }
 0x60c   :  { %v5012_v43 = vpop.f32.mrf.mxu1 }
 0x60d   :  { %v5013_v40 = vadd.f32 %v9127_v7, %v5012_v43  ;;  %v5089_v20 = vcombine.high %v5072_v16, %v5074_v31  ;;  %v5075_v46 = vadd.f32 %v5021_v22, %v9038_v58  ;;  %v5088_v9 = vcombine.low %v5072_v16, %v5074_v31 }
 0x60f   :  { %v5073_v50 = vadd.f32 %v5013_v40, %v9029_v59  ;;  %v5103_v6 = vrot.slane %v5089_v20, %v8305_v18  ;;  %v5096_v47 = vrot.slane %v5088_v9, %v8305_v18 }
 0x611   :  { %v5105_v28 = vcombine.high %v5073_v50, %v5075_v46  ;;  %v5104_v55 = vcombine.low %v5073_v50, %v5075_v46 }
 0x613   :  { %v5119_v25 = vrot.slane %v5105_v28, %v8305_v18  ;;  %v5112_v26 = vrot.slane %v5104_v55, %v8305_v18 }
 0x615   :  { %v5169_v39 = vcombine.high %v5103_v6, %v5119_v25  ;;  %v5152_v10 = vcombine.low %v5096_v47, %v5112_v26  ;;  %v5153_v60 = vcombine.high %v5096_v47, %v5112_v26  ;;  %v5168_v16 = vcombine.low %v5103_v6, %v5119_v25 }
 0x616   :  { %v5661_v44 = vpop.f32.mrf.mxu1 }
 0x617   :  { %v5034_v29 = vadd.f32 %v5661_v44, %v9127_v7  ;;  %v9156_v63 = vrot.slane %v5152_v10, %v8343_v62  ;;  %v9165_v49 = vrot.slane %v5169_v39, %v8343_v62  ;;  %v5176_v31 = vrot.slane %v5168_v16, %v8343_v62 }
 0x618   :  { %v5025_v45 = vpop.f32.mrf.mxu1 }
 0x619   :  { %v5026_v48 = vadd.f32 %v9127_v7, %v5025_v45  ;;  %v5078_v2 = vadd.f32 %v5034_v29, %v9060_v14 }
 0x61a   :  { %v5662_v53 = vpop.f32.mrf.mxu1 }
 0x61b   :  { %v5076_v35 = vadd.f32 %v5026_v48, %v9051_v30  ;;  %v5037_v58 = vadd.f32 %v5662_v53, %v9127_v7 }
 0x61c   :  { %v5028_v59 = vpop.f32.mrf.mxu1 }
 0x61d   :  { %v5029_v17 = vadd.f32 %v9127_v7, %v5028_v59  ;;  %v5120_v12 = vcombine.low %v5076_v35, %v5078_v2  ;;  %v5121_v1 = vcombine.high %v5076_v35, %v5078_v2  ;;  %v5079_v24 = vadd.f32 %v5037_v58, %v9057_v11 }
 0x61e   :  { %v5167_v11 = vrot.slane %v5153_v60, %v8343_v62 }
 0x61f   :  { %v5077_v33 = vadd.f32 %v5029_v17, %v9048_v32  ;;  %v5128_v54 = vrot.slane %v5120_v12, %v8305_v18  ;;  %v5135_v14 = vrot.slane %v5121_v1, %v8305_v18 }
 0x621   :  { %v5136_v27 = vcombine.low %v5077_v33, %v5079_v24  ;;  %v5137_v30 = vcombine.high %v5077_v33, %v5079_v24 }
 0x623   :  { %v5144_v0 = vrot.slane %v5136_v27, %v8305_v18  ;;  %v5151_v36 = vrot.slane %v5137_v30, %v8305_v18 }
 0x625   :  { %v5184_v57 = vcombine.low %v5128_v54, %v5144_v0  ;;  %v5185_v56 = vcombine.high %v5128_v54, %v5144_v0  ;;  %v5201_v8 = vcombine.high %v5135_v14, %v5151_v36  ;;  %v5200_v5 = vcombine.low %v5135_v14, %v5151_v36 }
 0x627   :  { %v5199_v32 = vrot.slane %v5185_v56, %v8343_v62  ;;  %v9159_v23 = vrot.slane %v5184_v57, %v8343_v62  ;;  %v9162_v38 = vrot.slane %v5201_v8, %v8343_v62  ;;  %v5208_v43 = vrot.slane %v5200_v5, %v8343_v62 }
 0x629   :  { %v5218_v52 = vcombine.low %v5167_v11, %v5199_v32  ;;  %v5217_v51 = vcombine.high %v9156_v63, %v9159_v23  ;;  %v5222_v13 = vcombine.low %v9165_v49, %v9162_v38  ;;  %v5223_v34 = vcombine.high %v9165_v49, %v9162_v38 }
 0x62a   :  { %v5216_v37 = vcombine.low %v9156_v63, %v9159_v23  ;;  %v5219_v22 = vcombine.high %v5167_v11, %v5199_v32  ;;  %v5220_v40 = vcombine.low %v5176_v31, %v5208_v43  ;;  %v5221_v20 = vcombine.high %v5176_v31, %v5208_v43  ;;  %v5665_v46 = vpop.f32.mrf.mxu1 }
 0x62b   :  { %5370 = vrot.lane.b32.xlu1 %v5218_v52, %s5817_s14  ;;  %5362 = vrot.lane.b32.xlu0 %v5217_v51, %s5815_s28  ;;  %v5050_v45 = vadd.f32 %v5665_v46, %v9127_v7 }
 0x62c   :  { %v5041_v50 = vpop.f32.mrf.mxu1 }
 0x62d   :  { %v5042_v39 = vadd.f32 %v9127_v7, %v5041_v50  ;;  %v5082_v59 = vadd.f32 %v5050_v45, %v9078_v41 }
 0x62e   :  { %v5666_v28 = vpop.f32.mrf.mxu1 }
 0x62f   :  { %5378 = vrot.lane.b32.xlu1 %v5219_v22, %s5813_s26  ;;  %v5053_v44 = vadd.f32 %v5666_v28, %v9127_v7  ;;  %v5080_v55 = vadd.f32 %v5042_v39, %v9069_v15 }
 0x630   :  { %v5044_v6 = vpop.f32.mrf.mxu1 }
 0x631   :  { %v5045_v25 = vadd.f32 %v9127_v7, %v5044_v6  ;;  %v5083_v53 = vadd.f32 %v5053_v44, %v9075_v3  ;;  %v5224_v1 = vcombine.low %v5080_v55, %v5082_v59  ;;  %v5225_v10 = vcombine.high %v5080_v55, %v5082_v59 }
 0x633   :  { %5386 = vrot.lane.b32.xlu1 %v5220_v40, %s5816_s29  ;;  %v5081_v29 = vadd.f32 %v5045_v25, %v9066_v19 }
 0x635   :  { %v5240_v2 = vcombine.low %v5081_v29, %v5083_v53  ;;  %v5241_v3 = vcombine.high %v5081_v29, %v5083_v53 }
 0x637   :  { %5394 = vrot.lane.b32.xlu1 %v5221_v20, %s5811_s25  ;;  %v5248_v33 = vrot.slane %v5240_v2, %v8305_v18  ;;  %v5255_v14 = vrot.slane %v5241_v3, %v8305_v18 }
 0x65b   :  { %v5669_v48 = vpop.f32.mrf.mxu1 }
 0x65c   :  { %v5066_v58 = vadd.f32 %v5669_v48, %v9127_v7 }
 0x65d   :  { %v5057_v35 = vpop.f32.mrf.mxu1 }
 0x65e   :  { %v5058_v9 = vadd.f32 %v9127_v7, %v5057_v35  ;;  %v5086_v24 = vadd.f32 %v5066_v58, %v9108_v61 }
 0x65f   :  { %v5670_v17 = vpop.f32.mrf.mxu1 }
 0x660   :  { %v5084_v26 = vadd.f32 %v5058_v9, %v9087_v4  ;;  %v5069_v12 = vadd.f32 %v5670_v17, %v9127_v7  ;;  %v5232_v4 = vrot.slane %v5224_v1, %v8305_v18 }
 0x661   :  { %v5060_v19 = vpop.f32.mrf.mxu1 }
 0x662   :  { %v5061_v15 = vadd.f32 %v9127_v7, %v5060_v19  ;;  %v5256_v47 = vcombine.low %v5084_v26, %v5086_v24  ;;  %v5257_v27 = vcombine.high %v5084_v26, %v5086_v24  ;;  %v5087_v30 = vadd.f32 %v5069_v12, %v9105_v21 }
 0x663   :  { %v5288_v0 = vcombine.low %v5232_v4, %v5248_v33  ;;  %v5289_v61 = vcombine.high %v5232_v4, %v5248_v33  ;;  %v5239_v21 = vrot.slane %v5225_v10, %v8305_v18 }
 0x664   :  { %v5085_v41 = vadd.f32 %v5061_v15, %v9084_v42  ;;  %v5264_v7 = vrot.slane %v5256_v47, %v8305_v18  ;;  %v5271_v36 = vrot.slane %v5257_v27, %v8305_v18 }
 0x665   :  { %v5304_v32 = vcombine.low %v5239_v21, %v5255_v14  ;;  %v5303_v5 = vrot.slane %v5289_v61, %v8343_v62  ;;  %v5296_v51 = vrot.slane %v5288_v0, %v8343_v62  ;;  %v5305_v28 = vcombine.high %v5239_v21, %v5255_v14 }
 0x666   :  { %v5272_v60 = vcombine.low %v5085_v41, %v5087_v30  ;;  %v5273_v54 = vcombine.high %v5085_v41, %v5087_v30 }
 0x667   :  { %v5319_v39 = vrot.slane %v5305_v28, %v8343_v62 }
 0x668   :  { %v5280_v57 = vrot.slane %v5272_v60, %v8305_v18  ;;  %v5287_v56 = vrot.slane %v5273_v54, %v8305_v18  ;;  %v5312_v18 = vrot.slane %v5304_v32, %v8343_v62 }
 0x66a   :  { %v5320_v42 = vcombine.low %v5264_v7, %v5280_v57  ;;  %v5321_v8 = vcombine.high %v5264_v7, %v5280_v57  ;;  %v5336_v11 = vcombine.low %v5271_v36, %v5287_v56  ;;  %v5337_v20 = vcombine.high %v5271_v36, %v5287_v56 }
 0x66c   :  { %v5335_v52 = vrot.slane %v5321_v8, %v8343_v62  ;;  %v5328_v16 = vrot.slane %v5320_v42, %v8343_v62  ;;  %v5344_v31 = vrot.slane %v5336_v11, %v8343_v62  ;;  %v5351_v25 = vrot.slane %v5337_v20, %v8343_v62 }
 0x66e   :  { %v5355_v22 = vcombine.high %v5303_v5, %v5335_v52  ;;  %v5353_v43 = vcombine.high %v5296_v51, %v5328_v16  ;;  %v5352_v40 = vcombine.low %v5296_v51, %v5328_v16  ;;  %v5356_v46 = vcombine.low %v5312_v18, %v5344_v31 }
 0x66f   :  { %v5354_v50 = vcombine.low %v5303_v5, %v5335_v52  ;;  %v5357_v6 = vcombine.high %v5312_v18, %v5344_v31  ;;  %v5358_v44 = vcombine.low %v5319_v39, %v5351_v25  ;;  %v5359_v45 = vcombine.high %v5319_v39, %v5351_v25 }
 0x670   :  { %5380 = vrot.lane.b32.xlu0 %v5355_v22, %s5813_s26  ;;  %5364 = vrot.lane.b32.xlu1 %v5353_v43, %s5815_s28 }
 0x674   :  { %5388 = vrot.lane.b32.xlu0 %v5356_v46, %s5816_s29  ;;  %5372 = vrot.lane.b32.xlu1 %v5354_v50, %s5817_s14 }
 0x678   :  { %5396 = vrot.lane.b32.xlu0 %v5357_v6, %s5811_s25  ;;  %5402 = vrot.lane.b32.xlu1 %v5222_v13, %s5814_s27 }
 0x67c   :  { %5404 = vrot.lane.b32.xlu0 %v5358_v44, %s5814_s27  ;;  %5410 = vrot.lane.b32.xlu1 %v5223_v34, %s5810_s3 }
 0x680   :  { %5412 = vrot.lane.b32.xlu0 %v5359_v45, %s5810_s3 }
 0x69d   :  { %v5371_v29 = vpop.permute.xlu1 %5370  ;;  %v5363_v53 = vpop.permute.xlu0 %5362 }
 0x69e   :  { %v5416_v59 = vsel %vm4792_vm3, %v5216_v37, %v5363_v53 }
 0x69f   :  { %v5418_v34 = vsel %vm4036_vm8, %v5416_v59, %v5371_v29 }
 0x6a1   :  { %v5379_v48 = vpop.permute.xlu1 %5378 }
 0x6a2   :  { %v5421_v26 = vsel %vm5420_vm9, %v5418_v34, %v5379_v48 }
 0x6a5   :  { %v5387_v55 = vpop.permute.xlu1 %5386 }
 0x6a6   :  { %v5424_v1 = vsel %vm5423_vm12, %v5421_v26, %v5387_v55 }
 0x6a9   :  { %v5395_v35 = vpop.permute.xlu1 %5394 }
 0x6aa   :  { %v5427_v63 = vsel %vm5426_vm5, %v5424_v1, %v5395_v35 }
 0x6e2   :  { %v5365_v58 = vpop.permute.xlu1 %5364  ;;  %v5381_v13 = vpop.permute.xlu0 %5380 }
 0x6e3   :  { %v5417_v38 = vsel %vm4792_vm3, %v5352_v40, %v5365_v58 }
 0x6e6   :  { %v5373_v9 = vpop.permute.xlu1 %5372  ;;  %v5389_v62 = vpop.permute.xlu0 %5388 }
 0x6e7   :  { %v5419_v49 = vsel %vm4036_vm8, %v5417_v38, %v5373_v9 }
 0x6e8   :  { %v5422_v12 = vsel %vm5420_vm9, %v5419_v49, %v5381_v13 }
 0x6e9   :  { %v5425_v23 = vsel %vm5423_vm12, %v5422_v12, %v5389_v62 }
 0x6ea   :  { %v5403_v2 = vpop.permute.xlu1 %5402  ;;  %v5397_v17 = vpop.permute.xlu0 %5396 }
 0x6eb   :  { %v5430_v37 = vsel %vm5429_vm4, %v5427_v63, %v5403_v2  ;;  %v5428_v3 = vsel %vm5426_vm5, %v5425_v23, %v5397_v17 }
 0x6ee   :  { %v5411_v19 = vpop.permute.xlu1 %5410  ;;  %v5405_v24 = vpop.permute.xlu0 %5404 }
 0x6ef   :  { %v5433_v15 = vsel %vm5432_vm10, %v5430_v37, %v5411_v19  ;;  %v5431_v33 = vsel %vm5429_vm4, %v5428_v3, %v5405_v24 }
 0x6f0   :  { %5435 = vst [vmem:[%s9256_s12] sm:$0xff] %v5433_v15 }
 0x6f2   :  { %v5413_v47 = vpop.permute.xlu0 %5412 }
 0x6f3   :  { %v5434_v27 = vsel %vm5432_vm10, %v5431_v33, %v5413_v47 }
 0x6f4   :  { %5436 = vst [vmem:[%s9256_s12 + $0x8] sm:$0xff] %v5434_v27 }

</bundles_post_ra>
